<compile_context>
chip_gen: v5e
topology: v5e:2x2
jax: 0.10.0
libtpu: 0.0.40
codegen_flags: <defaults>
</compile_context>

<pallas_src>
import numpy as np

import jax
import jax.numpy as jnp
from jax.experimental import pallas as pl
from jax.experimental.pallas import tpu as pltpu


_BLOCK_N = 8          # images per grid step (multiple of 8 keeps sublanes aligned)


# ---------------------------------------------------------------------------
# Fused kernel: one grid step processes _BLOCK_N images end-to-end.
#
# Layout conventions inside the kernel (nb = _BLOCK_N):
#   x_ref   : (4, 7, nb, 28)   x_ref[s, t, n, q] = image[n, 4*t + s, q]
#   p1e/p1o : (6*nb, 96)       rows (m-major, image-minor) = pooled row u=2m / 2m+1
#                              lanes = a*12 + v  (a = conv1 channel, v = pooled col)
#   p2      : (4*nb, 64)       rows (g-major, image-minor) = pool2 row g
#                              lanes = b*4 + h   (b = conv2 channel, h = pool2 col)
# ---------------------------------------------------------------------------
def _fused_kernel(x_ref, w1a_ref, b1a_ref, w2a_ref, b2a_ref,
                  wf1_ref, s1_ref, t1_ref, wf2_ref, s2_ref, t2_ref,
                  wf3_ref, bf3_ref, o_ref):
    f32 = jnp.float32
    nb = x_ref.shape[2]

    # ---- conv1 (banded matmuls) + ReLU + 2x2 maxpool ------------------------
    def conv1_rows(off):
        # pre-bias conv1 outputs for rows i = 4m + off (m = 0..5), already
        # max-reduced over the column-pool candidate dj; lanes = a*12 + v.
        acc = None
        for ky in range(5):
            s = off + ky
            piece = x_ref[s % 4, s // 4:s // 4 + 6].reshape(6 * nb, 28)
            t = jnp.dot(piece, w1a_ref[ky], preferred_element_type=f32)
            acc = t if acc is None else acc + t              # (6*nb, 192)
        return jnp.maximum(acc[:, :96], acc[:, 96:])          # max over dj

    b1a = b1a_ref[...]                                        # (1, 96)
    p1e = jnp.maximum(jnp.maximum(conv1_rows(0), conv1_rows(1)) + b1a, 0.0)
    p1o = jnp.maximum(jnp.maximum(conv1_rows(2), conv1_rows(3)) + b1a, 0.0)

    # ---- conv2 (banded matmuls) + ReLU + 2x2 maxpool ------------------------
    acc2 = None
    for s in range(6):
        src = p1e if s % 2 == 0 else p1o
        piece = src[(s // 2) * nb:(s // 2) * nb + 4 * nb, :]  # (4*nb, 96)
        t = jnp.dot(piece, w2a_ref[s], preferred_element_type=f32)
        acc2 = t if acc2 is None else acc2 + t                # (4*nb, 256)
    m2 = jnp.maximum(jnp.maximum(acc2[:, :64], acc2[:, 64:128]),
                     jnp.maximum(acc2[:, 128:192], acc2[:, 192:]))
    p2 = jnp.maximum(m2 + b2a_ref[...], 0.0)                  # (4*nb, 64)

    # ---- FC head: flatten folded into 4 accumulated matmuls -----------------
    h = None
    for g in range(4):
        t = jnp.dot(p2[g * nb:(g + 1) * nb, :], wf1_ref[g],
                    preferred_element_type=f32)
        h = t if h is None else h + t                         # (nb, 128)
    h = jnp.maximum(h * s1_ref[...] + t1_ref[...], 0.0)       # Linear+BN1+ReLU
    # TODO(synk): Dropout(0.5) is identity in eval mode.
    h = jnp.dot(h, wf2_ref[...], preferred_element_type=f32)
    h = jnp.maximum(h * s2_ref[...] + t2_ref[...], 0.0)       # Linear+BN2+ReLU
    o_ref[...] = (jnp.dot(h, wf3_ref[...], preferred_element_type=f32)
                  + bf3_ref[...])


# ---------------------------------------------------------------------------
# One-time host-side parameter packing (banded conv matrices, folded BN, ...)
# ---------------------------------------------------------------------------
def prepare_params(p):
    f32 = jnp.float32

    # conv1 -> banded matrices, one (28, 192) block per kernel row ky.
    # column = dj*96 + a*12 + v  encodes (col-pool candidate dj, channel a, pooled col v)
    ky_l, q_l, col_l, a_l, kx_l = [], [], [], [], []
    for a in range(8):
        for ky in range(5):
            for kx in range(5):
                for v in range(12):
                    for dj in range(2):
                        ky_l.append(ky)
                        q_l.append(2 * v + dj + kx)
                        col_l.append(dj * 96 + a * 12 + v)
                        a_l.append(a)
                        kx_l.append(kx)
    w1 = p["w1"].astype(f32).reshape(8, 5, 5)
    w1_vals = w1[np.array(a_l), np.array(ky_l), np.array(kx_l)]
    w1a = jnp.zeros((5, 28, 192), f32).at[
        np.array(ky_l), np.array(q_l), np.array(col_l)].set(w1_vals)
    b1a = jnp.repeat(p["b1"].astype(f32), 12)[None, :]                 # (1, 96)

    # conv2 -> banded matrices, one (96, 256) block per relative pooled row s.
    # row    = a*12 + v
    # column = dp*128 + dq*64 + b*4 + h  (pool2 candidates dp/dq, channel b, col h)
    s_l, r_l, c_l, b_l, a_l, ky_l, kx_l = [], [], [], [], [], [], []
    for b in range(16):
        for a in range(8):
            for ky in range(5):
                for kx in range(5):
                    for dp in range(2):
                        for dq in range(2):
                            for h in range(4):
                                s_l.append(ky + dp)
                                r_l.append(a * 12 + (2 * h + dq + kx))
                                c_l.append(dp * 128 + dq * 64 + b * 4 + h)
                                b_l.append(b)
                                a_l.append(a)
                                ky_l.append(ky)
                                kx_l.append(kx)
    w2 = p["w2"].astype(f32)
    w2_vals = w2[np.array(b_l), np.array(a_l), np.array(ky_l), np.array(kx_l)]
    w2a = jnp.zeros((6, 96, 256), f32).at[
        np.array(s_l), np.array(r_l), np.array(c_l)].set(w2_vals)
    b2a = jnp.repeat(p["b2"].astype(f32), 4)[None, :]                  # (1, 64)

    # FC1: permute rows from PyTorch NCHW flatten (b*16 + g*4 + h) into
    # per-pool-row blocks (g, b*4 + h) -> (4, 64, 128). No runtime transpose.
    wf1g = (p["wf1"].astype(f32).reshape(16, 4, 4, 128)
            .transpose(1, 0, 2, 3).reshape(4, 64, 128))

    # Fold eval-mode BatchNorm (and the preceding Linear bias) into scale/shift.
    eps = 1e-5
    s1 = p["bn1_g"] / jnp.sqrt(p["bn1_rv"] + eps)
    t1 = p["bn1_b"] - p["bn1_rm"] * s1 + p["bf1"] * s1
    s2 = p["bn2_g"] / jnp.sqrt(p["bn2_rv"] + eps)
    t2 = p["bn2_b"] - p["bn2_rm"] * s2 + p["bf2"] * s2

    return dict(
        w1a=w1a, b1a=b1a, w2a=w2a, b2a=b2a, wf1g=wf1g,
        s1=s1.astype(f32)[None, :], t1=t1.astype(f32)[None, :],
        wf2=p["wf2"].astype(f32),
        s2=s2.astype(f32)[None, :], t2=t2.astype(f32)[None, :],
        wf3=p["wf3"].astype(f32), bf3=p["bf3"].astype(f32)[None, :])


# ---------------------------------------------------------------------------
# Forward pass: single fused pallas_call over a batch grid.
# ---------------------------------------------------------------------------
def classifier_forward(x, pp):
    n = x.shape[0]
    bn = _BLOCK_N
    x = x.astype(jnp.float32)[:, 0]                    # (N, 28, 28), Cin = 1
    n_pad = -(-n // bn) * bn
    if n_pad != n:
        x = jnp.pad(x, ((0, n_pad - n), (0, 0), (0, 0)))
    # x4[s, t, n, q] = x[n, 4*t + s, q]  (no data duplication, tiny relayout)
    x4 = x.reshape(n_pad, 7, 4, 28).transpose(2, 1, 0, 3)

    args = (x4, pp["w1a"], pp["b1a"], pp["w2a"], pp["b2a"],
            pp["wf1g"], pp["s1"], pp["t1"], pp["wf2"], pp["s2"], pp["t2"],
            pp["wf3"], pp["bf3"])

    def _const_spec(shape):
        nd = len(shape)
        return pl.BlockSpec(shape, lambda i, _nd=nd: (0,) * _nd)

    in_specs = [pl.BlockSpec((4, 7, bn, 28), lambda i: (0, 0, i, 0))]
    in_specs += [_const_spec(a.shape) for a in args[1:]]

    out = pl.pallas_call(
        _fused_kernel,
        grid=(n_pad // bn,),
        in_specs=in_specs,
        out_specs=pl.BlockSpec((bn, 10), lambda i: (i, 0)),
        out_shape=jax.ShapeDtypeStruct((n_pad, 10), jnp.float32),
        compiler_params=pltpu.CompilerParams(
            dimension_semantics=("parallel",)),
    )(*args)
    return out[:n]


# ---------------------------------------------------------------------------
# Pure-JAX reference (same eval-mode semantics) for a numerical check.
# ---------------------------------------------------------------------------
def reference_forward(x, p):
    with jax.default_matmul_precision("float32"):
        x = x.astype(jnp.float32)
        dn = ("NCHW", "OIHW", "NCHW")
        y = jax.lax.conv_general_dilated(x, p["w1"], (1, 1), "VALID",
                                         dimension_numbers=dn)
        y = jnp.maximum(y + p["b1"][None, :, None, None], 0.0)
        y = jax.lax.reduce_window(y, -jnp.inf, jax.lax.max,
                                  (1, 1, 2, 2), (1, 1, 2, 2), "VALID")
        y = jax.lax.conv_general_dilated(y, p["w2"], (1, 1), "VALID",
                                         dimension_numbers=dn)
        y = jnp.maximum(y + p["b2"][None, :, None, None], 0.0)
        y = jax.lax.reduce_window(y, -jnp.inf, jax.lax.max,
                                  (1, 1, 2, 2), (1, 1, 2, 2), "VALID")
        f = y.reshape(y.shape[0], -1)
        eps = 1e-5
        h = f @ p["wf1"] + p["bf1"]
        h = (h - p["bn1_rm"]) / jnp.sqrt(p["bn1_rv"] + eps) * p["bn1_g"] + p["bn1_b"]
        h = jnp.maximum(h, 0.0)
        h = h @ p["wf2"] + p["bf2"]
        h = (h - p["bn2_rm"]) / jnp.sqrt(p["bn2_rv"] + eps) * p["bn2_g"] + p["bn2_b"]
        h = jnp.maximum(h, 0.0)
        return h @ p["wf3"] + p["bf3"]


# ---------------------------------------------------------------------------
# Deterministic parameter init (synthetic, matching module shapes)
# ---------------------------------------------------------------------------
def init_params(key):
    ks = jax.random.split(key, 20)
    r = lambda k, s, sc=0.1: sc * jax.random.normal(k, s, jnp.float32)
    return dict(
        w1=r(ks[0], (8, 1, 5, 5)),   b1=r(ks[1], (8,)),
        w2=r(ks[2], (16, 8, 5, 5)),  b2=r(ks[3], (16,)),
        wf1=r(ks[4], (256, 128)),    bf1=r(ks[5], (128,)),
        bn1_g=1.0 + r(ks[6], (128,)), bn1_b=r(ks[7], (128,)),
        bn1_rm=r(ks[8], (128,)),
        bn1_rv=jax.random.uniform(ks[9], (128,), jnp.float32, 0.5, 1.5),
        wf2=r(ks[10], (128, 64)),    bf2=r(ks[11], (64,)),
        bn2_g=1.0 + r(ks[12], (64,)), bn2_b=r(ks[13], (64,)),
        bn2_rm=r(ks[14], (64,)),
        bn2_rv=jax.random.uniform(ks[15], (64,), jnp.float32, 0.5, 1.5),
        wf3=r(ks[16], (64, 10)),     bf3=r(ks[17], (10,)),
    )


if __name__ == "__main__":
    key = jax.random.PRNGKey(0)
    k_param, k_x = jax.random.split(key)
    params = init_params(k_param)
    pp = prepare_params(params)          # one-time host-side weight packing

    # Input consistent with the module: Linear(256) implies 1x28x28 inputs.
    x = jax.random.normal(k_x, (2, 1, 28, 28), jnp.float32)

    fwd = jax.jit(classifier_forward)
    out = jax.block_until_ready(fwd(x, pp))

    assert out.shape == (2, 10), out.shape
    assert out.dtype == jnp.float32
    assert bool(jnp.all(jnp.isfinite(out)))

    ref = reference_forward(x, params)
    max_diff = float(jnp.max(jnp.abs(out - ref)))
    assert jnp.allclose(out, ref, atol=2e-2, rtol=2e-2), f"max diff {max_diff}"

    print("KERNEL_OK")
</pallas_src>

<mosaic_0001>
module attributes {stable_mosaic.version = 11 : i64} {
  func.func @_fused_kernel(%arg0: i32, %arg1: memref<4x7x8x28xf32, #tpu.memory_space<vmem>>, %arg2: memref<5x28x192xf32, #tpu.memory_space<vmem>>, %arg3: memref<1x96xf32, #tpu.memory_space<vmem>>, %arg4: memref<6x96x256xf32, #tpu.memory_space<vmem>>, %arg5: memref<1x64xf32, #tpu.memory_space<vmem>>, %arg6: memref<4x64x128xf32, #tpu.memory_space<vmem>>, %arg7: memref<1x128xf32, #tpu.memory_space<vmem>>, %arg8: memref<1x128xf32, #tpu.memory_space<vmem>>, %arg9: memref<128x64xf32, #tpu.memory_space<vmem>>, %arg10: memref<1x64xf32, #tpu.memory_space<vmem>>, %arg11: memref<1x64xf32, #tpu.memory_space<vmem>>, %arg12: memref<64x10xf32, #tpu.memory_space<vmem>>, %arg13: memref<1x10xf32, #tpu.memory_space<vmem>>, %arg14: memref<8x10xf32, #tpu.memory_space<vmem>>) attributes {dimension_semantics = [#tpu.dimension_semantics<parallel>], iteration_bounds = array<i64: 1>, scalar_prefetch = 0 : i64, scratch_operands = 0 : i64, tpu.core_type = #tpu.core_type<tc>, window_params = [{transform_indices = @transform_0, window_bounds = array<i64: 4, 7, 8, 28>}, {pipeline_mode = #tpu.pipeline_mode<synchronous>, transform_indices = @transform_1, window_bounds = array<i64: 5, 28, 192>}, {pipeline_mode = #tpu.pipeline_mode<synchronous>, transform_indices = @transform_2, window_bounds = array<i64: 1, 96>}, {pipeline_mode = #tpu.pipeline_mode<synchronous>, transform_indices = @transform_3, window_bounds = array<i64: 6, 96, 256>}, {pipeline_mode = #tpu.pipeline_mode<synchronous>, transform_indices = @transform_4, window_bounds = array<i64: 1, 64>}, {pipeline_mode = #tpu.pipeline_mode<synchronous>, transform_indices = @transform_5, window_bounds = array<i64: 4, 64, 128>}, {pipeline_mode = #tpu.pipeline_mode<synchronous>, transform_indices = @transform_6, window_bounds = array<i64: 1, 128>}, {pipeline_mode = #tpu.pipeline_mode<synchronous>, transform_indices = @transform_7, window_bounds = array<i64: 1, 128>}, {pipeline_mode = #tpu.pipeline_mode<synchronous>, transform_indices = @transform_8, window_bounds = array<i64: 128, 64>}, {pipeline_mode = #tpu.pipeline_mode<synchronous>, transform_indices = @transform_9, window_bounds = array<i64: 1, 64>}, {pipeline_mode = #tpu.pipeline_mode<synchronous>, transform_indices = @transform_10, window_bounds = array<i64: 1, 64>}, {pipeline_mode = #tpu.pipeline_mode<synchronous>, transform_indices = @transform_11, window_bounds = array<i64: 64, 10>}, {pipeline_mode = #tpu.pipeline_mode<synchronous>, transform_indices = @transform_12, window_bounds = array<i64: 1, 10>}, {transform_indices = @transform_13, window_bounds = array<i64: 8, 10>}]} {
    %c0 = arith.constant 0 : index
    %c0_0 = arith.constant 0 : index
    %0 = vector.load %arg3[%c0, %c0_0] : memref<1x96xf32, #tpu.memory_space<vmem>>, vector<1x96xf32>
    %c0_1 = arith.constant 0 : index
    %c0_2 = arith.constant 0 : index
    %c0_3 = arith.constant 0 : index
    %c0_4 = arith.constant 0 : index
    %1 = vector.load %arg1[%c0_1, %c0_2, %c0_3, %c0_4] : memref<4x7x8x28xf32, #tpu.memory_space<vmem>>, vector<1x6x8x28xf32>
    %2 = vector.shape_cast %1 : vector<1x6x8x28xf32> to vector<6x8x28xf32>
    %3 = vector.shape_cast %2 : vector<6x8x28xf32> to vector<48x28xf32>
    %c0_5 = arith.constant 0 : index
    %c0_6 = arith.constant 0 : index
    %c0_7 = arith.constant 0 : index
    %4 = vector.load %arg2[%c0_5, %c0_6, %c0_7] : memref<5x28x192xf32, #tpu.memory_space<vmem>>, vector<1x28x192xf32>
    %5 = vector.shape_cast %4 : vector<1x28x192xf32> to vector<28x192xf32>
    %cst = arith.constant dense<0.000000e+00> : vector<48x192xf32>
    %6 = tpu.matmul %3, %5, %cst {dimension_numbers = #tpu.dot_dimension_numbers<[1], [0], [0], [1], [0, 0, 1, 1], [], []>} : vector<48x28xf32>, vector<28x192xf32>, vector<48x192xf32> -> vector<48x192xf32>
    %c1 = arith.constant 1 : index
    %c0_8 = arith.constant 0 : index
    %c0_9 = arith.constant 0 : index
    %c0_10 = arith.constant 0 : index
    %7 = vector.load %arg1[%c1, %c0_8, %c0_9, %c0_10] : memref<4x7x8x28xf32, #tpu.memory_space<vmem>>, vector<1x6x8x28xf32>
    %8 = vector.shape_cast %7 : vector<1x6x8x28xf32> to vector<6x8x28xf32>
    %9 = vector.shape_cast %8 : vector<6x8x28xf32> to vector<48x28xf32>
    %c1_11 = arith.constant 1 : index
    %c0_12 = arith.constant 0 : index
    %c0_13 = arith.constant 0 : index
    %10 = vector.load %arg2[%c1_11, %c0_12, %c0_13] : memref<5x28x192xf32, #tpu.memory_space<vmem>>, vector<1x28x192xf32>
    %11 = vector.shape_cast %10 : vector<1x28x192xf32> to vector<28x192xf32>
    %cst_14 = arith.constant dense<0.000000e+00> : vector<48x192xf32>
    %12 = tpu.matmul %9, %11, %cst_14 {dimension_numbers = #tpu.dot_dimension_numbers<[1], [0], [0], [1], [0, 0, 1, 1], [], []>} : vector<48x28xf32>, vector<28x192xf32>, vector<48x192xf32> -> vector<48x192xf32>
    %13 = arith.addf %6, %12 : vector<48x192xf32>
    %c2 = arith.constant 2 : index
    %c0_15 = arith.constant 0 : index
    %c0_16 = arith.constant 0 : index
    %c0_17 = arith.constant 0 : index
    %14 = vector.load %arg1[%c2, %c0_15, %c0_16, %c0_17] : memref<4x7x8x28xf32, #tpu.memory_space<vmem>>, vector<1x6x8x28xf32>
    %15 = vector.shape_cast %14 : vector<1x6x8x28xf32> to vector<6x8x28xf32>
    %16 = vector.shape_cast %15 : vector<6x8x28xf32> to vector<48x28xf32>
    %c2_18 = arith.constant 2 : index
    %c0_19 = arith.constant 0 : index
    %c0_20 = arith.constant 0 : index
    %17 = vector.load %arg2[%c2_18, %c0_19, %c0_20] : memref<5x28x192xf32, #tpu.memory_space<vmem>>, vector<1x28x192xf32>
    %18 = vector.shape_cast %17 : vector<1x28x192xf32> to vector<28x192xf32>
    %cst_21 = arith.constant dense<0.000000e+00> : vector<48x192xf32>
    %19 = tpu.matmul %16, %18, %cst_21 {dimension_numbers = #tpu.dot_dimension_numbers<[1], [0], [0], [1], [0, 0, 1, 1], [], []>} : vector<48x28xf32>, vector<28x192xf32>, vector<48x192xf32> -> vector<48x192xf32>
    %20 = arith.addf %13, %19 : vector<48x192xf32>
    %c3 = arith.constant 3 : index
    %c0_22 = arith.constant 0 : index
    %c0_23 = arith.constant 0 : index
    %c0_24 = arith.constant 0 : index
    %21 = vector.load %arg1[%c3, %c0_22, %c0_23, %c0_24] : memref<4x7x8x28xf32, #tpu.memory_space<vmem>>, vector<1x6x8x28xf32>
    %22 = vector.shape_cast %21 : vector<1x6x8x28xf32> to vector<6x8x28xf32>
    %23 = vector.shape_cast %22 : vector<6x8x28xf32> to vector<48x28xf32>
    %c3_25 = arith.constant 3 : index
    %c0_26 = arith.constant 0 : index
    %c0_27 = arith.constant 0 : index
    %24 = vector.load %arg2[%c3_25, %c0_26, %c0_27] : memref<5x28x192xf32, #tpu.memory_space<vmem>>, vector<1x28x192xf32>
    %25 = vector.shape_cast %24 : vector<1x28x192xf32> to vector<28x192xf32>
    %cst_28 = arith.constant dense<0.000000e+00> : vector<48x192xf32>
    %26 = tpu.matmul %23, %25, %cst_28 {dimension_numbers = #tpu.dot_dimension_numbers<[1], [0], [0], [1], [0, 0, 1, 1], [], []>} : vector<48x28xf32>, vector<28x192xf32>, vector<48x192xf32> -> vector<48x192xf32>
    %27 = arith.addf %20, %26 : vector<48x192xf32>
    %c0_29 = arith.constant 0 : index
    %c1_30 = arith.constant 1 : index
    %c0_31 = arith.constant 0 : index
    %c0_32 = arith.constant 0 : index
    %28 = vector.load %arg1[%c0_29, %c1_30, %c0_31, %c0_32] : memref<4x7x8x28xf32, #tpu.memory_space<vmem>>, vector<1x6x8x28xf32>
    %29 = vector.shape_cast %28 : vector<1x6x8x28xf32> to vector<6x8x28xf32>
    %30 = vector.shape_cast %29 : vector<6x8x28xf32> to vector<48x28xf32>
    %c4 = arith.constant 4 : index
    %c0_33 = arith.constant 0 : index
    %c0_34 = arith.constant 0 : index
    %31 = vector.load %arg2[%c4, %c0_33, %c0_34] : memref<5x28x192xf32, #tpu.memory_space<vmem>>, vector<1x28x192xf32>
    %32 = vector.shape_cast %31 : vector<1x28x192xf32> to vector<28x192xf32>
    %cst_35 = arith.constant dense<0.000000e+00> : vector<48x192xf32>
    %33 = tpu.matmul %30, %32, %cst_35 {dimension_numbers = #tpu.dot_dimension_numbers<[1], [0], [0], [1], [0, 0, 1, 1], [], []>} : vector<48x28xf32>, vector<28x192xf32>, vector<48x192xf32> -> vector<48x192xf32>
    %34 = arith.addf %27, %33 : vector<48x192xf32>
    %35 = vector.extract_strided_slice %34 {offsets = [0, 0], sizes = [48, 96], strides = [1, 1]} : vector<48x192xf32> to vector<48x96xf32>
    %36 = vector.extract_strided_slice %34 {offsets = [0, 96], sizes = [48, 96], strides = [1, 1]} : vector<48x192xf32> to vector<48x96xf32>
    %37 = arith.maximumf %35, %36 : vector<48x96xf32>
    %c1_36 = arith.constant 1 : index
    %c0_37 = arith.constant 0 : index
    %c0_38 = arith.constant 0 : index
    %c0_39 = arith.constant 0 : index
    %38 = vector.load %arg1[%c1_36, %c0_37, %c0_38, %c0_39] : memref<4x7x8x28xf32, #tpu.memory_space<vmem>>, vector<1x6x8x28xf32>
    %39 = vector.shape_cast %38 : vector<1x6x8x28xf32> to vector<6x8x28xf32>
    %40 = vector.shape_cast %39 : vector<6x8x28xf32> to vector<48x28xf32>
    %c0_40 = arith.constant 0 : index
    %c0_41 = arith.constant 0 : index
    %c0_42 = arith.constant 0 : index
    %41 = vector.load %arg2[%c0_40, %c0_41, %c0_42] : memref<5x28x192xf32, #tpu.memory_space<vmem>>, vector<1x28x192xf32>
    %42 = vector.shape_cast %41 : vector<1x28x192xf32> to vector<28x192xf32>
    %cst_43 = arith.constant dense<0.000000e+00> : vector<48x192xf32>
    %43 = tpu.matmul %40, %42, %cst_43 {dimension_numbers = #tpu.dot_dimension_numbers<[1], [0], [0], [1], [0, 0, 1, 1], [], []>} : vector<48x28xf32>, vector<28x192xf32>, vector<48x192xf32> -> vector<48x192xf32>
    %c2_44 = arith.constant 2 : index
    %c0_45 = arith.constant 0 : index
    %c0_46 = arith.constant 0 : index
    %c0_47 = arith.constant 0 : index
    %44 = vector.load %arg1[%c2_44, %c0_45, %c0_46, %c0_47] : memref<4x7x8x28xf32, #tpu.memory_space<vmem>>, vector<1x6x8x28xf32>
    %45 = vector.shape_cast %44 : vector<1x6x8x28xf32> to vector<6x8x28xf32>
    %46 = vector.shape_cast %45 : vector<6x8x28xf32> to vector<48x28xf32>
    %c1_48 = arith.constant 1 : index
    %c0_49 = arith.constant 0 : index
    %c0_50 = arith.constant 0 : index
    %47 = vector.load %arg2[%c1_48, %c0_49, %c0_50] : memref<5x28x192xf32, #tpu.memory_space<vmem>>, vector<1x28x192xf32>
    %48 = vector.shape_cast %47 : vector<1x28x192xf32> to vector<28x192xf32>
    %cst_51 = arith.constant dense<0.000000e+00> : vector<48x192xf32>
    %49 = tpu.matmul %46, %48, %cst_51 {dimension_numbers = #tpu.dot_dimension_numbers<[1], [0], [0], [1], [0, 0, 1, 1], [], []>} : vector<48x28xf32>, vector<28x192xf32>, vector<48x192xf32> -> vector<48x192xf32>
    %50 = arith.addf %43, %49 : vector<48x192xf32>
    %c3_52 = arith.constant 3 : index
    %c0_53 = arith.constant 0 : index
    %c0_54 = arith.constant 0 : index
    %c0_55 = arith.constant 0 : index
    %51 = vector.load %arg1[%c3_52, %c0_53, %c0_54, %c0_55] : memref<4x7x8x28xf32, #tpu.memory_space<vmem>>, vector<1x6x8x28xf32>
    %52 = vector.shape_cast %51 : vector<1x6x8x28xf32> to vector<6x8x28xf32>
    %53 = vector.shape_cast %52 : vector<6x8x28xf32> to vector<48x28xf32>
    %c2_56 = arith.constant 2 : index
    %c0_57 = arith.constant 0 : index
    %c0_58 = arith.constant 0 : index
    %54 = vector.load %arg2[%c2_56, %c0_57, %c0_58] : memref<5x28x192xf32, #tpu.memory_space<vmem>>, vector<1x28x192xf32>
    %55 = vector.shape_cast %54 : vector<1x28x192xf32> to vector<28x192xf32>
    %cst_59 = arith.constant dense<0.000000e+00> : vector<48x192xf32>
    %56 = tpu.matmul %53, %55, %cst_59 {dimension_numbers = #tpu.dot_dimension_numbers<[1], [0], [0], [1], [0, 0, 1, 1], [], []>} : vector<48x28xf32>, vector<28x192xf32>, vector<48x192xf32> -> vector<48x192xf32>
    %57 = arith.addf %50, %56 : vector<48x192xf32>
    %c0_60 = arith.constant 0 : index
    %c1_61 = arith.constant 1 : index
    %c0_62 = arith.constant 0 : index
    %c0_63 = arith.constant 0 : index
    %58 = vector.load %arg1[%c0_60, %c1_61, %c0_62, %c0_63] : memref<4x7x8x28xf32, #tpu.memory_space<vmem>>, vector<1x6x8x28xf32>
    %59 = vector.shape_cast %58 : vector<1x6x8x28xf32> to vector<6x8x28xf32>
    %60 = vector.shape_cast %59 : vector<6x8x28xf32> to vector<48x28xf32>
    %c3_64 = arith.constant 3 : index
    %c0_65 = arith.constant 0 : index
    %c0_66 = arith.constant 0 : index
    %61 = vector.load %arg2[%c3_64, %c0_65, %c0_66] : memref<5x28x192xf32, #tpu.memory_space<vmem>>, vector<1x28x192xf32>
    %62 = vector.shape_cast %61 : vector<1x28x192xf32> to vector<28x192xf32>
    %cst_67 = arith.constant dense<0.000000e+00> : vector<48x192xf32>
    %63 = tpu.matmul %60, %62, %cst_67 {dimension_numbers = #tpu.dot_dimension_numbers<[1], [0], [0], [1], [0, 0, 1, 1], [], []>} : vector<48x28xf32>, vector<28x192xf32>, vector<48x192xf32> -> vector<48x192xf32>
    %64 = arith.addf %57, %63 : vector<48x192xf32>
    %c1_68 = arith.constant 1 : index
    %c1_69 = arith.constant 1 : index
    %c0_70 = arith.constant 0 : index
    %c0_71 = arith.constant 0 : index
    %65 = vector.load %arg1[%c1_68, %c1_69, %c0_70, %c0_71] : memref<4x7x8x28xf32, #tpu.memory_space<vmem>>, vector<1x6x8x28xf32>
    %66 = vector.shape_cast %65 : vector<1x6x8x28xf32> to vector<6x8x28xf32>
    %67 = vector.shape_cast %66 : vector<6x8x28xf32> to vector<48x28xf32>
    %c4_72 = arith.constant 4 : index
    %c0_73 = arith.constant 0 : index
    %c0_74 = arith.constant 0 : index
    %68 = vector.load %arg2[%c4_72, %c0_73, %c0_74] : memref<5x28x192xf32, #tpu.memory_space<vmem>>, vector<1x28x192xf32>
    %69 = vector.shape_cast %68 : vector<1x28x192xf32> to vector<28x192xf32>
    %cst_75 = arith.constant dense<0.000000e+00> : vector<48x192xf32>
    %70 = tpu.matmul %67, %69, %cst_75 {dimension_numbers = #tpu.dot_dimension_numbers<[1], [0], [0], [1], [0, 0, 1, 1], [], []>} : vector<48x28xf32>, vector<28x192xf32>, vector<48x192xf32> -> vector<48x192xf32>
    %71 = arith.addf %64, %70 : vector<48x192xf32>
    %72 = vector.extract_strided_slice %71 {offsets = [0, 0], sizes = [48, 96], strides = [1, 1]} : vector<48x192xf32> to vector<48x96xf32>
    %73 = vector.extract_strided_slice %71 {offsets = [0, 96], sizes = [48, 96], strides = [1, 1]} : vector<48x192xf32> to vector<48x96xf32>
    %74 = arith.maximumf %72, %73 : vector<48x96xf32>
    %75 = arith.maximumf %37, %74 : vector<48x96xf32>
    %76 = vector.broadcast %0 : vector<1x96xf32> to vector<48x96xf32>
    %77 = arith.addf %75, %76 : vector<48x96xf32>
    %cst_76 = arith.constant 0.000000e+00 : f32
    %78 = vector.broadcast %cst_76 : f32 to vector<48x96xf32>
    %79 = arith.maximumf %77, %78 : vector<48x96xf32>
    %c2_77 = arith.constant 2 : index
    %c0_78 = arith.constant 0 : index
    %c0_79 = arith.constant 0 : index
    %c0_80 = arith.constant 0 : index
    %80 = vector.load %arg1[%c2_77, %c0_78, %c0_79, %c0_80] : memref<4x7x8x28xf32, #tpu.memory_space<vmem>>, vector<1x6x8x28xf32>
    %81 = vector.shape_cast %80 : vector<1x6x8x28xf32> to vector<6x8x28xf32>
    %82 = vector.shape_cast %81 : vector<6x8x28xf32> to vector<48x28xf32>
    %c0_81 = arith.constant 0 : index
    %c0_82 = arith.constant 0 : index
    %c0_83 = arith.constant 0 : index
    %83 = vector.load %arg2[%c0_81, %c0_82, %c0_83] : memref<5x28x192xf32, #tpu.memory_space<vmem>>, vector<1x28x192xf32>
    %84 = vector.shape_cast %83 : vector<1x28x192xf32> to vector<28x192xf32>
    %cst_84 = arith.constant dense<0.000000e+00> : vector<48x192xf32>
    %85 = tpu.matmul %82, %84, %cst_84 {dimension_numbers = #tpu.dot_dimension_numbers<[1], [0], [0], [1], [0, 0, 1, 1], [], []>} : vector<48x28xf32>, vector<28x192xf32>, vector<48x192xf32> -> vector<48x192xf32>
    %c3_85 = arith.constant 3 : index
    %c0_86 = arith.constant 0 : index
    %c0_87 = arith.constant 0 : index
    %c0_88 = arith.constant 0 : index
    %86 = vector.load %arg1[%c3_85, %c0_86, %c0_87, %c0_88] : memref<4x7x8x28xf32, #tpu.memory_space<vmem>>, vector<1x6x8x28xf32>
    %87 = vector.shape_cast %86 : vector<1x6x8x28xf32> to vector<6x8x28xf32>
    %88 = vector.shape_cast %87 : vector<6x8x28xf32> to vector<48x28xf32>
    %c1_89 = arith.constant 1 : index
    %c0_90 = arith.constant 0 : index
    %c0_91 = arith.constant 0 : index
    %89 = vector.load %arg2[%c1_89, %c0_90, %c0_91] : memref<5x28x192xf32, #tpu.memory_space<vmem>>, vector<1x28x192xf32>
    %90 = vector.shape_cast %89 : vector<1x28x192xf32> to vector<28x192xf32>
    %cst_92 = arith.constant dense<0.000000e+00> : vector<48x192xf32>
    %91 = tpu.matmul %88, %90, %cst_92 {dimension_numbers = #tpu.dot_dimension_numbers<[1], [0], [0], [1], [0, 0, 1, 1], [], []>} : vector<48x28xf32>, vector<28x192xf32>, vector<48x192xf32> -> vector<48x192xf32>
    %92 = arith.addf %85, %91 : vector<48x192xf32>
    %c0_93 = arith.constant 0 : index
    %c1_94 = arith.constant 1 : index
    %c0_95 = arith.constant 0 : index
    %c0_96 = arith.constant 0 : index
    %93 = vector.load %arg1[%c0_93, %c1_94, %c0_95, %c0_96] : memref<4x7x8x28xf32, #tpu.memory_space<vmem>>, vector<1x6x8x28xf32>
    %94 = vector.shape_cast %93 : vector<1x6x8x28xf32> to vector<6x8x28xf32>
    %95 = vector.shape_cast %94 : vector<6x8x28xf32> to vector<48x28xf32>
    %c2_97 = arith.constant 2 : index
    %c0_98 = arith.constant 0 : index
    %c0_99 = arith.constant 0 : index
    %96 = vector.load %arg2[%c2_97, %c0_98, %c0_99] : memref<5x28x192xf32, #tpu.memory_space<vmem>>, vector<1x28x192xf32>
    %97 = vector.shape_cast %96 : vector<1x28x192xf32> to vector<28x192xf32>
    %cst_100 = arith.constant dense<0.000000e+00> : vector<48x192xf32>
    %98 = tpu.matmul %95, %97, %cst_100 {dimension_numbers = #tpu.dot_dimension_numbers<[1], [0], [0], [1], [0, 0, 1, 1], [], []>} : vector<48x28xf32>, vector<28x192xf32>, vector<48x192xf32> -> vector<48x192xf32>
    %99 = arith.addf %92, %98 : vector<48x192xf32>
    %c1_101 = arith.constant 1 : index
    %c1_102 = arith.constant 1 : index
    %c0_103 = arith.constant 0 : index
    %c0_104 = arith.constant 0 : index
    %100 = vector.load %arg1[%c1_101, %c1_102, %c0_103, %c0_104] : memref<4x7x8x28xf32, #tpu.memory_space<vmem>>, vector<1x6x8x28xf32>
    %101 = vector.shape_cast %100 : vector<1x6x8x28xf32> to vector<6x8x28xf32>
    %102 = vector.shape_cast %101 : vector<6x8x28xf32> to vector<48x28xf32>
    %c3_105 = arith.constant 3 : index
    %c0_106 = arith.constant 0 : index
    %c0_107 = arith.constant 0 : index
    %103 = vector.load %arg2[%c3_105, %c0_106, %c0_107] : memref<5x28x192xf32, #tpu.memory_space<vmem>>, vector<1x28x192xf32>
    %104 = vector.shape_cast %103 : vector<1x28x192xf32> to vector<28x192xf32>
    %cst_108 = arith.constant dense<0.000000e+00> : vector<48x192xf32>
    %105 = tpu.matmul %102, %104, %cst_108 {dimension_numbers = #tpu.dot_dimension_numbers<[1], [0], [0], [1], [0, 0, 1, 1], [], []>} : vector<48x28xf32>, vector<28x192xf32>, vector<48x192xf32> -> vector<48x192xf32>
    %106 = arith.addf %99, %105 : vector<48x192xf32>
    %c2_109 = arith.constant 2 : index
    %c1_110 = arith.constant 1 : index
    %c0_111 = arith.constant 0 : index
    %c0_112 = arith.constant 0 : index
    %107 = vector.load %arg1[%c2_109, %c1_110, %c0_111, %c0_112] : memref<4x7x8x28xf32, #tpu.memory_space<vmem>>, vector<1x6x8x28xf32>
    %108 = vector.shape_cast %107 : vector<1x6x8x28xf32> to vector<6x8x28xf32>
    %109 = vector.shape_cast %108 : vector<6x8x28xf32> to vector<48x28xf32>
    %c4_113 = arith.constant 4 : index
    %c0_114 = arith.constant 0 : index
    %c0_115 = arith.constant 0 : index
    %110 = vector.load %arg2[%c4_113, %c0_114, %c0_115] : memref<5x28x192xf32, #tpu.memory_space<vmem>>, vector<1x28x192xf32>
    %111 = vector.shape_cast %110 : vector<1x28x192xf32> to vector<28x192xf32>
    %cst_116 = arith.constant dense<0.000000e+00> : vector<48x192xf32>
    %112 = tpu.matmul %109, %111, %cst_116 {dimension_numbers = #tpu.dot_dimension_numbers<[1], [0], [0], [1], [0, 0, 1, 1], [], []>} : vector<48x28xf32>, vector<28x192xf32>, vector<48x192xf32> -> vector<48x192xf32>
    %113 = arith.addf %106, %112 : vector<48x192xf32>
    %114 = vector.extract_strided_slice %113 {offsets = [0, 0], sizes = [48, 96], strides = [1, 1]} : vector<48x192xf32> to vector<48x96xf32>
    %115 = vector.extract_strided_slice %113 {offsets = [0, 96], sizes = [48, 96], strides = [1, 1]} : vector<48x192xf32> to vector<48x96xf32>
    %116 = arith.maximumf %114, %115 : vector<48x96xf32>
    %c3_117 = arith.constant 3 : index
    %c0_118 = arith.constant 0 : index
    %c0_119 = arith.constant 0 : index
    %c0_120 = arith.constant 0 : index
    %117 = vector.load %arg1[%c3_117, %c0_118, %c0_119, %c0_120] : memref<4x7x8x28xf32, #tpu.memory_space<vmem>>, vector<1x6x8x28xf32>
    %118 = vector.shape_cast %117 : vector<1x6x8x28xf32> to vector<6x8x28xf32>
    %119 = vector.shape_cast %118 : vector<6x8x28xf32> to vector<48x28xf32>
    %c0_121 = arith.constant 0 : index
    %c0_122 = arith.constant 0 : index
    %c0_123 = arith.constant 0 : index
    %120 = vector.load %arg2[%c0_121, %c0_122, %c0_123] : memref<5x28x192xf32, #tpu.memory_space<vmem>>, vector<1x28x192xf32>
    %121 = vector.shape_cast %120 : vector<1x28x192xf32> to vector<28x192xf32>
    %cst_124 = arith.constant dense<0.000000e+00> : vector<48x192xf32>
    %122 = tpu.matmul %119, %121, %cst_124 {dimension_numbers = #tpu.dot_dimension_numbers<[1], [0], [0], [1], [0, 0, 1, 1], [], []>} : vector<48x28xf32>, vector<28x192xf32>, vector<48x192xf32> -> vector<48x192xf32>
    %c0_125 = arith.constant 0 : index
    %c1_126 = arith.constant 1 : index
    %c0_127 = arith.constant 0 : index
    %c0_128 = arith.constant 0 : index
    %123 = vector.load %arg1[%c0_125, %c1_126, %c0_127, %c0_128] : memref<4x7x8x28xf32, #tpu.memory_space<vmem>>, vector<1x6x8x28xf32>
    %124 = vector.shape_cast %123 : vector<1x6x8x28xf32> to vector<6x8x28xf32>
    %125 = vector.shape_cast %124 : vector<6x8x28xf32> to vector<48x28xf32>
    %c1_129 = arith.constant 1 : index
    %c0_130 = arith.constant 0 : index
    %c0_131 = arith.constant 0 : index
    %126 = vector.load %arg2[%c1_129, %c0_130, %c0_131] : memref<5x28x192xf32, #tpu.memory_space<vmem>>, vector<1x28x192xf32>
    %127 = vector.shape_cast %126 : vector<1x28x192xf32> to vector<28x192xf32>
    %cst_132 = arith.constant dense<0.000000e+00> : vector<48x192xf32>
    %128 = tpu.matmul %125, %127, %cst_132 {dimension_numbers = #tpu.dot_dimension_numbers<[1], [0], [0], [1], [0, 0, 1, 1], [], []>} : vector<48x28xf32>, vector<28x192xf32>, vector<48x192xf32> -> vector<48x192xf32>
    %129 = arith.addf %122, %128 : vector<48x192xf32>
    %c1_133 = arith.constant 1 : index
    %c1_134 = arith.constant 1 : index
    %c0_135 = arith.constant 0 : index
    %c0_136 = arith.constant 0 : index
    %130 = vector.load %arg1[%c1_133, %c1_134, %c0_135, %c0_136] : memref<4x7x8x28xf32, #tpu.memory_space<vmem>>, vector<1x6x8x28xf32>
    %131 = vector.shape_cast %130 : vector<1x6x8x28xf32> to vector<6x8x28xf32>
    %132 = vector.shape_cast %131 : vector<6x8x28xf32> to vector<48x28xf32>
    %c2_137 = arith.constant 2 : index
    %c0_138 = arith.constant 0 : index
    %c0_139 = arith.constant 0 : index
    %133 = vector.load %arg2[%c2_137, %c0_138, %c0_139] : memref<5x28x192xf32, #tpu.memory_space<vmem>>, vector<1x28x192xf32>
    %134 = vector.shape_cast %133 : vector<1x28x192xf32> to vector<28x192xf32>
    %cst_140 = arith.constant dense<0.000000e+00> : vector<48x192xf32>
    %135 = tpu.matmul %132, %134, %cst_140 {dimension_numbers = #tpu.dot_dimension_numbers<[1], [0], [0], [1], [0, 0, 1, 1], [], []>} : vector<48x28xf32>, vector<28x192xf32>, vector<48x192xf32> -> vector<48x192xf32>
    %136 = arith.addf %129, %135 : vector<48x192xf32>
    %c2_141 = arith.constant 2 : index
    %c1_142 = arith.constant 1 : index
    %c0_143 = arith.constant 0 : index
    %c0_144 = arith.constant 0 : index
    %137 = vector.load %arg1[%c2_141, %c1_142, %c0_143, %c0_144] : memref<4x7x8x28xf32, #tpu.memory_space<vmem>>, vector<1x6x8x28xf32>
    %138 = vector.shape_cast %137 : vector<1x6x8x28xf32> to vector<6x8x28xf32>
    %139 = vector.shape_cast %138 : vector<6x8x28xf32> to vector<48x28xf32>
    %c3_145 = arith.constant 3 : index
    %c0_146 = arith.constant 0 : index
    %c0_147 = arith.constant 0 : index
    %140 = vector.load %arg2[%c3_145, %c0_146, %c0_147] : memref<5x28x192xf32, #tpu.memory_space<vmem>>, vector<1x28x192xf32>
    %141 = vector.shape_cast %140 : vector<1x28x192xf32> to vector<28x192xf32>
    %cst_148 = arith.constant dense<0.000000e+00> : vector<48x192xf32>
    %142 = tpu.matmul %139, %141, %cst_148 {dimension_numbers = #tpu.dot_dimension_numbers<[1], [0], [0], [1], [0, 0, 1, 1], [], []>} : vector<48x28xf32>, vector<28x192xf32>, vector<48x192xf32> -> vector<48x192xf32>
    %143 = arith.addf %136, %142 : vector<48x192xf32>
    %c3_149 = arith.constant 3 : index
    %c1_150 = arith.constant 1 : index
    %c0_151 = arith.constant 0 : index
    %c0_152 = arith.constant 0 : index
    %144 = vector.load %arg1[%c3_149, %c1_150, %c0_151, %c0_152] : memref<4x7x8x28xf32, #tpu.memory_space<vmem>>, vector<1x6x8x28xf32>
    %145 = vector.shape_cast %144 : vector<1x6x8x28xf32> to vector<6x8x28xf32>
    %146 = vector.shape_cast %145 : vector<6x8x28xf32> to vector<48x28xf32>
    %c4_153 = arith.constant 4 : index
    %c0_154 = arith.constant 0 : index
    %c0_155 = arith.constant 0 : index
    %147 = vector.load %arg2[%c4_153, %c0_154, %c0_155] : memref<5x28x192xf32, #tpu.memory_space<vmem>>, vector<1x28x192xf32>
    %148 = vector.shape_cast %147 : vector<1x28x192xf32> to vector<28x192xf32>
    %cst_156 = arith.constant dense<0.000000e+00> : vector<48x192xf32>
    %149 = tpu.matmul %146, %148, %cst_156 {dimension_numbers = #tpu.dot_dimension_numbers<[1], [0], [0], [1], [0, 0, 1, 1], [], []>} : vector<48x28xf32>, vector<28x192xf32>, vector<48x192xf32> -> vector<48x192xf32>
    %150 = arith.addf %143, %149 : vector<48x192xf32>
    %151 = vector.extract_strided_slice %150 {offsets = [0, 0], sizes = [48, 96], strides = [1, 1]} : vector<48x192xf32> to vector<48x96xf32>
    %152 = vector.extract_strided_slice %150 {offsets = [0, 96], sizes = [48, 96], strides = [1, 1]} : vector<48x192xf32> to vector<48x96xf32>
    %153 = arith.maximumf %151, %152 : vector<48x96xf32>
    %154 = arith.maximumf %116, %153 : vector<48x96xf32>
    %155 = vector.broadcast %0 : vector<1x96xf32> to vector<48x96xf32>
    %156 = arith.addf %154, %155 : vector<48x96xf32>
    %cst_157 = arith.constant 0.000000e+00 : f32
    %157 = vector.broadcast %cst_157 : f32 to vector<48x96xf32>
    %158 = arith.maximumf %156, %157 : vector<48x96xf32>
    %159 = vector.extract_strided_slice %79 {offsets = [0, 0], sizes = [32, 96], strides = [1, 1]} : vector<48x96xf32> to vector<32x96xf32>
    %c0_158 = arith.constant 0 : index
    %c0_159 = arith.constant 0 : index
    %c0_160 = arith.constant 0 : index
    %160 = vector.load %arg4[%c0_158, %c0_159, %c0_160] : memref<6x96x256xf32, #tpu.memory_space<vmem>>, vector<1x96x256xf32>
    %161 = vector.shape_cast %160 : vector<1x96x256xf32> to vector<96x256xf32>
    %cst_161 = arith.constant dense<0.000000e+00> : vector<32x256xf32>
    %162 = tpu.matmul %159, %161, %cst_161 {dimension_numbers = #tpu.dot_dimension_numbers<[1], [0], [0], [1], [0, 0, 1, 1], [], []>} : vector<32x96xf32>, vector<96x256xf32>, vector<32x256xf32> -> vector<32x256xf32>
    %163 = vector.extract_strided_slice %158 {offsets = [0, 0], sizes = [32, 96], strides = [1, 1]} : vector<48x96xf32> to vector<32x96xf32>
    %c1_162 = arith.constant 1 : index
    %c0_163 = arith.constant 0 : index
    %c0_164 = arith.constant 0 : index
    %164 = vector.load %arg4[%c1_162, %c0_163, %c0_164] : memref<6x96x256xf32, #tpu.memory_space<vmem>>, vector<1x96x256xf32>
    %165 = vector.shape_cast %164 : vector<1x96x256xf32> to vector<96x256xf32>
    %cst_165 = arith.constant dense<0.000000e+00> : vector<32x256xf32>
    %166 = tpu.matmul %163, %165, %cst_165 {dimension_numbers = #tpu.dot_dimension_numbers<[1], [0], [0], [1], [0, 0, 1, 1], [], []>} : vector<32x96xf32>, vector<96x256xf32>, vector<32x256xf32> -> vector<32x256xf32>
    %167 = arith.addf %162, %166 : vector<32x256xf32>
    %168 = vector.extract_strided_slice %79 {offsets = [8, 0], sizes = [32, 96], strides = [1, 1]} : vector<48x96xf32> to vector<32x96xf32>
    %c2_166 = arith.constant 2 : index
    %c0_167 = arith.constant 0 : index
    %c0_168 = arith.constant 0 : index
    %169 = vector.load %arg4[%c2_166, %c0_167, %c0_168] : memref<6x96x256xf32, #tpu.memory_space<vmem>>, vector<1x96x256xf32>
    %170 = vector.shape_cast %169 : vector<1x96x256xf32> to vector<96x256xf32>
    %cst_169 = arith.constant dense<0.000000e+00> : vector<32x256xf32>
    %171 = tpu.matmul %168, %170, %cst_169 {dimension_numbers = #tpu.dot_dimension_numbers<[1], [0], [0], [1], [0, 0, 1, 1], [], []>} : vector<32x96xf32>, vector<96x256xf32>, vector<32x256xf32> -> vector<32x256xf32>
    %172 = arith.addf %167, %171 : vector<32x256xf32>
    %173 = vector.extract_strided_slice %158 {offsets = [8, 0], sizes = [32, 96], strides = [1, 1]} : vector<48x96xf32> to vector<32x96xf32>
    %c3_170 = arith.constant 3 : index
    %c0_171 = arith.constant 0 : index
    %c0_172 = arith.constant 0 : index
    %174 = vector.load %arg4[%c3_170, %c0_171, %c0_172] : memref<6x96x256xf32, #tpu.memory_space<vmem>>, vector<1x96x256xf32>
    %175 = vector.shape_cast %174 : vector<1x96x256xf32> to vector<96x256xf32>
    %cst_173 = arith.constant dense<0.000000e+00> : vector<32x256xf32>
    %176 = tpu.matmul %173, %175, %cst_173 {dimension_numbers = #tpu.dot_dimension_numbers<[1], [0], [0], [1], [0, 0, 1, 1], [], []>} : vector<32x96xf32>, vector<96x256xf32>, vector<32x256xf32> -> vector<32x256xf32>
    %177 = arith.addf %172, %176 : vector<32x256xf32>
    %178 = vector.extract_strided_slice %79 {offsets = [16, 0], sizes = [32, 96], strides = [1, 1]} : vector<48x96xf32> to vector<32x96xf32>
    %c4_174 = arith.constant 4 : index
    %c0_175 = arith.constant 0 : index
    %c0_176 = arith.constant 0 : index
    %179 = vector.load %arg4[%c4_174, %c0_175, %c0_176] : memref<6x96x256xf32, #tpu.memory_space<vmem>>, vector<1x96x256xf32>
    %180 = vector.shape_cast %179 : vector<1x96x256xf32> to vector<96x256xf32>
    %cst_177 = arith.constant dense<0.000000e+00> : vector<32x256xf32>
    %181 = tpu.matmul %178, %180, %cst_177 {dimension_numbers = #tpu.dot_dimension_numbers<[1], [0], [0], [1], [0, 0, 1, 1], [], []>} : vector<32x96xf32>, vector<96x256xf32>, vector<32x256xf32> -> vector<32x256xf32>
    %182 = arith.addf %177, %181 : vector<32x256xf32>
    %183 = vector.extract_strided_slice %158 {offsets = [16, 0], sizes = [32, 96], strides = [1, 1]} : vector<48x96xf32> to vector<32x96xf32>
    %c5 = arith.constant 5 : index
    %c0_178 = arith.constant 0 : index
    %c0_179 = arith.constant 0 : index
    %184 = vector.load %arg4[%c5, %c0_178, %c0_179] : memref<6x96x256xf32, #tpu.memory_space<vmem>>, vector<1x96x256xf32>
    %185 = vector.shape_cast %184 : vector<1x96x256xf32> to vector<96x256xf32>
    %cst_180 = arith.constant dense<0.000000e+00> : vector<32x256xf32>
    %186 = tpu.matmul %183, %185, %cst_180 {dimension_numbers = #tpu.dot_dimension_numbers<[1], [0], [0], [1], [0, 0, 1, 1], [], []>} : vector<32x96xf32>, vector<96x256xf32>, vector<32x256xf32> -> vector<32x256xf32>
    %187 = arith.addf %182, %186 : vector<32x256xf32>
    %188 = vector.extract_strided_slice %187 {offsets = [0, 0], sizes = [32, 64], strides = [1, 1]} : vector<32x256xf32> to vector<32x64xf32>
    %189 = vector.extract_strided_slice %187 {offsets = [0, 64], sizes = [32, 64], strides = [1, 1]} : vector<32x256xf32> to vector<32x64xf32>
    %190 = arith.maximumf %188, %189 : vector<32x64xf32>
    %191 = vector.extract_strided_slice %187 {offsets = [0, 128], sizes = [32, 64], strides = [1, 1]} : vector<32x256xf32> to vector<32x64xf32>
    %192 = vector.extract_strided_slice %187 {offsets = [0, 192], sizes = [32, 64], strides = [1, 1]} : vector<32x256xf32> to vector<32x64xf32>
    %193 = arith.maximumf %191, %192 : vector<32x64xf32>
    %194 = arith.maximumf %190, %193 : vector<32x64xf32>
    %c0_181 = arith.constant 0 : index
    %c0_182 = arith.constant 0 : index
    %195 = vector.load %arg5[%c0_181, %c0_182] : memref<1x64xf32, #tpu.memory_space<vmem>>, vector<1x64xf32>
    %196 = vector.broadcast %195 : vector<1x64xf32> to vector<32x64xf32>
    %197 = arith.addf %194, %196 : vector<32x64xf32>
    %cst_183 = arith.constant 0.000000e+00 : f32
    %198 = vector.broadcast %cst_183 : f32 to vector<32x64xf32>
    %199 = arith.maximumf %197, %198 : vector<32x64xf32>
    %200 = vector.extract_strided_slice %199 {offsets = [0, 0], sizes = [8, 64], strides = [1, 1]} : vector<32x64xf32> to vector<8x64xf32>
    %c0_184 = arith.constant 0 : index
    %c0_185 = arith.constant 0 : index
    %c0_186 = arith.constant 0 : index
    %201 = vector.load %arg6[%c0_184, %c0_185, %c0_186] : memref<4x64x128xf32, #tpu.memory_space<vmem>>, vector<1x64x128xf32>
    %202 = vector.shape_cast %201 : vector<1x64x128xf32> to vector<64x128xf32>
    %cst_187 = arith.constant dense<0.000000e+00> : vector<8x128xf32>
    %203 = tpu.matmul %200, %202, %cst_187 {dimension_numbers = #tpu.dot_dimension_numbers<[1], [0], [0], [1], [0, 0, 1, 1], [], []>} : vector<8x64xf32>, vector<64x128xf32>, vector<8x128xf32> -> vector<8x128xf32>
    %204 = vector.extract_strided_slice %199 {offsets = [8, 0], sizes = [8, 64], strides = [1, 1]} : vector<32x64xf32> to vector<8x64xf32>
    %c1_188 = arith.constant 1 : index
    %c0_189 = arith.constant 0 : index
    %c0_190 = arith.constant 0 : index
    %205 = vector.load %arg6[%c1_188, %c0_189, %c0_190] : memref<4x64x128xf32, #tpu.memory_space<vmem>>, vector<1x64x128xf32>
    %206 = vector.shape_cast %205 : vector<1x64x128xf32> to vector<64x128xf32>
    %cst_191 = arith.constant dense<0.000000e+00> : vector<8x128xf32>
    %207 = tpu.matmul %204, %206, %cst_191 {dimension_numbers = #tpu.dot_dimension_numbers<[1], [0], [0], [1], [0, 0, 1, 1], [], []>} : vector<8x64xf32>, vector<64x128xf32>, vector<8x128xf32> -> vector<8x128xf32>
    %208 = arith.addf %203, %207 : vector<8x128xf32>
    %209 = vector.extract_strided_slice %199 {offsets = [16, 0], sizes = [8, 64], strides = [1, 1]} : vector<32x64xf32> to vector<8x64xf32>
    %c2_192 = arith.constant 2 : index
    %c0_193 = arith.constant 0 : index
    %c0_194 = arith.constant 0 : index
    %210 = vector.load %arg6[%c2_192, %c0_193, %c0_194] : memref<4x64x128xf32, #tpu.memory_space<vmem>>, vector<1x64x128xf32>
    %211 = vector.shape_cast %210 : vector<1x64x128xf32> to vector<64x128xf32>
    %cst_195 = arith.constant dense<0.000000e+00> : vector<8x128xf32>
    %212 = tpu.matmul %209, %211, %cst_195 {dimension_numbers = #tpu.dot_dimension_numbers<[1], [0], [0], [1], [0, 0, 1, 1], [], []>} : vector<8x64xf32>, vector<64x128xf32>, vector<8x128xf32> -> vector<8x128xf32>
    %213 = arith.addf %208, %212 : vector<8x128xf32>
    %214 = vector.extract_strided_slice %199 {offsets = [24, 0], sizes = [8, 64], strides = [1, 1]} : vector<32x64xf32> to vector<8x64xf32>
    %c3_196 = arith.constant 3 : index
    %c0_197 = arith.constant 0 : index
    %c0_198 = arith.constant 0 : index
    %215 = vector.load %arg6[%c3_196, %c0_197, %c0_198] : memref<4x64x128xf32, #tpu.memory_space<vmem>>, vector<1x64x128xf32>
    %216 = vector.shape_cast %215 : vector<1x64x128xf32> to vector<64x128xf32>
    %cst_199 = arith.constant dense<0.000000e+00> : vector<8x128xf32>
    %217 = tpu.matmul %214, %216, %cst_199 {dimension_numbers = #tpu.dot_dimension_numbers<[1], [0], [0], [1], [0, 0, 1, 1], [], []>} : vector<8x64xf32>, vector<64x128xf32>, vector<8x128xf32> -> vector<8x128xf32>
    %218 = arith.addf %213, %217 : vector<8x128xf32>
    %c0_200 = arith.constant 0 : index
    %c0_201 = arith.constant 0 : index
    %219 = vector.load %arg7[%c0_200, %c0_201] : memref<1x128xf32, #tpu.memory_space<vmem>>, vector<1x128xf32>
    %220 = vector.broadcast %219 : vector<1x128xf32> to vector<8x128xf32>
    %221 = arith.mulf %218, %220 : vector<8x128xf32>
    %c0_202 = arith.constant 0 : index
    %c0_203 = arith.constant 0 : index
    %222 = vector.load %arg8[%c0_202, %c0_203] : memref<1x128xf32, #tpu.memory_space<vmem>>, vector<1x128xf32>
    %223 = vector.broadcast %222 : vector<1x128xf32> to vector<8x128xf32>
    %224 = arith.addf %221, %223 : vector<8x128xf32>
    %cst_204 = arith.constant 0.000000e+00 : f32
    %225 = vector.broadcast %cst_204 : f32 to vector<8x128xf32>
    %226 = arith.maximumf %224, %225 : vector<8x128xf32>
    %c0_205 = arith.constant 0 : index
    %c0_206 = arith.constant 0 : index
    %227 = vector.load %arg9[%c0_205, %c0_206] : memref<128x64xf32, #tpu.memory_space<vmem>>, vector<128x64xf32>
    %cst_207 = arith.constant dense<0.000000e+00> : vector<8x64xf32>
    %228 = tpu.matmul %226, %227, %cst_207 {dimension_numbers = #tpu.dot_dimension_numbers<[1], [0], [0], [1], [0, 0, 1, 1], [], []>} : vector<8x128xf32>, vector<128x64xf32>, vector<8x64xf32> -> vector<8x64xf32>
    %c0_208 = arith.constant 0 : index
    %c0_209 = arith.constant 0 : index
    %229 = vector.load %arg10[%c0_208, %c0_209] : memref<1x64xf32, #tpu.memory_space<vmem>>, vector<1x64xf32>
    %230 = vector.broadcast %229 : vector<1x64xf32> to vector<8x64xf32>
    %231 = arith.mulf %228, %230 : vector<8x64xf32>
    %c0_210 = arith.constant 0 : index
    %c0_211 = arith.constant 0 : index
    %232 = vector.load %arg11[%c0_210, %c0_211] : memref<1x64xf32, #tpu.memory_space<vmem>>, vector<1x64xf32>
    %233 = vector.broadcast %232 : vector<1x64xf32> to vector<8x64xf32>
    %234 = arith.addf %231, %233 : vector<8x64xf32>
    %cst_212 = arith.constant 0.000000e+00 : f32
    %235 = vector.broadcast %cst_212 : f32 to vector<8x64xf32>
    %236 = arith.maximumf %234, %235 : vector<8x64xf32>
    %c0_213 = arith.constant 0 : index
    %c0_214 = arith.constant 0 : index
    %237 = vector.load %arg12[%c0_213, %c0_214] : memref<64x10xf32, #tpu.memory_space<vmem>>, vector<64x10xf32>
    %cst_215 = arith.constant dense<0.000000e+00> : vector<8x10xf32>
    %238 = tpu.matmul %236, %237, %cst_215 {dimension_numbers = #tpu.dot_dimension_numbers<[1], [0], [0], [1], [0, 0, 1, 1], [], []>} : vector<8x64xf32>, vector<64x10xf32>, vector<8x10xf32> -> vector<8x10xf32>
    %c0_216 = arith.constant 0 : index
    %c0_217 = arith.constant 0 : index
    %239 = vector.load %arg13[%c0_216, %c0_217] : memref<1x10xf32, #tpu.memory_space<vmem>>, vector<1x10xf32>
    %240 = vector.broadcast %239 : vector<1x10xf32> to vector<8x10xf32>
    %241 = arith.addf %238, %240 : vector<8x10xf32>
    %c0_218 = arith.constant 0 : index
    %c0_219 = arith.constant 0 : index
    %242 = vector.load %arg14[%c0_218, %c0_219] : memref<8x10xf32, #tpu.memory_space<vmem>>, vector<8x10xf32>
    tpu.vector_store %arg14[%c0_218, %c0_219], %241 {strides = array<i32>} : memref<8x10xf32, #tpu.memory_space<vmem>>, vector<8x10xf32>,
    return
  }
  func.func @transform_0(%arg0: i32) -> (i32, i32, i32, i32) {
    %c0_i32 = arith.constant 0 : i32
    %c0_i32_0 = arith.constant 0 : i32
    %c0_i32_1 = arith.constant 0 : i32
    %c0_i32_2 = arith.constant 0 : i32
    return %c0_i32, %c0_i32_0, %arg0, %c0_i32_1 : i32, i32, i32, i32
  }
  func.func @transform_1(%arg0: i32) -> (i32, i32, i32) {
    %c0_i32 = arith.constant 0 : i32
    %c0_i32_0 = arith.constant 0 : i32
    %c0_i32_1 = arith.constant 0 : i32
    %c0_i32_2 = arith.constant 0 : i32
    return %c0_i32, %c0_i32_0, %c0_i32_1 : i32, i32, i32
  }
  func.func @transform_2(%arg0: i32) -> (i32, i32) {
    %c0_i32 = arith.constant 0 : i32
    %c0_i32_0 = arith.constant 0 : i32
    %c0_i32_1 = arith.constant 0 : i32
    return %c0_i32, %c0_i32_0 : i32, i32
  }
  func.func @transform_3(%arg0: i32) -> (i32, i32, i32) {
    %c0_i32 = arith.constant 0 : i32
    %c0_i32_0 = arith.constant 0 : i32
    %c0_i32_1 = arith.constant 0 : i32
    %c0_i32_2 = arith.constant 0 : i32
    return %c0_i32, %c0_i32_0, %c0_i32_1 : i32, i32, i32
  }
  func.func @transform_4(%arg0: i32) -> (i32, i32) {
    %c0_i32 = arith.constant 0 : i32
    %c0_i32_0 = arith.constant 0 : i32
    %c0_i32_1 = arith.constant 0 : i32
    return %c0_i32, %c0_i32_0 : i32, i32
  }
  func.func @transform_5(%arg0: i32) -> (i32, i32, i32) {
    %c0_i32 = arith.constant 0 : i32
    %c0_i32_0 = arith.constant 0 : i32
    %c0_i32_1 = arith.constant 0 : i32
    %c0_i32_2 = arith.constant 0 : i32
    return %c0_i32, %c0_i32_0, %c0_i32_1 : i32, i32, i32
  }
  func.func @transform_6(%arg0: i32) -> (i32, i32) {
    %c0_i32 = arith.constant 0 : i32
    %c0_i32_0 = arith.constant 0 : i32
    %c0_i32_1 = arith.constant 0 : i32
    return %c0_i32, %c0_i32_0 : i32, i32
  }
  func.func @transform_7(%arg0: i32) -> (i32, i32) {
    %c0_i32 = arith.constant 0 : i32
    %c0_i32_0 = arith.constant 0 : i32
    %c0_i32_1 = arith.constant 0 : i32
    return %c0_i32, %c0_i32_0 : i32, i32
  }
  func.func @transform_8(%arg0: i32) -> (i32, i32) {
    %c0_i32 = arith.constant 0 : i32
    %c0_i32_0 = arith.constant 0 : i32
    %c0_i32_1 = arith.constant 0 : i32
    return %c0_i32, %c0_i32_0 : i32, i32
  }
  func.func @transform_9(%arg0: i32) -> (i32, i32) {
    %c0_i32 = arith.constant 0 : i32
    %c0_i32_0 = arith.constant 0 : i32
    %c0_i32_1 = arith.constant 0 : i32
    return %c0_i32, %c0_i32_0 : i32, i32
  }
  func.func @transform_10(%arg0: i32) -> (i32, i32) {
    %c0_i32 = arith.constant 0 : i32
    %c0_i32_0 = arith.constant 0 : i32
    %c0_i32_1 = arith.constant 0 : i32
    return %c0_i32, %c0_i32_0 : i32, i32
  }
  func.func @transform_11(%arg0: i32) -> (i32, i32) {
    %c0_i32 = arith.constant 0 : i32
    %c0_i32_0 = arith.constant 0 : i32
    %c0_i32_1 = arith.constant 0 : i32
    return %c0_i32, %c0_i32_0 : i32, i32
  }
  func.func @transform_12(%arg0: i32) -> (i32, i32) {
    %c0_i32 = arith.constant 0 : i32
    %c0_i32_0 = arith.constant 0 : i32
    %c0_i32_1 = arith.constant 0 : i32
    return %c0_i32, %c0_i32_0 : i32, i32
  }
  func.func @transform_13(%arg0: i32) -> (i32, i32) {
    %c0_i32 = arith.constant 0 : i32
    %c0_i32_0 = arith.constant 0 : i32
    return %arg0, %c0_i32 : i32, i32
  }
}

</mosaic_0001>

<bundles_post_ra>
// kernel: classifier_forward.1
= control target key start
LH: loop header
LB: loop body
LE: loop exit
PB: predicated region body
PF: predicated region fallthrough
CT: control target
= control target key end

     0   :  { %18 = vsyncpa [#allocation3], 0  ;;  %s3487_s28 = smov [#allocation2]   ;;  %s3488_s30 = smov 256   ;;  %s5620_s0 = inlined_call_operand.vmem [shape: f32[4,7,8,28], index: 0, kind: input, shape index: {}]   ;;  %s5621_s1 = inlined_call_operand.vmem [shape: f32[5,28,192], index: 1, kind: input, shape index: {}]   ;;  %s5622_s2 = inlined_call_operand.vmem [shape: f32[1,96], index: 2, kind: input, shape index: {}]   ;;  %s5623_s3 = inlined_call_operand.hbm [shape: f32[6,96,256], index: 3, kind: input, shape index: {}]   ;;  %s5624_s4 = inlined_call_operand.vmem [shape: f32[1,64], index: 4, kind: input, shape index: {}]   ;;  %s5625_s5 = inlined_call_operand.vmem [shape: f32[4,64,128], index: 5, kind: input, shape index: {}]   ;;  %s5626_s6 = inlined_call_operand.vmem [shape: f32[1,128], index: 6, kind: input, shape index: {}]   ;;  %s5627_s7 = inlined_call_operand.vmem [shape: f32[1,128], index: 7, kind: input, shape index: {}]   ;;  %s5628_s8 = inlined_call_operand.vmem [shape: f32[128,64], index: 8, kind: input, shape index: {}]   ;;  %s5629_s9 = inlined_call_operand.vmem [shape: f32[1,64], index: 9, kind: input, shape index: {}]   ;;  %s5630_s10 = inlined_call_operand.vmem [shape: f32[1,64], index: 10, kind: input, shape index: {}]   ;;  %s5631_s11 = inlined_call_operand.vmem [shape: f32[64,10], index: 11, kind: input, shape index: {}]   ;;  %s5632_s12 = inlined_call_operand.vmem [shape: f32[1,10], index: 12, kind: input, shape index: {}]   ;;  %s5633_s13 = inlined_call_operand.vmem [shape: f32[8,10], index: 13, kind: output, shape index: {}]  }
   0x1   :  { %s29_s27 = sshll.u32 %s5623_s3, 4  ;;  %s31_s29 = sshll.u32 %s3487_s28, 4  ;;  %s30_s27 = int_to_ptr.hbm [resolvable:$true] %s29_s27  ;;  %s32_s29 = int_to_ptr.vmem [resolvable:$true] %s31_s29 }
   0x2   :  { %s3489_s14 = smov 16  }
   0x3   :  { %37 = dma.hbm_to_vmem [thread:$0]  %s30_s27, 18432, %s32_s29, [#allocation3], %s3488_s30, %s3488_s30, %s3489_s14  }
   0x4   :  { %3485 = dma.done.wait [#allocation3], 18432  }
   0x5   :  { %3486 = vsyncadd [#allocation3], 4294948864  ;;  %vm110_vm0 = vcmask 1043456   ;;  %v3568_v0 = vld [vmem:[%s5621_s1 + $0x70] sm:$0xf]  ;;  %v3587_v3 = vld [vmem:[%s5621_s1 + $0x60] sm:$0xff] }
   0x6   :  { %5702 = vst [vmem:[#allocation5_spill] sm:$0xff] %v3568_v0  ;;  %v3573_v1 = vld [vmem:[%s5621_s1 + $0x78] sm:$0xf]  ;;  %3002 = vmatpush.msk.msra.mxu0 %vm110_vm0, %v3568_v0  ;;  %3419 = vmatpush.msk.msra.mxu2 %vm110_vm0, %v3568_v0  ;;  %v3592_v4 = vld [vmem:[%s5621_s1 + $0x68] sm:$0xff]  ;;  %v3606_v6 = vld [vmem:[%s5621_s1 + $0x50] sm:$0xff]  ;;  %vm91_vm1 = vcmask 228352  }
   0x7   :  { %v3578_v2 = vld [vmem:[%s5621_s1 + $0x38] sm:$0xf]  ;;  %5704 = vst [vmem:[#allocation7_spill] sm:$0xff] %v3587_v3  ;;  %v3597_v5 = vld [vmem:[%s5621_s1 + $0x28] sm:$0xff]  ;;  %3009 = vmatpush.msk.msra.mxu1 %vm110_vm0, %v3573_v1  ;;  %v3625_v9 = vld [vmem:[%s5621_s1 + $0x40] sm:$0xff]  ;;  %s3490_s3 = smov 32  }
   0x8   :  { %5703 = vst [vmem:[#allocation6_spill] sm:$0xff] %v3578_v2  ;;  %3023 = vmatpush.msk.msra.mxu3 %vm110_vm0, %v3578_v2  ;;  %130 = vmatpush.msra.mxu0 %v3587_v3  ;;  %v3613_v7 = vld [vmem:[%s5621_s1 + $0x58] sm:$0xff]  ;;  %v3632_v10 = vld [vmem:[%s5621_s1 + $0x48] sm:$0xff]  ;;  %v3656_v14 = vld [vmem:[%s5621_s1 + $0x30] sm:$0xf]  ;;  %vm683_vm2 = vcmask 261120  }
   0x9   :  { %5705 = vst [vmem:[#allocation8_spill] sm:$0xff] %v3597_v5  ;;  %3420 = vmatpush.msra.mxu2 %v3587_v3  ;;  %v3618_v8 = vld [vmem:[%s5621_s1 + $0x18] sm:$0xff]  ;;  %165 = vmatpush.msra.mxu1 %v3592_v4  ;;  %v3637_v11 = vld [vmem:[%s5621_s1 + $0x8] sm:$0xff]  ;;  %v61_v15 = vld [vmem:[%s5620_s0] sm:$0xff]  ;;  %vm2185_vm3 = vcmask 785408   ;;  %vm2775_vm4 = vcmask 523264  }
   0xa   :  { %5706 = vst [vmem:[#allocation9_spill] sm:$0xff] %v3606_v6  ;;  %259 = vmatpush.msra.mxu3 %v3597_v5  ;;  %131 = vmatpush.msra.mxu0 %v3606_v6  ;;  %v3644_v12 = vld [vmem:[%s5620_s0 + $0x38] sm:$0xff]  ;;  %v3680_v18 = vld [vmem:[%s5621_s1 + $0x20] sm:$0xff]  ;;  %v3689_v19 = vld [vmem:[%s5621_s1 + $0xa8] sm:$0xff]  ;;  %vm2981_vm5 = vcmask 80896  }
   0xb   :  { %5707 = vst [vmem:[#allocation10_spill] sm:$0xff] %v3618_v8  ;;  %3421 = vmatpush.msra.mxu2 %v3606_v6  ;;  %166 = vmatpush.msra.mxu1 %v3613_v7  ;;  %v3649_v13 = vld [vmem:[%s5620_s0 + $0x58] sm:$0xff]  ;;  %v3694_v20 = vld [vmem:[%s5621_s1 + $0xb0] sm:$0xf]  ;;  %v3707_v22 = vld [vmem:[%s5621_s1 + $0xe8] sm:$0xff] }
   0xc   :  { %5708 = vst [vmem:[#allocation11_spill] sm:$0xff] %v3625_v9  ;;  %260 = vmatpush.msra.mxu3 %v3618_v8  ;;  %132 = vmatpush.msra.mxu0 %v3625_v9  ;;  %v3666_v16 = vld [vmem:[%s5621_s1 + $0xb8] sm:$0xf]  ;;  %v3702_v21 = vld [vmem:[%s5621_s1 + $0x10] sm:$0xff]  ;;  %v3715_v23 = vld [vmem:[%s5620_s0 + $0x40] sm:$0xff] }
   0xd   :  { %5709 = vst [vmem:[#allocation12_spill] sm:$0xff] %v3632_v10  ;;  %3422 = vmatpush.msra.mxu2 %v3625_v9  ;;  %167 = vmatpush.msra.mxu1 %v3632_v10  ;;  %v3675_v17 = vld [vmem:[%s5621_s1 + $0xf8] sm:$0xf]  ;;  %v3720_v24 = vld [vmem:[%s5620_s0 + $0x60] sm:$0xff]  ;;  %v3741_v28 = vld [vmem:[%s5621_s1 + $0xf0] sm:$0xf] }
   0xe   :  { %5710 = vst [vmem:[#allocation13_spill] sm:$0xff] %v3637_v11  ;;  %261 = vmatpush.msra.mxu3 %v3637_v11  ;;  %3003 = vmatmul.msk.f32.vlgmr.msra.gmra.mxu0 %vm91_vm1, %v3644_v12  ;;  %v3725_v25 = vld [vmem:[%s5621_s1] sm:$0xff]  ;;  %v3735_v27 = vld [vmem:[%s5621_s1 + $0x98] sm:$0xff]  ;;  %v3757_v30 = vld [vmem:[%s5620_s0 + $0x8] sm:$0xff] }
   0xf   :  { %5711 = vst [vmem:[#allocation14_spill] sm:$0xff] %v3656_v14  ;;  %3007 = vmatmul.msk.f32.vlgmr.msra.gmra.mxu2 %vm91_vm1, %v3649_v13  ;;  %3010 = vmatmul.msk.f32.vlgmr.msra.gmra.mxu1 %vm91_vm1, %v3644_v12  ;;  %v3730_v26 = vld [vmem:[%s5621_s1 + $0xa0] sm:$0xff]  ;;  %v3746_v29 = vld [vmem:[%s5621_s1 + $0xd8] sm:$0xff]  ;;  %v3764_v31 = vld [vmem:[%s5621_s1 + $0x90] sm:$0xff] }
  0x10   :  { %5712 = vst [vmem:[#allocation15_spill] sm:$0xff] %v3666_v16  ;;  %3016 = vmatpush.msk.msrb.mxu2 %vm110_vm0, %v3656_v14  ;;  %3024 = vmatmul.msk.f32.vlgmr.msra.gmra.mxu3 %vm91_vm1, %v61_v15  ;;  %v3773_v32 = vld [vmem:[%s5621_s1 + $0xe0] sm:$0xff]  ;;  %v3778_v33 = vld [vmem:[%s5621_s1 + $0xc8] sm:$0xff]  ;;  %v3800_v36 = vld [vmem:[%s5621_s1 + $0xd0] sm:$0xff] }
  0x11   :  { %5713 = vst [vmem:[#allocation16_spill] sm:$0xff] %v3680_v18  ;;  %3051 = vmatpush.msk.msrb.mxu1 %vm110_vm0, %v3666_v16  ;;  %3079 = vmatpush.msk.msrb.mxu3 %vm110_vm0, %v3675_v17  ;;  %v3787_v34 = vld [vmem:[%s5621_s1 + $0x80] sm:$0xff]  ;;  %v3795_v35 = vld [vmem:[%s5621_s1 + $0x88] sm:$0xff]  ;;  %v3817_v38 = vld [vmem:[%s5620_s0 + $0x10] sm:$0xff] }
  0x12   :  { %5714 = vst [vmem:[#allocation17_spill] sm:$0xff] %v3689_v19  ;;  %224 = vmatpush.msrb.mxu2 %v3680_v18  ;;  %3044 = vmatpush.msk.msrb.mxu0 %vm110_vm0, %v3694_v20  ;;  %v3809_v37 = vld [vmem:[%s5620_s0 + $0x48] sm:$0xff]  ;;  %v3831_v39 = vld [vmem:[%s5621_s1 + $0xc0] sm:$0xff]  ;;  %v3836_v40 = vld [vmem:[%s5621_s1 + $0x138] sm:$0xf] }
  0x13   :  { %5715 = vst [vmem:[#allocation18_spill] sm:$0xff] %v3694_v20  ;;  %369 = vmatpush.msrb.mxu1 %v3689_v19  ;;  %491 = vmatpush.msrb.mxu3 %v3707_v22  ;;  %v3847_v41 = vld [vmem:[%s5620_s0 + $0x50] sm:$0xff]  ;;  %v3853_v42 = vld [vmem:[%s5620_s0 + $0x18] sm:$0xff]  ;;  %v3873_v44 = vld [vmem:[%s5620_s0 + $0x20] sm:$0xff] }
  0x14   :  { %5716 = vst [vmem:[#allocation19_spill] sm:$0xff] %v3702_v21  ;;  %225 = vmatpush.msrb.mxu2 %v3702_v21  ;;  %334 = vmatpush.msrb.mxu0 %v3730_v26  ;;  %v3868_v43 = vld [vmem:[%s5620_s0 + $0x70] sm:$0xff]  ;;  %v3886_v45 = vld [vmem:[%s5621_s1 + $0x128] sm:$0xff]  ;;  %v3899_v47 = vld [vmem:[%s5620_s0 + $0x78] sm:$0xff] }
  0x15   :  { %5717 = vst [vmem:[#allocation20_spill] sm:$0xff] %v3725_v25  ;;  %370 = vmatpush.msrb.mxu1 %v3735_v27  ;;  %492 = vmatpush.msrb.mxu3 %v3746_v29  ;;  %v3891_v46 = vld [vmem:[%s5621_s1 + $0x130] sm:$0xf]  ;;  %v3904_v48 = vld [vmem:[%s5620_s0 + $0x28] sm:$0xff]  ;;  %v3917_v49 = vld [vmem:[%s5621_s1 + $0x120] sm:$0xff] }
  0x16   :  { %5718 = vst [vmem:[#allocation21_spill] sm:$0xff] %v3730_v26  ;;  %226 = vmatpush.msrb.mxu2 %v3725_v25  ;;  %3004 = vmatmul.msk.f32.gmra.mxu0 %vm91_vm1, %v3715_v23  ;;  %v3922_v50 = vld [vmem:[%s5621_s1 + $0x118] sm:$0xff]  ;;  %v3927_v51 = vld [vmem:[%s5621_s1 + $0x110] sm:$0xff]  ;;  %v3934_v52 = vld [vmem:[%s5621_s1 + $0x100] sm:$0xff] }
  0x17   :  { %5719 = vst [vmem:[#allocation22_spill] sm:$0xff] %v3735_v27  ;;  %3008 = vmatmul.msk.f32.gmra.mxu2 %vm91_vm1, %v3720_v24  ;;  %3011 = vmatmul.msk.f32.gmra.mxu1 %vm91_vm1, %v3715_v23  ;;  %v3939_v53 = vld [vmem:[%s5620_s0 + $0x80] sm:$0xff]  ;;  %v3945_v54 = vld [vmem:[%s5620_s0 + $0xa8] sm:$0xff]  ;;  %v3971_v56 = vld [vmem:[%s5620_s0 + $0xb0] sm:$0xff] }
  0x18   :  { %5720 = vst [vmem:[#allocation23_spill] sm:$0xff] %v3757_v30  ;;  %3072 = vmatpush.msk.msra.mxu2 %vm110_vm0, %v3741_v28  ;;  %3025 = vmatmul.msk.f32.gmra.mxu3 %vm91_vm1, %v3757_v30  ;;  %v3964_v55 = vld [vmem:[%s5620_s0 + $0x88] sm:$0xff]  ;;  %v3995_v58 = vld [vmem:[%s5620_s0 + $0x90] sm:$0xff]  ;;  %v4001_v59 = vld [vmem:[%s5620_s0 + $0xb8] sm:$0xff] }
  0x19   :  { %5721 = vst [vmem:[#allocation24_spill] sm:$0xff] %v3764_v31  ;;  %335 = vmatpush.msrb.mxu0 %v3764_v31  ;;  %493 = vmatpush.msrb.mxu3 %v3778_v33  ;;  %v3987_v57 = vld [vmem:[%s5621_s1 + $0x108] sm:$0xff]  ;;  %v4019_v60 = vld [vmem:[%s5620_s0 + $0x98] sm:$0xff]  ;;  %v4025_v61 = vld [vmem:[%s5620_s0 + $0xc0] sm:$0xff] }
  0x1a   :  { %5722 = vst [vmem:[#allocation25_spill] sm:$0xff] %v3787_v34  ;;  %456 = vmatpush.msra.mxu2 %v3773_v32  ;;  %371 = vmatpush.msrb.mxu1 %v3795_v35  ;;  %v4039_v62 = vld [vmem:[%s5620_s0 + $0xc8] sm:$0xff]  ;;  %v4056_v63 = vld [vmem:[%s5620_s0 + $0xd0] sm:$0xff] }
  0x1b   :  { %336 = vmatpush.msrb.mxu0 %v3787_v34  ;;  %3121 = vmatpush.msk.msra.mxu3 %vm110_vm0, %v3573_v1  ;;  %5723 = vst [vmem:[#allocation26_spill] sm:$0xff] %v3836_v40 }
  0x1c   :  { %457 = vmatpush.msra.mxu2 %v3800_v36  ;;  %3107 = vmatpush.msk.msra.mxu1 %vm110_vm0, %v3836_v40  ;;  %5724 = vst [vmem:[#allocation27_spill] sm:$0xff] %v3868_v43 }
  0x1d   :  { %750 = vmatpush.msra.mxu3 %v3592_v4  ;;  %5725 = vst [vmem:[#allocation28_spill] sm:$0xff] %v3886_v45  ;;  %3100 = vmatpush.msk.msra.mxu0 %vm110_vm0, %v3891_v46 }
  0x1e   :  { %3005 = vmatmul.msk.f32.gmra.mxu0 %vm91_vm1, %v3809_v37  ;;  %458 = vmatpush.msra.mxu2 %v3831_v39  ;;  %5726 = vst [vmem:[#allocation29_spill] sm:$0xff] %v3899_v47 }
  0x1f   :  { %3017 = vmatmul.msk.f32.vlgmr.msrb.gmra.mxu2 %vm91_vm1, %v61_v15  ;;  %3012 = vmatmul.msk.f32.gmra.mxu1 %vm91_vm1, %v3809_v37  ;;  %5727 = vst [vmem:[#allocation30_spill] sm:$0xff] %v3922_v50  ;;  %v4107_v15 = vld [vmem:[%s5620_s0 + $0x30] sm:$0xff] }
  0x20   :  { %751 = vmatpush.msra.mxu3 %v3613_v7  ;;  %3114 = vmatpush.msk.msrb.mxu2 %vm110_vm0, %v3568_v0  ;;  %5728 = vst [vmem:[#allocation31_spill] sm:$0xff] %v3927_v51 }
  0x21   :  { %3026 = vmatmul.msk.f32.gmra.mxu3 %vm91_vm1, %v3817_v38  ;;  %613 = vmatpush.msra.mxu1 %v3886_v45  ;;  %5729 = vst [vmem:[#allocation32_spill] sm:$0xff] %v3934_v52 }
  0x22   :  { %752 = vmatpush.msra.mxu3 %v3632_v10  ;;  %715 = vmatpush.msrb.mxu2 %v3587_v3  ;;  %5730 = vst [vmem:[#allocation33_spill] sm:$0xff] %v3939_v53 }
  0x23   :  { %578 = vmatpush.msra.mxu0 %v3917_v49  ;;  %614 = vmatpush.msra.mxu1 %v3922_v50  ;;  %5731 = vst [vmem:[#allocation34_spill] sm:$0xff] %v3945_v54 }
  0x24   :  { %716 = vmatpush.msrb.mxu2 %v3606_v6  ;;  %5732 = vst [vmem:[#allocation35_spill] sm:$0xff] %v3964_v55 }
  0x25   :  { %579 = vmatpush.msra.mxu0 %v3927_v51  ;;  %5733 = vst [vmem:[#allocation36_spill] sm:$0xff] %v3971_v56  ;;  %615 = vmatpush.msra.mxu1 %v3987_v57 }
  0x26   :  { %3006 = vmatmul.msk.f32.gmra.mxu0 %vm91_vm1, %v3847_v41  ;;  %717 = vmatpush.msrb.mxu2 %v3625_v9  ;;  %5734 = vst [vmem:[#allocation37_spill] sm:$0xff] %v3987_v57 }
  0x27   :  { %3018 = vmatmul.msk.f32.gmra.mxu2 %vm91_vm1, %v3757_v30  ;;  %3013 = vmatmul.msk.f32.gmra.mxu1 %vm91_vm1, %v3847_v41  ;;  %5735 = vst [vmem:[#allocation38_spill] sm:$0xff] %v3995_v58 }
  0x28   :  { %580 = vmatpush.msra.mxu0 %v3934_v52  ;;  %5736 = vst [vmem:[#allocation39_spill] sm:$0xff] %v4001_v59 }
  0x29   :  { %3027 = vmatmul.msk.f32.gmra.mxu3 %vm91_vm1, %v3853_v42  ;;  %5737 = vst [vmem:[#allocation40_spill] sm:$0xff] %v4019_v60 }
  0x2a   :  { %5738 = vst [vmem:[#allocation41_spill] sm:$0xff] %v4025_v61 }
  0x2b   :  { %5739 = vst [vmem:[#allocation42_spill] sm:$0xff] %v4039_v62 }
  0x2c   :  { %5740 = vst [vmem:[#allocation43_spill] sm:$0xff] %v4056_v63 }
  0x2e   :  { %3045 = vmatmul.msk.f32.vlgmr.msrb.gmra.mxu0 %vm91_vm1, %v3868_v43 }
  0x2f   :  { %3019 = vmatmul.msk.f32.gmra.mxu2 %vm91_vm1, %v3817_v38  ;;  %3014 = vmatmul.msk.f32.gmra.mxu1 %vm91_vm1, %v3649_v13 }
  0x30   :  { %3128 = vmatpush.msk.msrb.mxu0 %vm110_vm0, %v3656_v14 }
  0x31   :  { %3028 = vmatmul.msk.f32.gmra.mxu3 %vm91_vm1, %v3873_v44 }
  0x32   :  { %785 = vmatpush.msrb.mxu0 %v3680_v18 }
  0x34   :  { %786 = vmatpush.msrb.mxu0 %v3702_v21 }
  0x36   :  { %3046 = vmatmul.msk.f32.gmra.mxu0 %vm91_vm1, %v3899_v47 }
  0x37   :  { %3020 = vmatmul.msk.f32.gmra.mxu2 %vm91_vm1, %v3853_v42  ;;  %3015 = vmatmul.msk.f32.gmra.mxu1 %vm91_vm1, %v3720_v24 }
  0x38   :  { %787 = vmatpush.msrb.mxu0 %v3725_v25 }
  0x39   :  { %3029 = vmatmul.msk.f32.gmra.mxu3 %vm91_vm1, %v3904_v48 }
  0x3e   :  { %3047 = vmatmul.msk.f32.gmra.mxu0 %vm91_vm1, %v3939_v53 }
  0x3f   :  { %3021 = vmatmul.msk.f32.gmra.mxu2 %vm91_vm1, %v3873_v44  ;;  %3052 = vmatmul.msk.f32.vlgmr.msrb.gmra.mxu1 %vm91_vm1, %v3868_v43 }
  0x40   :  { %3135 = vmatpush.msk.msrb.mxu1 %vm110_vm0, %v3578_v2 }
  0x41   :  { %3080 = vmatmul.msk.f32.vlgmr.msrb.gmra.mxu3 %vm91_vm1, %v3945_v54 }
  0x42   :  { %3149 = vmatpush.msk.msrb.mxu3 %vm110_vm0, %v3666_v16  ;;  %820 = vmatpush.msrb.mxu1 %v3597_v5 }
  0x44   :  { %890 = vmatpush.msrb.mxu3 %v3689_v19  ;;  %821 = vmatpush.msrb.mxu1 %v3618_v8 }
  0x46   :  { %891 = vmatpush.msrb.mxu3 %v3735_v27  ;;  %3048 = vmatmul.msk.f32.gmra.mxu0 %vm91_vm1, %v3964_v55 }
  0x47   :  { %3022 = vmatmul.msk.f32.gmra.mxu2 %vm91_vm1, %v3904_v48  ;;  %3053 = vmatmul.msk.f32.gmra.mxu1 %vm91_vm1, %v3899_v47 }
  0x48   :  { %892 = vmatpush.msrb.mxu3 %v3795_v35  ;;  %822 = vmatpush.msrb.mxu1 %v3637_v11 }
  0x49   :  { %3081 = vmatmul.msk.f32.gmra.mxu3 %vm91_vm1, %v3971_v56 }
  0x4e   :  { %3049 = vmatmul.msk.f32.gmra.mxu0 %vm91_vm1, %v3995_v58 }
  0x4f   :  { %3073 = vmatmul.msk.f32.vlgmr.msra.gmra.mxu2 %vm91_vm1, %v3945_v54  ;;  %3054 = vmatmul.msk.f32.gmra.mxu1 %vm91_vm1, %v3939_v53 }
  0x50   :  { %3142 = vmatpush.msk.msra.mxu2 %vm110_vm0, %v3694_v20 }
  0x51   :  { %3082 = vmatmul.msk.f32.gmra.mxu3 %vm91_vm1, %v4001_v59 }
  0x52   :  { %855 = vmatpush.msra.mxu2 %v3730_v26 }
  0x54   :  { %856 = vmatpush.msra.mxu2 %v3764_v31 }
  0x56   :  { %857 = vmatpush.msra.mxu2 %v3787_v34  ;;  %3050 = vmatmul.msk.f32.gmra.mxu0 %vm91_vm1, %v4019_v60 }
  0x57   :  { %3074 = vmatmul.msk.f32.gmra.mxu2 %vm91_vm1, %v3971_v56  ;;  %3055 = vmatmul.msk.f32.gmra.mxu1 %vm91_vm1, %v3964_v55 }
  0x59   :  { %3083 = vmatmul.msk.f32.gmra.mxu3 %vm91_vm1, %v4025_v61 }
  0x5e   :  { %3101 = vmatmul.msk.f32.vlgmr.msra.gmra.mxu0 %vm91_vm1, %v3757_v30 }
  0x5f   :  { %3075 = vmatmul.msk.f32.gmra.mxu2 %vm91_vm1, %v4001_v59  ;;  %3056 = vmatmul.msk.f32.gmra.mxu1 %vm91_vm1, %v3995_v58 }
  0x60   :  { %3156 = vmatpush.msk.msra.mxu0 %vm110_vm0, %v3741_v28 }
  0x61   :  { %3084 = vmatmul.msk.f32.gmra.mxu3 %vm91_vm1, %v4039_v62 }
  0x62   :  { %937 = vmatpush.msra.mxu0 %v3773_v32 }
  0x64   :  { %938 = vmatpush.msra.mxu0 %v3800_v36 }
  0x66   :  { %939 = vmatpush.msra.mxu0 %v3831_v39 }
  0x67   :  { %3076 = vmatmul.msk.f32.gmra.mxu2 %vm91_vm1, %v4025_v61  ;;  %3102 = vmatmul.msk.f32.gmra.mxu0 %vm91_vm1, %v3817_v38 }
  0x68   :  { %3057 = vmatmul.msk.f32.gmra.mxu1 %vm91_vm1, %v4019_v60 }
  0x69   :  { %3085 = vmatmul.msk.f32.gmra.mxu3 %vm91_vm1, %v4056_v63 }
  0x6f   :  { %3077 = vmatmul.msk.f32.gmra.mxu2 %vm91_vm1, %v4039_v62  ;;  %3103 = vmatmul.msk.f32.gmra.mxu0 %vm91_vm1, %v3853_v42 }
  0x70   :  { %3108 = vmatmul.msk.f32.vlgmr.msra.gmra.mxu1 %vm91_vm1, %v3757_v30 }
  0x71   :  { %3122 = vmatmul.msk.f32.vlgmr.msra.gmra.mxu3 %vm91_vm1, %v3868_v43  ;;  %3163 = vmatpush.msk.msra.mxu1 %vm110_vm0, %v3675_v17 }
  0x72   :  { %3183 = vmatpush.msk.msra.mxu3 %vm110_vm0, %v3836_v40 }
  0x73   :  { %972 = vmatpush.msra.mxu1 %v3707_v22 }
  0x74   :  { %1079 = vmatpush.msra.mxu3 %v3886_v45 }
  0x75   :  { %973 = vmatpush.msra.mxu1 %v3746_v29 }
  0x76   :  { %1080 = vmatpush.msra.mxu3 %v3922_v50 }
  0x77   :  { %3078 = vmatmul.msk.f32.gmra.mxu2 %vm91_vm1, %v4056_v63  ;;  %3104 = vmatmul.msk.f32.gmra.mxu0 %vm91_vm1, %v3873_v44 }
  0x78   :  { %3109 = vmatmul.msk.f32.gmra.mxu1 %vm91_vm1, %v3817_v38  ;;  %1081 = vmatpush.msra.mxu3 %v3987_v57 }
  0x79   :  { %3123 = vmatmul.msk.f32.gmra.mxu3 %vm91_vm1, %v3899_v47  ;;  %974 = vmatpush.msra.mxu1 %v3778_v33 }
  0x7f   :  { %3105 = vmatmul.msk.f32.gmra.mxu0 %vm91_vm1, %v3904_v48  ;;  %3115 = vmatmul.msk.f32.vlgmr.msrb.gmra.mxu2 %vm91_vm1, %v3868_v43 }
  0x80   :  { %3110 = vmatmul.msk.f32.gmra.mxu1 %vm91_vm1, %v3853_v42  ;;  %3176 = vmatpush.msk.msrb.mxu2 %vm110_vm0, %v3891_v46 }
  0x81   :  { %3124 = vmatmul.msk.f32.gmra.mxu3 %vm91_vm1, %v3939_v53 }
  0x82   :  { %1044 = vmatpush.msrb.mxu2 %v3917_v49 }
  0x84   :  { %1045 = vmatpush.msrb.mxu2 %v3927_v51 }
  0x86   :  { %1046 = vmatpush.msrb.mxu2 %v3934_v52 }
  0x87   :  { %3106 = vmatmul.msk.f32.gmra.mxu0 %vm91_vm1, %v4107_v15  ;;  %3116 = vmatmul.msk.f32.gmra.mxu2 %vm91_vm1, %v3899_v47 }
  0x88   :  { %3111 = vmatmul.msk.f32.gmra.mxu1 %vm91_vm1, %v3873_v44 }
  0x89   :  { %3125 = vmatmul.msk.f32.gmra.mxu3 %vm91_vm1, %v3964_v55 }
  0x8b   :  { %v4119_v57 = vpop.f32.mrf.mxu0 }
  0x8c   :  { %v169_v50 = vpop.f32.mrf.mxu1 }
  0x8f   :  { %3117 = vmatmul.msk.f32.gmra.mxu2 %vm91_vm1, %v3939_v53  ;;  %3129 = vmatmul.msk.f32.vlgmr.msrb.gmra.mxu0 %vm91_vm1, %v3644_v12 }
  0x90   :  { %3112 = vmatmul.msk.f32.gmra.mxu1 %vm91_vm1, %v3904_v48  ;;  %3190 = vmatpush.msk.msrb.mxu0 %vm110_vm0, %v3568_v0 }
  0x91   :  { %3126 = vmatmul.msk.f32.gmra.mxu3 %vm91_vm1, %v3995_v58 }
  0x92   :  { %v4131_v47 = vpop.f32.mrf.mxu2  ;;  %1201 = vmatpush.msrb.mxu0 %v3587_v3 }
  0x93   :  { %v263_v45 = vpop.f32.mrf.mxu3  ;;  %v4134_v40 = vpop.f32.mrf.mxu0 }
  0x94   :  { %1202 = vmatpush.msrb.mxu0 %v3606_v6  ;;  %v4137_v53 = vadd.f32 %v263_v45, %v169_v50  ;;  %v172_v43 = vpop.f32.mrf.mxu1 }
  0x96   :  { %1203 = vmatpush.msrb.mxu0 %v3625_v9 }
  0x97   :  { %3118 = vmatmul.msk.f32.gmra.mxu2 %vm91_vm1, %v3964_v55  ;;  %3130 = vmatmul.msk.f32.gmra.mxu0 %vm91_vm1, %v3715_v23 }
  0x98   :  { %3113 = vmatmul.msk.f32.gmra.mxu1 %vm91_vm1, %v4107_v15 }
  0x99   :  { %3127 = vmatmul.msk.f32.gmra.mxu3 %vm91_vm1, %v4019_v60 }
  0x9a   :  { %v4148_v3 = vpop.f32.mrf.mxu2 }
  0x9b   :  { %v266_v6 = vpop.f32.mrf.mxu3  ;;  %v4150_v45 = vpop.f32.mrf.mxu0 }
  0x9c   :  { %v4152_v50 = vadd.f32 %v266_v6, %v172_v43  ;;  %v175_v9 = vpop.f32.mrf.mxu1 }
  0x9f   :  { %3119 = vmatmul.msk.f32.gmra.mxu2 %vm91_vm1, %v3995_v58  ;;  %3131 = vmatmul.msk.f32.gmra.mxu0 %vm91_vm1, %v3809_v37 }
  0xa0   :  { %3136 = vmatmul.msk.f32.vlgmr.msrb.gmra.mxu1 %vm91_vm1, %v3644_v12 }
  0xa1   :  { %3150 = vmatmul.msk.f32.vlgmr.msrb.gmra.mxu3 %vm91_vm1, %v3945_v54  ;;  %3197 = vmatpush.msk.msrb.mxu1 %vm110_vm0, %v3573_v1 }
  0xa2   :  { %v4164_v55 = vpop.f32.mrf.mxu2  ;;  %3211 = vmatpush.msk.msrb.mxu3 %vm110_vm0, %v3578_v2 }
  0xa3   :  { %1236 = vmatpush.msrb.mxu1 %v3592_v4  ;;  %v143_v43 = vpop.f32.mrf.mxu0 }
  0xa4   :  { %v269_v6 = vpop.f32.mrf.mxu3  ;;  %1306 = vmatpush.msrb.mxu3 %v3597_v5  ;;  %v178_v12 = vpop.f32.mrf.mxu1 }
  0xa5   :  { %v4170_v58 = vadd.f32 %v269_v6, %v175_v9  ;;  %1237 = vmatpush.msrb.mxu1 %v3613_v7 }
  0xa6   :  { %1307 = vmatpush.msrb.mxu3 %v3618_v8 }
  0xa7   :  { %3120 = vmatmul.msk.f32.gmra.mxu2 %vm91_vm1, %v4019_v60  ;;  %3132 = vmatmul.msk.f32.gmra.mxu0 %vm91_vm1, %v3847_v41 }
  0xa8   :  { %3137 = vmatmul.msk.f32.gmra.mxu1 %vm91_vm1, %v3715_v23  ;;  %1308 = vmatpush.msrb.mxu3 %v3637_v11 }
  0xa9   :  { %3151 = vmatmul.msk.f32.gmra.mxu3 %vm91_vm1, %v3971_v56  ;;  %1238 = vmatpush.msrb.mxu1 %v3632_v10 }
  0xaa   :  { %v4184_v9 = vpop.f32.mrf.mxu2 }
  0xab   :  { %v4186_v8 = vpop.f32.mrf.mxu0 }
  0xac   :  { %v272_v6 = vpop.f32.mrf.mxu3  ;;  %v181_v2 = vpop.f32.mrf.mxu1 }
  0xad   :  { %v4188_v5 = vadd.f32 %v272_v6, %v178_v12 }
  0xaf   :  { %3133 = vmatmul.msk.f32.gmra.mxu0 %vm91_vm1, %v3649_v13  ;;  %3143 = vmatmul.msk.f32.vlgmr.msra.gmra.mxu2 %vm91_vm1, %v3945_v54 }
  0xb0   :  { %3138 = vmatmul.msk.f32.gmra.mxu1 %vm91_vm1, %v3809_v37  ;;  %3204 = vmatpush.msk.msra.mxu2 %vm110_vm0, %v3656_v14 }
  0xb1   :  { %3152 = vmatmul.msk.f32.gmra.mxu3 %vm91_vm1, %v4001_v59 }
  0xb2   :  { %v4200_v11 = vpop.f32.mrf.mxu2  ;;  %1271 = vmatpush.msra.mxu2 %v3680_v18 }
  0xb3   :  { %v4203_v6 = vpop.f32.mrf.mxu0 }
  0xb4   :  { %v275_v12 = vpop.f32.mrf.mxu3  ;;  %1272 = vmatpush.msra.mxu2 %v3702_v21  ;;  %v184_v0 = vpop.f32.mrf.mxu1 }
  0xb5   :  { %v4206_v60 = vadd.f32 %v275_v12, %v181_v2 }
  0xb6   :  { %1273 = vmatpush.msra.mxu2 %v3725_v25 }
  0xb7   :  { %3134 = vmatmul.msk.f32.gmra.mxu0 %vm91_vm1, %v3720_v24  ;;  %3144 = vmatmul.msk.f32.gmra.mxu2 %vm91_vm1, %v3971_v56 }
  0xb8   :  { %3139 = vmatmul.msk.f32.gmra.mxu1 %vm91_vm1, %v3847_v41 }
  0xb9   :  { %3153 = vmatmul.msk.f32.gmra.mxu3 %vm91_vm1, %v4025_v61 }
  0xba   :  { %v237_v18 = vpop.f32.mrf.mxu2 }
  0xbb   :  { %v4217_v14 = vadd.f32 %v237_v18, %v143_v43  ;;  %v4219_v12 = vpop.f32.mrf.mxu0 }
  0xbc   :  { %v278_v2 = vpop.f32.mrf.mxu3  ;;  %v4223_v25 = vpop.f32.mrf.mxu1 }
  0xbd   :  { %v4221_v21 = vadd.f32 %v278_v2, %v184_v0 }
  0xbf   :  { %3145 = vmatmul.msk.f32.gmra.mxu2 %vm91_vm1, %v4001_v59  ;;  %3157 = vmatmul.msk.f32.vlgmr.msra.gmra.mxu0 %vm91_vm1, %v3757_v30 }
  0xc0   :  { %3140 = vmatmul.msk.f32.gmra.mxu1 %vm91_vm1, %v3649_v13  ;;  %3218 = vmatpush.msk.msra.mxu0 %vm110_vm0, %v3694_v20 }
  0xc1   :  { %3154 = vmatmul.msk.f32.gmra.mxu3 %vm91_vm1, %v4039_v62 }
  0xc2   :  { %v240_v18 = vpop.f32.mrf.mxu2  ;;  %1341 = vmatpush.msra.mxu0 %v3730_v26 }
  0xc3   :  { %v4237_v0 = vadd.f32 %v240_v18, %v4131_v47  ;;  %v4241_v2 = vpop.f32.mrf.mxu0 }
  0xc4   :  { %v4239_v43 = vpop.f32.mrf.mxu3  ;;  %1342 = vmatpush.msra.mxu0 %v3764_v31  ;;  %v4244_v10 = vpop.f32.mrf.mxu1 }
  0xc6   :  { %1343 = vmatpush.msra.mxu0 %v3787_v34 }
  0xc7   :  { %3146 = vmatmul.msk.f32.gmra.mxu2 %vm91_vm1, %v4025_v61  ;;  %3158 = vmatmul.msk.f32.gmra.mxu0 %vm91_vm1, %v3817_v38 }
  0xc8   :  { %3141 = vmatmul.msk.f32.gmra.mxu1 %vm91_vm1, %v3720_v24 }
  0xc9   :  { %3155 = vmatmul.msk.f32.gmra.mxu3 %vm91_vm1, %v4056_v63 }
  0xca   :  { %v243_v47 = vpop.f32.mrf.mxu2 }
  0xcb   :  { %v4256_v18 = vadd.f32 %v243_v47, %v4148_v3  ;;  %v4260_v26 = vpop.f32.mrf.mxu0 }
  0xcc   :  { %v4258_v31 = vpop.f32.mrf.mxu3  ;;  %v4262_v34 = vpop.f32.mrf.mxu1 }
  0xcf   :  { %3147 = vmatmul.msk.f32.gmra.mxu2 %vm91_vm1, %v4039_v62  ;;  %3159 = vmatmul.msk.f32.gmra.mxu0 %vm91_vm1, %v3853_v42 }
  0xd0   :  { %3164 = vmatmul.msk.f32.vlgmr.msra.gmra.mxu1 %vm91_vm1, %v3757_v30 }
  0xd1   :  { %3184 = vmatmul.msk.f32.vlgmr.msra.gmra.mxu3 %vm91_vm1, %v3715_v23  ;;  %3225 = vmatpush.msk.msra.mxu1 %vm110_vm0, %v3666_v16  ;;  %v229_v16 = vadd.f32 %v4164_v55, %v4119_v57 }
  0xd2   :  { %v460_v3 = vpop.f32.mrf.mxu2  ;;  %3239 = vmatpush.msk.msra.mxu3 %vm110_vm0, %v3675_v17 }
  0xd3   :  { %1376 = vmatpush.msra.mxu1 %v3689_v19  ;;  %v4279_v20 = vpop.f32.mrf.mxu0  ;;  %v391_v17 = vadd.f32 %v4186_v8, %v229_v16 }
  0xd4   :  { %v4277_v47 = vpop.f32.mrf.mxu3  ;;  %1458 = vmatpush.msra.mxu3 %v3707_v22  ;;  %v382_v62 = vpop.f32.mrf.mxu1 }
  0xd5   :  { %1377 = vmatpush.msra.mxu1 %v3735_v27  ;;  %v398_v55 = vadd.f32 %v382_v62, %v4188_v5 }
  0xd6   :  { %1459 = vmatpush.msra.mxu3 %v3746_v29  ;;  %v513_v29 = vadd.f32 %v460_v3, %v391_v17 }
  0xd7   :  { %3148 = vmatmul.msk.f32.gmra.mxu2 %vm91_vm1, %v4056_v63  ;;  %3160 = vmatmul.msk.f32.gmra.mxu0 %vm91_vm1, %v3873_v44 }
  0xd8   :  { %3165 = vmatmul.msk.f32.gmra.mxu1 %vm91_vm1, %v3817_v38  ;;  %1460 = vmatpush.msra.mxu3 %v3778_v33  ;;  %v232_v33 = vadd.f32 %v4184_v9, %v4134_v40 }
  0xd9   :  { %3185 = vmatmul.msk.f32.gmra.mxu3 %vm91_vm1, %v3809_v37  ;;  %1378 = vmatpush.msra.mxu1 %v3795_v35 }
  0xda   :  { %v463_v22 = vpop.f32.mrf.mxu2  ;;  %v393_v5 = vadd.f32 %v4203_v6, %v232_v33  ;;  %v235_v6 = vadd.f32 %v4200_v11, %v4150_v45  ;;  %v392_v11 = vadd.f32 %v4223_v25, %v4137_v53  ;;  %v394_v25 = vadd.f32 %v4244_v10, %v4152_v50  ;;  %v4378_v10 = vld [vmem:[%s5620_s0 + $0x68] sm:$0xff] }
  0xdb   :  { %v582_v27 = vpop.f32.mrf.mxu0  ;;  %v396_v50 = vadd.f32 %v4262_v34, %v4170_v58  ;;  %v5753_v34 = vld [vmem:[#allocation26_spill] sm:$0xff] }
  0xdc   :  { %v504_v57 = vpop.f32.mrf.mxu3  ;;  %v385_v30 = vpop.f32.mrf.mxu1  ;;  %v4300_v63 = vadd.f32 %v582_v27, %v513_v29  ;;  %v515_v16 = vadd.f32 %v463_v22, %v393_v5 }
  0xdd   :  { %v4298_v19 = vadd.f32 %v504_v57, %v398_v55  ;;  %v400_v27 = vadd.f32 %v385_v30, %v4206_v60  ;;  %v395_v30 = vadd.f32 %v4219_v12, %v235_v6  ;;  %v397_v60 = vadd.f32 %v4241_v2, %v4217_v14 }
  0xde   :  { %5742 = vst [vmem:[#allocation45_spill] sm:$0xff] %v4300_v63  ;;  %659 = vrot.lane.b32.xlu0 %v4300_v63, %s3490_s3  ;;  %v514_v57 = vadd.f32 %v4239_v43, %v392_v11  ;;  %v518_v6 = vadd.f32 %v4277_v47, %v396_v50  ;;  %v5766_v50 = vld [vmem:[#allocation9_spill] sm:$0xff] }
  0xdf   :  { %5741 = vst [vmem:[#allocation44_spill] sm:$0xff] %v4298_v19  ;;  %3161 = vmatmul.msk.f32.gmra.mxu0 %vm91_vm1, %v3904_v48  ;;  %3177 = vmatmul.msk.f32.vlgmr.msrb.gmra.mxu2 %vm91_vm1, %v3715_v23  ;;  %v5779_v19 = vld [vmem:[#allocation15_spill] sm:$0xff] }
  0xe0   :  { %3166 = vmatmul.msk.f32.gmra.mxu1 %vm91_vm1, %v3853_v42  ;;  %3232 = vmatpush.msk.msrb.mxu2 %vm110_vm0, %v3741_v28 }
  0xe1   :  { %3186 = vmatmul.msk.f32.gmra.mxu3 %vm91_vm1, %v3847_v41 }
  0xe2   :  { %v466_v8 = vpop.f32.mrf.mxu2  ;;  %1423 = vmatpush.msrb.mxu2 %v3773_v32 }
  0xe3   :  { %v517_v22 = vadd.f32 %v466_v8, %v395_v30  ;;  %v516_v8 = vadd.f32 %v4258_v31, %v394_v25  ;;  %v401_v31 = vadd.f32 %v4279_v20, %v4256_v18  ;;  %v5752_v20 = vld [vmem:[#allocation27_spill] sm:$0xff]  ;;  %v5754_v18 = vld [vmem:[#allocation28_spill] sm:$0xff]  ;;  %v5763_v25 = vld [vmem:[#allocation5_spill] sm:$0xff] }
  0xe4   :  { %v507_v40 = vpop.f32.mrf.mxu3  ;;  %v585_v62 = vpop.f32.mrf.mxu0  ;;  %1424 = vmatpush.msrb.mxu2 %v3800_v36 }
  0xe5   :  { %v4319_v9 = vadd.f32 %v507_v40, %v400_v27  ;;  %v388_v3 = vpop.f32.mrf.mxu1  ;;  %v4321_v17 = vadd.f32 %v585_v62, %v515_v16 }
  0xe6   :  { %1425 = vmatpush.msrb.mxu2 %v3831_v39  ;;  %v402_v29 = vadd.f32 %v388_v3, %v4221_v21  ;;  %v399_v21 = vadd.f32 %v4260_v26, %v4237_v0 }
  0xe7   :  { %5743 = vst [vmem:[#allocation46_spill] sm:$0xff] %v4319_v9  ;;  %3162 = vmatmul.msk.f32.gmra.mxu0 %vm91_vm1, %v4107_v15  ;;  %3178 = vmatmul.msk.f32.gmra.mxu2 %vm91_vm1, %v3809_v37  ;;  %v5776_v9 = vld [vmem:[#allocation20_spill] sm:$0xff] }
  0xe8   :  { %5744 = vst [vmem:[#allocation47_spill] sm:$0xff] %v4321_v17  ;;  %3167 = vmatmul.msk.f32.gmra.mxu1 %vm91_vm1, %v3873_v44  ;;  %663 = vrot.lane.b32.xlu2 %v4321_v17, %s3490_s3 }
  0xe9   :  { %3187 = vmatmul.msk.f32.gmra.mxu3 %vm91_vm1, %v3649_v13 }
  0xea   :  { %v469_v45 = vpop.f32.mrf.mxu2 }
  0xeb   :  { %v4343_v55 = vadd.f32 %v469_v45, %v397_v60 }
  0xec   :  { %v510_v12 = vpop.f32.mrf.mxu3  ;;  %v588_v33 = vpop.f32.mrf.mxu0 }
  0xed   :  { %5745 = vst [vmem:[#allocation48_spill] sm:$0xff] %v4343_v55  ;;  %v4346_v5 = vadd.f32 %v510_v12, %v402_v29  ;;  %v617_v14 = vpop.f32.mrf.mxu1  ;;  %v4348_v2 = vadd.f32 %v588_v33, %v517_v22  ;;  %v5759_v12 = vld [vmem:[#allocation29_spill] sm:$0xff] }
  0xee   :  { %v636_v16 = vadd.f32 %v617_v14, %v514_v57  ;;  %v5757_v57 = vld [vmem:[#allocation30_spill] sm:$0xff] }
  0xef   :  { %5746 = vst [vmem:[#allocation49_spill] sm:$0xff] %v4346_v5  ;;  %3179 = vmatmul.msk.f32.gmra.mxu2 %vm91_vm1, %v3847_v41  ;;  %3191 = vmatmul.msk.f32.vlgmr.msrb.gmra.mxu0 %vm91_vm1, %v3945_v54 }
  0xf0   :  { %5747 = vst [vmem:[#allocation50_spill] sm:$0xff] %v4348_v2  ;;  %3168 = vmatmul.msk.f32.gmra.mxu1 %vm91_vm1, %v3904_v48  ;;  %667 = vrot.lane.b32.xlu1 %v4348_v2, %s3490_s3  ;;  %v5780_v2 = vld [vmem:[#allocation8_spill] sm:$0xff] }
  0xf1   :  { %3188 = vmatmul.msk.f32.gmra.mxu3 %vm91_vm1, %v3720_v24  ;;  %661 = vrot.lane.b32.xlu0 %v636_v16, %s3490_s3 }
  0xf2   :  { %v472_v53 = vpop.f32.mrf.mxu2  ;;  %3252 = vmatpush.msk.msrb.mxu0 %vm110_vm0, %v3891_v46 }
  0xf3   :  { %v4367_v43 = vadd.f32 %v472_v53, %v399_v21  ;;  %v5762_v21 = vld [vmem:[#allocation42_spill] sm:$0xff]  ;;  %v5764_v53 = vld [vmem:[#allocation33_spill] sm:$0xff] }
  0xf4   :  { %v4370_v27 = vpop.f32.mrf.mxu3  ;;  %v4372_v40 = vpop.f32.mrf.mxu0  ;;  %1530 = vmatpush.msrb.mxu0 %v3917_v49 }
  0xf5   :  { %5748 = vst [vmem:[#allocation51_spill] sm:$0xff] %v4367_v43  ;;  %v620_v26 = vpop.f32.mrf.mxu1  ;;  %v5775_v43 = vld [vmem:[#allocation19_spill] sm:$0xff] }
  0xf6   :  { %5749 = vst [vmem:[#allocation52_spill] sm:$0xff] %v4372_v40  ;;  %v638_v0 = vadd.f32 %v620_v26, %v516_v8  ;;  %1531 = vmatpush.msrb.mxu0 %v3927_v51  ;;  %v5765_v26 = vld [vmem:[#allocation7_spill] sm:$0xff]  ;;  %v5788_v51 = vld [vmem:[#allocation25_spill] sm:$0xff] }
  0xf7   :  { %3180 = vmatmul.msk.f32.gmra.mxu2 %vm91_vm1, %v3649_v13  ;;  %3192 = vmatmul.msk.f32.gmra.mxu0 %vm91_vm1, %v3971_v56 }
  0xf8   :  { %3169 = vmatmul.msk.f32.gmra.mxu1 %vm91_vm1, %v4107_v15  ;;  %1532 = vmatpush.msrb.mxu0 %v3934_v52 }
  0xf9   :  { %3189 = vmatmul.msk.f32.gmra.mxu3 %vm91_vm1, %v4378_v10  ;;  %665 = vrot.lane.b32.xlu0 %v638_v0, %s3490_s3 }
  0xfa   :  { %v475_v62 = vpop.f32.mrf.mxu2 }
  0xfb   :  { %v4395_v3 = vadd.f32 %v475_v62, %v401_v31 }
  0xfc   :  { %v4398_v30 = vpop.f32.mrf.mxu3  ;;  %v4400_v60 = vpop.f32.mrf.mxu0 }
  0xfd   :  { %5750 = vst [vmem:[#allocation53_spill] sm:$0xff] %v4395_v3  ;;  %v623_v11 = vpop.f32.mrf.mxu1 }
  0xfe   :  { %5751 = vst [vmem:[#allocation54_spill] sm:$0xff] %v4400_v60  ;;  %v640_v45 = vadd.f32 %v623_v11, %v518_v6  ;;  %v5768_v6 = vld [vmem:[#allocation11_spill] sm:$0xff] }
  0xff   :  { %3181 = vmatmul.msk.f32.gmra.mxu2 %vm91_vm1, %v3720_v24  ;;  %3193 = vmatmul.msk.f32.gmra.mxu0 %vm91_vm1, %v4001_v59  ;;  %v5769_v11 = vld [vmem:[#allocation43_spill] sm:$0xff] }
 0x100   :  { %3198 = vmatmul.msk.f32.vlgmr.msrb.gmra.mxu1 %vm91_vm1, %v3945_v54  ;;  %669 = vrot.lane.b32.xlu2 %v640_v45, %s3490_s3  ;;  %v5770_v45 = vld [vmem:[#allocation35_spill] sm:$0xff]  ;;  %v5787_v54 = vld [vmem:[#allocation24_spill] sm:$0xff] }
 0x101   :  { %3212 = vmatmul.msk.f32.vlgmr.msrb.gmra.mxu3 %vm91_vm1, %v5752_v20  ;;  %3259 = vmatpush.msk.msrb.mxu1 %vm110_vm0, %v5753_v34 }
 0x102   :  { %v4413_v58 = vpop.f32.mrf.mxu2  ;;  %3273 = vmatpush.msk.msrb.mxu3 %vm110_vm0, %v3573_v1  ;;  %v5758_v1 = vld [vmem:[#allocation12_spill] sm:$0xff] }
 0x103   :  { %1565 = vmatpush.msrb.mxu1 %v5754_v18 }
 0x104   :  { %v4418_v47 = vpop.f32.mrf.mxu3  ;;  %v4420_v22 = vpop.f32.mrf.mxu0  ;;  %1701 = vmatpush.msrb.mxu3 %v3592_v4  ;;  %v5760_v4 = vld [vmem:[#allocation37_spill] sm:$0xff] }
 0x105   :  { %5755 = vst [vmem:[#allocation27_spill] sm:$0xff] %v4420_v22  ;;  %v4423_v29 = vpop.f32.mrf.mxu1  ;;  %1566 = vmatpush.msrb.mxu1 %v5757_v57  ;;  %v5774_v22 = vld [vmem:[#allocation16_spill] sm:$0xff] }
 0x106   :  { %5756 = vst [vmem:[#allocation26_spill] sm:$0xff] %v4423_v29  ;;  %1702 = vmatpush.msrb.mxu3 %v3613_v7 }
 0x107   :  { %3182 = vmatmul.msk.f32.gmra.mxu2 %vm91_vm1, %v4378_v10  ;;  %3194 = vmatmul.msk.f32.gmra.mxu0 %vm91_vm1, %v4025_v61 }
 0x108   :  { %3199 = vmatmul.msk.f32.gmra.mxu1 %vm91_vm1, %v3971_v56  ;;  %1703 = vmatpush.msrb.mxu3 %v5758_v1 }
 0x109   :  { %3213 = vmatmul.msk.f32.gmra.mxu3 %vm91_vm1, %v5759_v12  ;;  %1567 = vmatpush.msrb.mxu1 %v5760_v4 }
 0x10a   :  { %v4437_v33 = vpop.f32.mrf.mxu2 }
 0x10c   :  { %v4439_v14 = vpop.f32.mrf.mxu3  ;;  %v4441_v7 = vpop.f32.mrf.mxu0 }
 0x10d   :  { %v4443_v16 = vpop.f32.mrf.mxu1 }
 0x10e   :  { %5761 = vst [vmem:[#allocation28_spill] sm:$0xff] %v4443_v16 }
 0x10f   :  { %3195 = vmatmul.msk.f32.gmra.mxu0 %vm91_vm1, %v5762_v21  ;;  %3205 = vmatmul.msk.f32.vlgmr.msra.gmra.mxu2 %vm91_vm1, %v5752_v20 }
 0x110   :  { %3200 = vmatmul.msk.f32.gmra.mxu1 %vm91_vm1, %v4001_v59  ;;  %3266 = vmatpush.msk.msra.mxu2 %vm110_vm0, %v5763_v25  ;;  %v5783_v59 = vld [vmem:[#allocation22_spill] sm:$0xff] }
 0x111   :  { %3214 = vmatmul.msk.f32.gmra.mxu3 %vm91_vm1, %v5764_v53 }
 0x112   :  { %v4455_v8 = vpop.f32.mrf.mxu2  ;;  %1666 = vmatpush.msra.mxu2 %v5765_v26 }
 0x114   :  { %v4458_v0 = vpop.f32.mrf.mxu3  ;;  %v4460_v31 = vpop.f32.mrf.mxu0  ;;  %1667 = vmatpush.msra.mxu2 %v5766_v50  ;;  %v5771_v50 = vld [vmem:[#allocation23_spill] sm:$0xff] }
 0x115   :  { %v4463_v62 = vpop.f32.mrf.mxu1 }
 0x116   :  { %5767 = vst [vmem:[#allocation30_spill] sm:$0xff] %v4463_v62  ;;  %1668 = vmatpush.msra.mxu2 %v5768_v6  ;;  %v5772_v6 = vld [vmem:[#allocation14_spill] sm:$0xff] }
 0x117   :  { %3196 = vmatmul.msk.f32.gmra.mxu0 %vm91_vm1, %v5769_v11  ;;  %3206 = vmatmul.msk.f32.gmra.mxu2 %vm91_vm1, %v5759_v12  ;;  %v5773_v62 = vld [vmem:[#allocation38_spill] sm:$0xff] }
 0x118   :  { %3201 = vmatmul.msk.f32.gmra.mxu1 %vm91_vm1, %v4025_v61  ;;  %v5782_v61 = vld [vmem:[#allocation10_spill] sm:$0xff] }
 0x119   :  { %3215 = vmatmul.msk.f32.gmra.mxu3 %vm91_vm1, %v5770_v45 }
 0x11a   :  { %v4474_v20 = vpop.f32.mrf.mxu2 }
 0x11c   :  { %v4476_v1 = vpop.f32.mrf.mxu3  ;;  %v4478_v25 = vpop.f32.mrf.mxu0 }
 0x11d   :  { %v4480_v26 = vpop.f32.mrf.mxu1 }
 0x11f   :  { %3207 = vmatmul.msk.f32.gmra.mxu2 %vm91_vm1, %v5764_v53  ;;  %3219 = vmatmul.msk.f32.vlgmr.msra.gmra.mxu0 %vm91_vm1, %v5771_v50 }
 0x120   :  { %3202 = vmatmul.msk.f32.gmra.mxu1 %vm91_vm1, %v5762_v21  ;;  %3280 = vmatpush.msk.msra.mxu0 %vm110_vm0, %v5772_v6  ;;  %v5777_v6 = vld [vmem:[#allocation40_spill] sm:$0xff] }
 0x121   :  { %3216 = vmatmul.msk.f32.gmra.mxu3 %vm91_vm1, %v5773_v62 }
 0x122   :  { %v4492_v5 = vpop.f32.mrf.mxu2  ;;  %1736 = vmatpush.msra.mxu0 %v5774_v22 }
 0x124   :  { %v4495_v3 = vpop.f32.mrf.mxu3  ;;  %v798_v60 = vpop.f32.mrf.mxu0  ;;  %1737 = vmatpush.msra.mxu0 %v5775_v43 }
 0x125   :  { %v4498_v16 = vpop.f32.mrf.mxu1 }
 0x126   :  { %1738 = vmatpush.msra.mxu0 %v5776_v9  ;;  %v5778_v9 = vld [vmem:[#allocation6_spill] sm:$0xff] }
 0x127   :  { %3208 = vmatmul.msk.f32.gmra.mxu2 %vm91_vm1, %v5770_v45  ;;  %3220 = vmatmul.msk.f32.gmra.mxu0 %vm91_vm1, %v3817_v38 }
 0x128   :  { %3203 = vmatmul.msk.f32.gmra.mxu1 %vm91_vm1, %v5769_v11  ;;  %v5781_v11 = vld [vmem:[#allocation17_spill] sm:$0xff] }
 0x129   :  { %3217 = vmatmul.msk.f32.gmra.mxu3 %vm91_vm1, %v5777_v6 }
 0x12a   :  { %v4509_v22 = vpop.f32.mrf.mxu2 }
 0x12c   :  { %v4511_v40 = vpop.f32.mrf.mxu3  ;;  %v801_v43 = vpop.f32.mrf.mxu0 }
 0x12d   :  { %v4513_v55 = vpop.f32.mrf.mxu1 }
 0x12f   :  { %3209 = vmatmul.msk.f32.gmra.mxu2 %vm91_vm1, %v5773_v62  ;;  %3221 = vmatmul.msk.f32.gmra.mxu0 %vm91_vm1, %v3853_v42 }
 0x130   :  { %3226 = vmatmul.msk.f32.vlgmr.msra.gmra.mxu1 %vm91_vm1, %v5771_v50 }
 0x131   :  { %3240 = vmatmul.msk.f32.vlgmr.msra.gmra.mxu3 %vm91_vm1, %v3715_v23  ;;  %3287 = vmatpush.msk.msra.mxu1 %vm110_vm0, %v5778_v9 }
 0x132   :  { %v4525_v29 = vpop.f32.mrf.mxu2  ;;  %3301 = vmatpush.msk.msra.mxu3 %vm110_vm0, %v5779_v19  ;;  %v5784_v19 = vld [vmem:[#allocation13_spill] sm:$0xff] }
 0x133   :  { %1771 = vmatpush.msra.mxu1 %v5780_v2 }
 0x134   :  { %v4530_v17 = vpop.f32.mrf.mxu3  ;;  %v4532_v63 = vpop.f32.mrf.mxu0  ;;  %1841 = vmatpush.msra.mxu3 %v5781_v11 }
 0x135   :  { %v833_v21 = vpop.f32.mrf.mxu1  ;;  %1772 = vmatpush.msra.mxu1 %v5782_v61 }
 0x136   :  { %1842 = vmatpush.msra.mxu3 %v5783_v59  ;;  %v834_v59 = vadd.f32 %v833_v21, %v4439_v14  ;;  %v5786_v21 = vld [vmem:[#allocation21_spill] sm:$0xff] }
 0x137   :  { %3210 = vmatmul.msk.f32.gmra.mxu2 %vm91_vm1, %v5777_v6  ;;  %3222 = vmatmul.msk.f32.gmra.mxu0 %vm91_vm1, %v3873_v44 }
 0x138   :  { %3227 = vmatmul.msk.f32.gmra.mxu1 %vm91_vm1, %v3817_v38  ;;  %1843 = vmatpush.msra.mxu3 %v3795_v35  ;;  %v5785_v35 = vld [vmem:[#allocation18_spill] sm:$0xff] }
 0x139   :  { %3241 = vmatmul.msk.f32.gmra.mxu3 %vm91_vm1, %v3809_v37  ;;  %1773 = vmatpush.msra.mxu1 %v5784_v19 }
 0x13a   :  { %v4547_v2 = vpop.f32.mrf.mxu2 }
 0x13c   :  { %v903_v61 = vpop.f32.mrf.mxu3  ;;  %v4550_v11 = vpop.f32.mrf.mxu0 }
 0x13d   :  { %v4552_v9 = vadd.f32 %v903_v61, %v834_v59  ;;  %v836_v56 = vpop.f32.mrf.mxu1 }
 0x13e   :  { %v837_v19 = vadd.f32 %v836_v56, %v4458_v0  ;;  %v799_v56 = vadd.f32 %v798_v60, %v4474_v20 }
 0x13f   :  { %3223 = vmatmul.msk.f32.gmra.mxu0 %vm91_vm1, %v3904_v48  ;;  %3233 = vmatmul.msk.f32.vlgmr.msrb.gmra.mxu2 %vm91_vm1, %v3715_v23 }
 0x140   :  { %3228 = vmatmul.msk.f32.gmra.mxu1 %vm91_vm1, %v3853_v42  ;;  %3294 = vmatpush.msk.msrb.mxu2 %vm110_vm0, %v5785_v35 }
 0x141   :  { %3242 = vmatmul.msk.f32.gmra.mxu3 %vm91_vm1, %v3847_v41 }
 0x142   :  { %v4564_v14 = vpop.f32.mrf.mxu2  ;;  %1806 = vmatpush.msrb.mxu2 %v5786_v21 }
 0x144   :  { %v906_v59 = vpop.f32.mrf.mxu3  ;;  %v4568_v61 = vpop.f32.mrf.mxu0  ;;  %1807 = vmatpush.msrb.mxu2 %v5787_v54 }
 0x145   :  { %v4571_v23 = vadd.f32 %v906_v59, %v837_v19  ;;  %v839_v52 = vpop.f32.mrf.mxu1 }
 0x146   :  { %1808 = vmatpush.msrb.mxu2 %v5788_v51  ;;  %v840_v0 = vadd.f32 %v839_v52, %v4476_v1 }
 0x147   :  { %3224 = vmatmul.msk.f32.gmra.mxu0 %vm91_vm1, %v4107_v15  ;;  %3234 = vmatmul.msk.f32.gmra.mxu2 %vm91_vm1, %v3809_v37  ;;  %v825_v37 = vadd.f32 %v4480_v26, %v4370_v27  ;;  %v790_v26 = vadd.f32 %v4441_v7, %v4413_v58 }
 0x148   :  { %3229 = vmatmul.msk.f32.gmra.mxu1 %vm91_vm1, %v3873_v44  ;;  %v802_v44 = vadd.f32 %v801_v43, %v4492_v5  ;;  %v828_v5 = vadd.f32 %v4498_v16, %v4398_v30 }
 0x149   :  { %3243 = vmatmul.msk.f32.gmra.mxu3 %vm91_vm1, %v3649_v13  ;;  %v913_v13 = vadd.f32 %v4495_v3, %v825_v37 }
 0x14a   :  { %v868_v54 = vpop.f32.mrf.mxu2 }
 0x14b   :  { %v4584_v35 = vadd.f32 %v868_v54, %v799_v56 }
 0x14c   :  { %v909_v51 = vpop.f32.mrf.mxu3  ;;  %v4586_v21 = vpop.f32.mrf.mxu0 }
 0x14d   :  { %v4588_v19 = vadd.f32 %v909_v51, %v840_v0  ;;  %v976_v59 = vpop.f32.mrf.mxu1 }
 0x14f   :  { %3235 = vmatmul.msk.f32.gmra.mxu2 %vm91_vm1, %v3847_v41  ;;  %3253 = vmatmul.msk.f32.vlgmr.msrb.gmra.mxu0 %vm91_vm1, %v5759_v12  ;;  %v995_v41 = vadd.f32 %v976_v59, %v913_v13  ;;  %v793_v13 = vadd.f32 %v4460_v31, %v4437_v33 }
 0x150   :  { %3230 = vmatmul.msk.f32.gmra.mxu1 %vm91_vm1, %v3904_v48  ;;  %3308 = vmatpush.msk.msrb.mxu0 %vm110_vm0, %v3741_v28 }
 0x151   :  { %3244 = vmatmul.msk.f32.gmra.mxu3 %vm91_vm1, %v3720_v24  ;;  %v4617_v24 = vld [vmem:[%s5620_s0 + $0x58] sm:$0xff] }
 0x152   :  { %v871_v52 = vpop.f32.mrf.mxu2  ;;  %1888 = vmatpush.msrb.mxu0 %v3773_v32  ;;  %v915_v32 = vadd.f32 %v4511_v40, %v828_v5  ;;  %v912_v40 = vadd.f32 %v4525_v29, %v790_v26  ;;  %v3437_v29 = vld [vmem:[%s5621_s1 + $0xf8] sm:$0xf] }
 0x153   :  { %v4605_v27 = vadd.f32 %v871_v52, %v802_v44  ;;  %v796_v44 = vadd.f32 %v4478_v25, %v4455_v8 }
 0x154   :  { %v1083_v60 = vpop.f32.mrf.mxu3  ;;  %v4607_v20 = vpop.f32.mrf.mxu0  ;;  %1889 = vmatpush.msrb.mxu0 %v3800_v36  ;;  %v805_v36 = vadd.f32 %v4532_v63, %v4509_v22  ;;  %v4641_v63 = vld [vmem:[%s5620_s0 + $0x60] sm:$0xff]  ;;  %v994_v58 = vadd.f32 %v4550_v11, %v912_v40 }
 0x155   :  { %v1102_v48 = vadd.f32 %v1083_v60, %v995_v41  ;;  %v979_v28 = vpop.f32.mrf.mxu1  ;;  %v3443_v60 = vld [vmem:[%s5620_s0 + $0x20] sm:$0xff] }
 0x156   :  { %1890 = vmatpush.msrb.mxu0 %v3831_v39  ;;  %v997_v3 = vadd.f32 %v979_v28, %v915_v32 }
 0x157   :  { %1127 = vrot.lane.b32.xlu1 %v1102_v48, %s3490_s3  ;;  %3236 = vmatmul.msk.f32.gmra.mxu2 %vm91_vm1, %v4617_v24  ;;  %v5791_v48 = vld [vmem:[#allocation32_spill] sm:$0xff] }
 0x158   :  { %3231 = vmatmul.msk.f32.gmra.mxu1 %vm91_vm1, %v4107_v15  ;;  %3254 = vmatmul.msk.f32.gmra.mxu0 %vm91_vm1, %v5764_v53 }
 0x159   :  { %3245 = vmatmul.msk.f32.gmra.mxu3 %vm91_vm1, %v4378_v10 }
 0x15a   :  { %v874_v39 = vpop.f32.mrf.mxu2 }
 0x15b   :  { %v4630_v30 = vadd.f32 %v874_v39, %v805_v36 }
 0x15c   :  { %v1086_v16 = vpop.f32.mrf.mxu3  ;;  %v4632_v1 = vpop.f32.mrf.mxu0 }
 0x15d   :  { %v1104_v43 = vadd.f32 %v1086_v16, %v997_v3  ;;  %v982_v56 = vpop.f32.mrf.mxu1  ;;  %v3445_v16 = vld [vmem:[%s5620_s0 + $0x28] sm:$0xff] }
 0x15f   :  { %1131 = vrot.lane.b32.xlu2 %v1104_v43, %s3490_s3  ;;  %3237 = vmatmul.msk.f32.gmra.mxu2 %vm91_vm1, %v4641_v63 }
 0x160   :  { %3255 = vmatmul.msk.f32.gmra.mxu0 %vm91_vm1, %v5770_v45  ;;  %3260 = vmatmul.msk.f32.vlgmr.msrb.gmra.mxu1 %vm91_vm1, %v5759_v12  ;;  %v3438_v12 = vld [vmem:[%s5621_s1 + $0xe8] sm:$0xff] }
 0x161   :  { %3274 = vmatmul.msk.f32.vlgmr.msrb.gmra.mxu3 %vm91_vm1, %v5771_v50  ;;  %3315 = vmatpush.msk.msrb.mxu1 %vm110_vm0, %v3437_v29  ;;  %v831_v50 = vadd.f32 %v4513_v55, %v4418_v47  ;;  %v3440_v55 = vld [vmem:[%s5621_s1 + $0xc8] sm:$0xff] }
 0x162   :  { %v1048_v7 = vpop.f32.mrf.mxu2  ;;  %3335 = vmatpush.msk.msrb.mxu3 %vm110_vm0, %v5753_v34  ;;  %v3439_v34 = vld [vmem:[%s5621_s1 + $0xd8] sm:$0xff] }
 0x163   :  { %v4658_v22 = vadd.f32 %v1048_v7, %v994_v58  ;;  %1923 = vmatpush.msrb.mxu1 %v3438_v12  ;;  %v917_v51 = vadd.f32 %v4530_v17, %v831_v50 }
 0x164   :  { %v1089_v11 = vpop.f32.mrf.mxu3  ;;  %v4663_v54 = vpop.f32.mrf.mxu0  ;;  %2030 = vmatpush.msrb.mxu3 %v5754_v18 }
 0x165   :  { %v985_v0 = vpop.f32.mrf.mxu1  ;;  %1125 = vrot.lane.b32.xlu1 %v4658_v22, %s3490_s3  ;;  %1924 = vmatpush.msrb.mxu1 %v3439_v34  ;;  %v999_v18 = vadd.f32 %v982_v56, %v917_v51  ;;  %v5797_v34 = vld [vmem:[#allocation39_spill] sm:$0xff] }
 0x166   :  { %2031 = vmatpush.msrb.mxu3 %v5757_v57  ;;  %v1001_v57 = vadd.f32 %v985_v0, %v4552_v9  ;;  %v3441_v9 = vld [vmem:[%s5620_s0 + $0x8] sm:$0xff] }
 0x167   :  { %3238 = vmatmul.msk.f32.gmra.mxu2 %vm91_vm1, %v4378_v10  ;;  %1925 = vmatpush.msrb.mxu1 %v3440_v55  ;;  %v1106_v17 = vadd.f32 %v1089_v11, %v999_v18 }
 0x168   :  { %3256 = vmatmul.msk.f32.gmra.mxu0 %vm91_vm1, %v5773_v62  ;;  %3261 = vmatmul.msk.f32.gmra.mxu1 %vm91_vm1, %v5764_v53 }
 0x169   :  { %3275 = vmatmul.msk.f32.gmra.mxu3 %vm91_vm1, %v3817_v38  ;;  %v914_v38 = vadd.f32 %v4547_v2, %v793_v13  ;;  %v3449_v13 = vld [vmem:[%s5620_s0 + $0x48] sm:$0xff] }
 0x16a   :  { %v1051_v47 = vpop.f32.mrf.mxu2  ;;  %2032 = vmatpush.msrb.mxu3 %v5760_v4  ;;  %v916_v4 = vadd.f32 %v4564_v14, %v796_v44 }
 0x16b   :  { %v996_v33 = vadd.f32 %v4568_v61, %v914_v38 }
 0x16c   :  { %v1092_v59 = vpop.f32.mrf.mxu3  ;;  %v4688_v37 = vpop.f32.mrf.mxu0  ;;  %v998_v8 = vadd.f32 %v4586_v21, %v916_v4 }
 0x16d   :  { %v4694_v53 = vadd.f32 %v1092_v59, %v1001_v57  ;;  %v988_v52 = vpop.f32.mrf.mxu1  ;;  %1135 = vrot.lane.b32.xlu1 %v1106_v17, %s3490_s3  ;;  %v4713_v25 = vadd.f32 %v1051_v47, %v996_v33  ;;  %v5798_v57 = vld [vmem:[#allocation41_spill] sm:$0xff]  ;;  %v3448_v59 = vld [vmem:[%s5620_s0 + $0xb0] sm:$0xff]  ;;  %v3450_v33 = vld [vmem:[%s5620_s0 + $0xb8] sm:$0xff] }
 0x16e   :  { %v1003_v2 = vadd.f32 %v988_v52, %v4571_v23  ;;  %v1000_v23 = vadd.f32 %v4607_v20, %v4584_v35  ;;  %v3444_v35 = vld [vmem:[%s5620_s0 + $0x18] sm:$0xff]  ;;  %v5793_v20 = vld [vmem:[#allocation34_spill] sm:$0xff] }
 0x16f   :  { %3267 = vmatmul.msk.f32.vlgmr.msra.gmra.mxu2 %vm91_vm1, %v3441_v9  ;;  %v5799_v9 = vld [vmem:[#allocation42_spill] sm:$0xff] }
 0x170   :  { %3257 = vmatmul.msk.f32.gmra.mxu0 %vm91_vm1, %v5777_v6  ;;  %3262 = vmatmul.msk.f32.gmra.mxu1 %vm91_vm1, %v5770_v45 }
 0x171   :  { %3276 = vmatmul.msk.f32.gmra.mxu3 %vm91_vm1, %v3853_v42  ;;  %3328 = vmatpush.msk.msra.mxu2 %vm110_vm0, %v3891_v46  ;;  %v4730_v42 = vld [vmem:[%s5620_s0 + $0xa0] sm:$0xff]  ;;  %v5790_v46 = vld [vmem:[#allocation31_spill] sm:$0xff] }
 0x172   :  { %v1054_v31 = vpop.f32.mrf.mxu2 }
 0x173   :  { %v4716_v14 = vadd.f32 %v1054_v31, %v998_v8  ;;  %1995 = vmatpush.msra.mxu2 %v3917_v49  ;;  %v3442_v49 = vld [vmem:[%s5620_s0 + $0x10] sm:$0xff] }
 0x174   :  { %v1095_v45 = vpop.f32.mrf.mxu3  ;;  %v4719_v41 = vpop.f32.mrf.mxu0  ;;  %v3451_v8 = vld [vmem:[%s5620_s0 + $0x50] sm:$0xff] }
 0x175   :  { %v4721_v61 = vadd.f32 %v1095_v45, %v1003_v2  ;;  %v991_v21 = vpop.f32.mrf.mxu1  ;;  %1129 = vrot.lane.b32.xlu1 %v4713_v25, %s3490_s3  ;;  %1133 = vrot.lane.b32.xlu0 %v4716_v14, %s3490_s3 }
 0x176   :  { %1996 = vmatpush.msra.mxu2 %v5790_v46  ;;  %v1005_v5 = vadd.f32 %v991_v21, %v4588_v19  ;;  %v1002_v19 = vadd.f32 %v4632_v1, %v4605_v27  ;;  %v5795_v27 = vld [vmem:[#allocation36_spill] sm:$0xff]  ;;  %v1004_v1 = vadd.f32 %v4663_v54, %v4630_v30  ;;  %v3446_v30 = vld [vmem:[%s5620_s0 + $0xa8] sm:$0xff]  ;;  %v3447_v54 = vld [vmem:[%s5620_s0 + $0x40] sm:$0xff] }
 0x177   :  { %5789 = vst [vmem:[#allocation12_spill] sm:$0xff] %v4721_v61  ;;  %3268 = vmatmul.msk.f32.gmra.mxu2 %vm91_vm1, %v3442_v49  ;;  %v5800_v49 = vld [vmem:[#allocation43_spill] sm:$0xff] }
 0x178   :  { %3258 = vmatmul.msk.f32.gmra.mxu0 %vm91_vm1, %v4730_v42  ;;  %3263 = vmatmul.msk.f32.gmra.mxu1 %vm91_vm1, %v5773_v62 }
 0x179   :  { %3277 = vmatmul.msk.f32.gmra.mxu3 %vm91_vm1, %v3443_v60  ;;  %1997 = vmatpush.msra.mxu2 %v5791_v48 }
 0x17a   :  { %v1057_v28 = vpop.f32.mrf.mxu2 }
 0x17b   :  { %v4749_v32 = vadd.f32 %v1057_v28, %v1000_v23  ;;  %v3452_v23 = vld [vmem:[%s5620_s0 + $0xc0] sm:$0xff] }
 0x17c   :  { %v1098_v36 = vpop.f32.mrf.mxu3  ;;  %v4751_v39 = vpop.f32.mrf.mxu0 }
 0x17d   :  { %v4753_v62 = vadd.f32 %v1098_v36, %v1005_v5  ;;  %v1240_v3 = vpop.f32.mrf.mxu1 }
 0x17f   :  { %5792 = vst [vmem:[#allocation29_spill] sm:$0xff] %v4753_v62  ;;  %3269 = vmatmul.msk.f32.gmra.mxu2 %vm91_vm1, %v3444_v35  ;;  %v3453_v35 = vld [vmem:[%s5620_s0 + $0xc8] sm:$0xff] }
 0x180   :  { %3264 = vmatmul.msk.f32.gmra.mxu1 %vm91_vm1, %v5777_v6  ;;  %3281 = vmatmul.msk.f32.vlgmr.msra.gmra.mxu0 %vm91_vm1, %v5793_v20  ;;  %v3454_v20 = vld [vmem:[%s5620_s0 + $0x78] sm:$0xff] }
 0x181   :  { %3278 = vmatmul.msk.f32.gmra.mxu3 %vm91_vm1, %v3445_v16 }
 0x182   :  { %v1060_v26 = vpop.f32.mrf.mxu2 }
 0x183   :  { %v4769_v43 = vadd.f32 %v1060_v26, %v1002_v19 }
 0x184   :  { %v1310_v56 = vpop.f32.mrf.mxu3  ;;  %v1214_v40 = vpop.f32.mrf.mxu0 }
 0x185   :  { %5794 = vst [vmem:[#allocation37_spill] sm:$0xff] %v4769_v43  ;;  %v4771_v58 = vadd.f32 %v1310_v56, %v1240_v3  ;;  %v1243_v6 = vpop.f32.mrf.mxu1 }
 0x187   :  { %3270 = vmatmul.msk.f32.gmra.mxu2 %vm91_vm1, %v3443_v60 }
 0x188   :  { %3265 = vmatmul.msk.f32.gmra.mxu1 %vm91_vm1, %v4730_v42  ;;  %3282 = vmatmul.msk.f32.gmra.mxu0 %vm91_vm1, %v5795_v27  ;;  %v3456_v27 = vld [vmem:[%s5620_s0 + $0x80] sm:$0xff] }
 0x189   :  { %3279 = vmatmul.msk.f32.gmra.mxu3 %vm91_vm1, %v4107_v15 }
 0x18a   :  { %v1063_v29 = vpop.f32.mrf.mxu2 }
 0x18b   :  { %v4782_v7 = vadd.f32 %v1063_v29, %v1004_v1  ;;  %v2159_v1 = vld [vmem:[#allocation2 + $0xb8] sm:$0xff] }
 0x18c   :  { %v1313_v12 = vpop.f32.mrf.mxu3  ;;  %v1217_v11 = vpop.f32.mrf.mxu0 }
 0x18d   :  { %5796 = vst [vmem:[#allocation5_spill] sm:$0xff] %v4782_v7  ;;  %v4784_v50 = vadd.f32 %v1313_v12, %v1243_v6  ;;  %v1246_v0 = vpop.f32.mrf.mxu1  ;;  %v3455_v6 = vld [vmem:[%s5620_s0 + $0xd0] sm:$0xff] }
 0x18f   :  { %3271 = vmatmul.msk.f32.gmra.mxu2 %vm91_vm1, %v3445_v16 }
 0x190   :  { %3283 = vmatmul.msk.f32.gmra.mxu0 %vm91_vm1, %v5797_v34  ;;  %3288 = vmatmul.msk.f32.vlgmr.msra.gmra.mxu1 %vm91_vm1, %v3446_v30  ;;  %v2155_v30 = vld [vmem:[#allocation2 + $0x98] sm:$0xff] }
 0x191   :  { %3302 = vmatmul.msk.f32.vlgmr.msra.gmra.mxu3 %vm91_vm1, %v3447_v54 }
 0x192   :  { %v4797_v51 = vpop.f32.mrf.mxu2  ;;  %2301 = vmatpush.msra.mxu3 %v2159_v1  ;;  %v2141_v1 = vld [vmem:[#allocation2 + $0x28] sm:$0xff] }
 0x194   :  { %v1316_v55 = vpop.f32.mrf.mxu3  ;;  %v1220_v18 = vpop.f32.mrf.mxu0 }
 0x195   :  { %v4799_v47 = vadd.f32 %v1316_v55, %v1246_v0  ;;  %v1249_v17 = vpop.f32.mrf.mxu1  ;;  %v2153_v55 = vld [vmem:[#allocation2 + $0x88] sm:$0xff] }
 0x197   :  { %3272 = vmatmul.msk.f32.gmra.mxu2 %vm91_vm1, %v4107_v15 }
 0x198   :  { %3284 = vmatmul.msk.f32.gmra.mxu0 %vm91_vm1, %v5798_v57  ;;  %3289 = vmatmul.msk.f32.gmra.mxu1 %vm91_vm1, %v3448_v59  ;;  %v2149_v59 = vld [vmem:[#allocation2 + $0x68] sm:$0xff] }
 0x199   :  { %3303 = vmatmul.msk.f32.gmra.mxu3 %vm91_vm1, %v3449_v13 }
 0x19a   :  { %v4813_v44 = vpop.f32.mrf.mxu2 }
 0x19c   :  { %v1319_v52 = vpop.f32.mrf.mxu3  ;;  %v4815_v38 = vpop.f32.mrf.mxu0 }
 0x19d   :  { %v4817_v15 = vadd.f32 %v1319_v52, %v1249_v17  ;;  %v1252_v4 = vpop.f32.mrf.mxu1  ;;  %v2151_v17 = vld [vmem:[#allocation2 + $0x78] sm:$0xff] }
 0x19f   :  { %3295 = vmatmul.msk.f32.vlgmr.msrb.gmra.mxu2 %vm91_vm1, %v3447_v54  ;;  %v3322_v54 = vld [vmem:[%s5620_s0 + $0xb0] sm:$0xff] }
 0x1a0   :  { %3285 = vmatmul.msk.f32.gmra.mxu0 %vm91_vm1, %v5799_v9  ;;  %3290 = vmatmul.msk.f32.gmra.mxu1 %vm91_vm1, %v3450_v33  ;;  %v4912_v9 = vpop.permute.xlu1 %667  ;;  %v1276_v33 = vadd.f32 %v4797_v51, %v4688_v37  ;;  %v2156_v51 = vld [vmem:[#allocation2 + $0xa0] sm:$0xff] }
 0x1a1   :  { %3304 = vmatmul.msk.f32.gmra.mxu3 %vm91_vm1, %v3451_v8 }
 0x1a2   :  { %v4830_v31 = vpop.f32.mrf.mxu2 }
 0x1a4   :  { %v1322_v2 = vpop.f32.mrf.mxu3  ;;  %v4832_v45 = vpop.f32.mrf.mxu0 }
 0x1a5   :  { %v4834_v21 = vadd.f32 %v1322_v2, %v1252_v4  ;;  %v1255_v46 = vpop.f32.mrf.mxu1  ;;  %v3323_v4 = vld [vmem:[%s5620_s0 + $0xb8] sm:$0xff]  ;;  %v3458_v2 = vld [vmem:[%s5620_s0 + $0x90] sm:$0xff] }
 0x1a7   :  { %3296 = vmatmul.msk.f32.gmra.mxu2 %vm91_vm1, %v3449_v13 }
 0x1a8   :  { %3286 = vmatmul.msk.f32.gmra.mxu0 %vm91_vm1, %v5800_v49  ;;  %3291 = vmatmul.msk.f32.gmra.mxu1 %vm91_vm1, %v3452_v23  ;;  %v2145_v49 = vld [vmem:[#allocation2 + $0x48] sm:$0xff]  ;;  %v2158_v23 = vld [vmem:[#allocation2 + $0xb0] sm:$0xff] }
 0x1a9   :  { %3305 = vmatmul.msk.f32.gmra.mxu3 %vm91_vm1, %v4617_v24  ;;  %2272 = vmatpush.msrb.mxu2 %v2158_v23  ;;  %v664_v23 = vpop.permute.xlu2 %663 }
 0x1aa   :  { %v1284_v60 = vpop.f32.mrf.mxu2 }
 0x1ab   :  { %v4845_v48 = vadd.f32 %v1284_v60, %v1214_v40  ;;  %2273 = vmatpush.msrb.mxu2 %v2156_v51 }
 0x1ac   :  { %v1325_v28 = vpop.f32.mrf.mxu3  ;;  %v4847_v5 = vpop.f32.mrf.mxu0 }
 0x1ad   :  { %v4849_v36 = vadd.f32 %v1325_v28, %v1255_v46  ;;  %v4851_v3 = vpop.f32.mrf.mxu1  ;;  %v1398_v46 = vadd.f32 %v4815_v38, %v1276_v33  ;;  %v2154_v38 = vld [vmem:[#allocation2 + $0x90] sm:$0xff]  ;;  %v2137_v33 = vld [vmem:[#allocation2 + $0x8] sm:$0xff] }
 0x1ae   :  { %2274 = vmatpush.msrb.mxu2 %v2154_v38  ;;  %v1399_v51 = vadd.f32 %v4851_v3, %v4771_v58  ;;  %v2142_v38 = vld [vmem:[#allocation2 + $0x30] sm:$0xff] }
 0x1af   :  { %5801 = vst [vmem:[#allocation33_spill] sm:$0xff] %v4849_v36  ;;  %3297 = vmatmul.msk.f32.gmra.mxu2 %vm91_vm1, %v3451_v8  ;;  %v2147_v8 = vld [vmem:[#allocation2 + $0x58] sm:$0xff] }
 0x1b0   :  { %3292 = vmatmul.msk.f32.gmra.mxu1 %vm91_vm1, %v3453_v35  ;;  %3309 = vmatmul.msk.f32.vlgmr.msrb.gmra.mxu0 %vm91_vm1, %v3454_v20 }
 0x1b1   :  { %3306 = vmatmul.msk.f32.gmra.mxu3 %vm91_vm1, %v4641_v63 }
 0x1b2   :  { %v1287_v19 = vpop.f32.mrf.mxu2 }
 0x1b3   :  { %v4864_v16 = vadd.f32 %v1287_v19, %v1217_v11 }
 0x1b4   :  { %v4866_v26 = vpop.f32.mrf.mxu3  ;;  %v4868_v56 = vpop.f32.mrf.mxu0 }
 0x1b5   :  { %v4870_v40 = vpop.f32.mrf.mxu1 }
 0x1b7   :  { %3298 = vmatmul.msk.f32.gmra.mxu2 %vm91_vm1, %v4617_v24  ;;  %v2157_v24 = vld [vmem:[#allocation2 + $0xa8] sm:$0xff] }
 0x1b8   :  { %3293 = vmatmul.msk.f32.gmra.mxu1 %vm91_vm1, %v3455_v6  ;;  %3310 = vmatmul.msk.f32.gmra.mxu0 %vm91_vm1, %v3456_v27  ;;  %v3324_v6 = vld [vmem:[%s5620_s0 + $0xc0] sm:$0xff] }
 0x1b9   :  { %3307 = vmatmul.msk.f32.gmra.mxu3 %vm91_vm1, %v4378_v10 }
 0x1ba   :  { %v1290_v29 = vpop.f32.mrf.mxu2  ;;  %2302 = vmatpush.msra.mxu3 %v2157_v24  ;;  %v1279_v24 = vadd.f32 %v4813_v44, %v4719_v41  ;;  %v2148_v41 = vld [vmem:[#allocation2 + $0x60] sm:$0xff] }
 0x1bb   :  { %v4884_v12 = vadd.f32 %v1290_v29, %v1220_v18  ;;  %v3457_v18 = vld [vmem:[%s5620_s0 + $0x88] sm:$0xff]  ;;  %v2152_v29 = vld [vmem:[#allocation2 + $0x80] sm:$0xff] }
 0x1bc   :  { %v4886_v11 = vpop.f32.mrf.mxu3  ;;  %v4888_v0 = vpop.f32.mrf.mxu0  ;;  %2303 = vmatpush.msra.mxu3 %v2155_v30  ;;  %v3459_v30 = vld [vmem:[%s5620_s0 + $0x98] sm:$0xff]  ;;  %2275 = vmatpush.msrb.mxu2 %v2152_v29 }
 0x1bd   :  { %v4890_v34 = vpop.f32.mrf.mxu1 }
 0x1be   :  { %2304 = vmatpush.msra.mxu3 %v2153_v55  ;;  %v2139_v55 = vld [vmem:[#allocation2 + $0x18] sm:$0xff] }
 0x1bf   :  { %3299 = vmatmul.msk.f32.gmra.mxu2 %vm91_vm1, %v4641_v63 }
 0x1c0   :  { %3311 = vmatmul.msk.f32.gmra.mxu0 %vm91_vm1, %v3457_v18  ;;  %3316 = vmatmul.msk.f32.vlgmr.msrb.gmra.mxu1 %vm91_vm1, %v3454_v20 }
 0x1c1   :  { %3336 = vmatmul.msk.f32.vlgmr.msrb.gmra.mxu3 %vm91_vm1, %v3322_v54 }
 0x1c2   :  { %v1427_v57 = vpop.f32.mrf.mxu2  ;;  %2305 = vmatpush.msra.mxu3 %v2151_v17  ;;  %v1400_v17 = vadd.f32 %v4832_v45, %v1279_v24  ;;  %v3325_v45 = vld [vmem:[%s5620_s0 + $0xc8] sm:$0xff] }
 0x1c3   :  { %v1480_v37 = vadd.f32 %v1427_v57, %v1398_v46 }
 0x1c4   :  { %v4903_v13 = vpop.f32.mrf.mxu3  ;;  %v4905_v52 = vpop.f32.mrf.mxu0  ;;  %2306 = vmatpush.msra.mxu3 %v2149_v59 }
 0x1c5   :  { %v4907_v63 = vpop.f32.mrf.mxu1  ;;  %v660_v59 = vpop.permute.xlu0 %659 }
 0x1c6   :  { %2307 = vmatpush.msra.mxu3 %v2147_v8 }
 0x1c7   :  { %3300 = vmatmul.msk.f32.gmra.mxu2 %vm91_vm1, %v4378_v10  ;;  %v2143_v10 = vld [vmem:[#allocation2 + $0x38] sm:$0xff] }
 0x1c8   :  { %3312 = vmatmul.msk.f32.gmra.mxu0 %vm91_vm1, %v3458_v2  ;;  %3317 = vmatmul.msk.f32.gmra.mxu1 %vm91_vm1, %v3456_v27 }
 0x1c9   :  { %3337 = vmatmul.msk.f32.gmra.mxu3 %vm91_vm1, %v3323_v4  ;;  %v1128_v27 = vpop.permute.xlu1 %1127 }
 0x1ca   :  { %v1430_v60 = vpop.f32.mrf.mxu2  ;;  %2308 = vmatpush.msra.mxu3 %v2145_v49 }
 0x1cb   :  { %v1482_v44 = vadd.f32 %v1430_v60, %v1400_v17  ;;  %v2144_v60 = vld [vmem:[#allocation2 + $0x40] sm:$0xff]  ;;  %v670_v17 = vpop.permute.xlu2 %669 }
 0x1cc   :  { %v4925_v28 = vpop.f32.mrf.mxu3  ;;  %v1534_v35 = vpop.f32.mrf.mxu0  ;;  %2309 = vmatpush.msra.mxu3 %v2143_v10  ;;  %v2146_v10 = vld [vmem:[#allocation2 + $0x50] sm:$0xff] }
 0x1cd   :  { %v4927_v20 = vpop.f32.mrf.mxu1  ;;  %v4929_v19 = vadd.f32 %v1534_v35, %v1480_v37 }
 0x1ce   :  { %2310 = vmatpush.msra.mxu3 %v2141_v1  ;;  %v1481_v1 = vadd.f32 %v4866_v26, %v1399_v51  ;;  %v2138_v26 = vld [vmem:[#allocation2 + $0x10] sm:$0xff] }
 0x1cf   :  { %5802 = vst [vmem:[#allocation7_spill] sm:$0xff] %v4929_v19  ;;  %3329 = vmatmul.msk.f32.vlgmr.msra.gmra.mxu2 %vm91_vm1, %v3322_v54  ;;  %1611 = vrot.lane.b32.xlu2 %v4929_v19, %s3490_s3  ;;  %v2150_v54 = vld [vmem:[#allocation2 + $0x70] sm:$0xff] }
 0x1d0   :  { %3313 = vmatmul.msk.f32.gmra.mxu0 %vm91_vm1, %v3459_v30  ;;  %3318 = vmatmul.msk.f32.gmra.mxu1 %vm91_vm1, %v3457_v18 }
 0x1d1   :  { %3338 = vmatmul.msk.f32.gmra.mxu3 %vm91_vm1, %v3324_v6  ;;  %2276 = vmatpush.msrb.mxu2 %v2150_v54  ;;  %v2140_v54 = vld [vmem:[#allocation2 + $0x20] sm:$0xff] }
 0x1d2   :  { %v1433_v57 = vpop.f32.mrf.mxu2  ;;  %2311 = vmatpush.msra.mxu3 %v2139_v55  ;;  %v3326_v55 = vld [vmem:[%s5620_s0 + $0xd0] sm:$0xff] }
 0x1d3   :  { %2277 = vmatpush.msrb.mxu2 %v2148_v41 }
 0x1d4   :  { %v4946_v8 = vpop.f32.mrf.mxu3  ;;  %2312 = vmatpush.msra.mxu3 %v2137_v33  ;;  %v1282_v33 = vadd.f32 %v4830_v31, %v4751_v39  ;;  %v5806_v31 = vld [vmem:[#allocation45_spill] sm:$0xff] }
 0x1d5   :  { %v4948_v46 = vpop.f32.mrf.mxu1  ;;  %v1537_v18 = vpop.f32.mrf.mxu0  ;;  %2278 = vmatpush.msrb.mxu2 %v2146_v10 }
 0x1d6   :  { %5803 = vst [vmem:[#allocation9_spill] sm:$0xff] %v4948_v46  ;;  %v4950_v49 = vadd.f32 %v1537_v18, %v1482_v44  ;;  %v1401_v44 = vadd.f32 %v4870_v40, %v4784_v50  ;;  %v3327_v40 = vld [vmem:[%s5620_s0 + $0xd8] sm:$0xff] }
 0x1d7   :  { %3330 = vmatmul.msk.f32.gmra.mxu2 %vm91_vm1, %v3323_v4  ;;  %v1126_v37 = vpop.permute.xlu1 %1125  ;;  %v662_v4 = vpop.permute.xlu0 %661 }
 0x1d8   :  { %5804 = vst [vmem:[#allocation11_spill] sm:$0xff] %v4950_v49  ;;  %3314 = vmatmul.msk.f32.gmra.mxu0 %vm91_vm1, %v4730_v42  ;;  %3319 = vmatmul.msk.f32.gmra.mxu1 %vm91_vm1, %v3458_v2  ;;  %v1149_v3 = vsel %vm683_vm2, %v1126_v37, %v1128_v27  ;;  %v684_v41 = vsel %vm683_vm2, %v660_v59, %v662_v4  ;;  %v2136_v27 = vld [vmem:[#allocation2] sm:$0xff] }
 0x1d9   :  { %3339 = vmatmul.msk.f32.gmra.mxu3 %vm91_vm1, %v3325_v45  ;;  %1615 = vrot.lane.b32.xlu0 %v4950_v49, %s3490_s3  ;;  %v1161_v37 = vmax.f32 %v4658_v22, %v1149_v3  ;;  %v1483_v10 = vadd.f32 %v4886_v11, %v1401_v44  ;;  %v4996_v22 = vld [vmem:[%s5622_s2] ss:$0 sm:$0xff] }
 0x1da   :  { %v4964_v35 = vpop.f32.mrf.mxu2  ;;  %2279 = vmatpush.msrb.mxu2 %v2144_v60  ;;  %v696_v60 = vmax.f32 %v5806_v31, %v684_v41  ;;  %5807 = vst [vmem:[#allocation23_spill] sm:$0xff] %v4996_v22  ;;  %v5809_v41 = vld [vmem:[#allocation47_spill] sm:$0xff] }
 0x1dc   :  { %v4967_v29 = vpop.f32.mrf.mxu3  ;;  %2280 = vmatpush.msrb.mxu2 %v2142_v38  ;;  %v1132_v38 = vpop.permute.xlu2 %1131 }
 0x1dd   :  { %5805 = vst [vmem:[#allocation35_spill] sm:$0xff] %v4967_v29  ;;  %v1569_v2 = vpop.f32.mrf.mxu1 }
 0x1de   :  { %v1588_v24 = vadd.f32 %v1569_v2, %v1481_v1  ;;  %2281 = vmatpush.msrb.mxu2 %v2140_v54 }
 0x1df   :  { %3331 = vmatmul.msk.f32.gmra.mxu2 %vm91_vm1, %v3324_v6  ;;  %v1136_v58 = vpop.permute.xlu1 %1135  ;;  %v1540_v6 = vpop.f32.mrf.mxu0 }
 0x1e0   :  { %3320 = vmatmul.msk.f32.gmra.mxu1 %vm91_vm1, %v3459_v30  ;;  %1613 = vrot.lane.b32.xlu2 %v1588_v24, %s3490_s3  ;;  %v1402_v30 = vadd.f32 %v4847_v5, %v1282_v33  ;;  %v666_v51 = vpop.permute.xlu0 %665  ;;  %v1167_v5 = vmax.f32 %v696_v60, %v1161_v37  ;;  %v1403_v24 = vadd.f32 %v4890_v34, %v4799_v47  ;;  %v5810_v60 = vld [vmem:[#allocation50_spill] sm:$0xff] }
 0x1e1   :  { %3340 = vmatmul.msk.f32.gmra.mxu3 %vm91_vm1, %v3326_v55  ;;  %2282 = vmatpush.msrb.mxu2 %v2138_v26  ;;  %v685_v2 = vsel %vm683_vm2, %v664_v23, %v666_v51 }
 0x1e2   :  { %v4982_v18 = vpop.f32.mrf.mxu2  ;;  %v1484_v59 = vadd.f32 %v1433_v57, %v1402_v30  ;;  %v1485_v3 = vadd.f32 %v4903_v13, %v1403_v24  ;;  %v697_v44 = vmax.f32 %v5809_v41, %v685_v2 }
 0x1e3   :  { %2283 = vmatpush.msrb.mxu2 %v2136_v27 }
 0x1e4   :  { %v4987_v39 = vpop.f32.mrf.mxu3  ;;  %v4998_v11 = vadd.f32 %v1540_v6, %v1484_v59 }
 0x1e5   :  { %v1572_v4 = vpop.f32.mrf.mxu1 }
 0x1e6   :  { %v1590_v50 = vadd.f32 %v1572_v4, %v1483_v10  ;;  %5808 = vst [vmem:[#allocation14_spill] sm:$0xff] %v4998_v11 }
 0x1e7   :  { %3332 = vmatmul.msk.f32.gmra.mxu2 %vm91_vm1, %v3325_v45  ;;  %v1130_v1 = vpop.permute.xlu1 %1129  ;;  %v1176_v45 = vadd.f32 %v4996_v22, %v1167_v5  ;;  %v5016_v26 = vpop.f32.mrf.mxu0 }
 0x1e8   :  { %3321 = vmatmul.msk.f32.gmra.mxu1 %vm91_vm1, %v4730_v42  ;;  %1617 = vrot.lane.b32.xlu1 %v1590_v50, %s3490_s3  ;;  %v1150_v57 = vsel %vm683_vm2, %v1130_v1, %v1132_v38  ;;  %v1134_v6 = vpop.permute.xlu0 %1133 }
 0x1e9   :  { %3341 = vmatmul.msk.f32.gmra.mxu3 %vm91_vm1, %v3327_v40  ;;  %1619 = vrot.lane.b32.xlu2 %v4998_v11, %s3490_s3  ;;  %v1162_v42 = vmax.f32 %v4713_v25, %v1150_v57  ;;  %v1182_v30 = vmax.f32 %v1176_v45, 0.0  ;;  %v1151_v34 = vsel %vm683_vm2, %v1134_v6, %v1136_v58  ;;  %v686_v25 = vsel %vm683_vm2, %v4912_v9, %v670_v17 }
 0x1ea   :  { %v5011_v54 = vpop.f32.mrf.mxu2  ;;  %v1163_v10 = vmax.f32 %v4716_v14, %v1151_v34  ;;  %v698_v51 = vmax.f32 %v5810_v60, %v686_v25 }
 0x1eb   :  { %v1168_v47 = vmax.f32 %v697_v44, %v1162_v42 }
 0x1ec   :  { %v5018_v33 = vpop.f32.mrf.mxu3  ;;  %v1169_v4 = vmax.f32 %v698_v51, %v1163_v10 }
 0x1ed   :  { %v1575_v27 = vpop.f32.mrf.mxu1  ;;  %v1177_v37 = vadd.f32 %v4996_v22, %v1168_v47 }
 0x1ee   :  { %v1592_v23 = vadd.f32 %v1575_v27, %v1485_v3  ;;  %v1178_v14 = vadd.f32 %v4996_v22, %v1169_v4 }
 0x1ef   :  { %3333 = vmatmul.msk.f32.gmra.mxu2 %vm91_vm1, %v3326_v55  ;;  %v5036_v58 = vpop.f32.mrf.mxu0  ;;  %v5038_v59 = vmax.f32 %v1177_v37, 0.0 }
 0x1f0   :  { %1621 = vrot.lane.b32.xlu0 %v1592_v23, %s3490_s3  ;;  %v5050_v38 = vmax.f32 %v1178_v14, 0.0 }
 0x1f1   :  { %3354 = vmatmul.msk.f32.vlgmr.msra.gmra.mxu3 %vm2185_vm3, %v1182_v30  ;;  %5811 = vst [vmem:[#allocation38_spill] sm:$0xff] %v5038_v59 }
 0x1f2   :  { %v5027_v13 = vpop.f32.mrf.mxu2  ;;  %5812 = vst [vmem:[#allocation16_spill] sm:$0xff] %v5050_v38 }
 0x1f4   :  { %v5031_v31 = vpop.f32.mrf.mxu3 }
 0x1f5   :  { %v5034_v55 = vpop.f32.mrf.mxu1 }
 0x1f7   :  { %3334 = vmatmul.msk.f32.gmra.mxu2 %vm91_vm1, %v3327_v40  ;;  %v5053_v5 = vpop.f32.mrf.mxu0 }
 0x1f8   :  { %5813 = vst [vmem:[#allocation19_spill] sm:$0xff] %v5053_v5 }
 0x1f9   :  { %3355 = vmatmul.msk.f32.gmra.mxu3 %vm2185_vm3, %v5038_v59 }
 0x1fa   :  { %v5043_v9 = vpop.f32.mrf.mxu2 }
 0x1fc   :  { %v5046_v17 = vpop.f32.mrf.mxu3 }
 0x1fd   :  { %v5048_v50 = vpop.f32.mrf.mxu1 }
 0x1ff   :  { %3350 = vmatmul.msk.f32.vlgmr.msrb.gmra.mxu2 %vm2185_vm3, %v1182_v30  ;;  %v1740_v2 = vpop.f32.mrf.mxu0 }
 0x201   :  { %3356 = vmatmul.msk.f32.gmra.mxu3 %vm2185_vm3, %v5050_v38 }
 0x202   :  { %v5057_v40 = vpop.f32.mrf.mxu2 }
 0x204   :  { %v1717_v1 = vpop.f32.mrf.mxu3 }
 0x205   :  { %v5059_v57 = vpop.f32.mrf.mxu1 }
 0x206   :  { %5814 = vst [vmem:[#allocation20_spill] sm:$0xff] %v5059_v57 }
 0x207   :  { %3351 = vmatmul.msk.f32.gmra.mxu2 %vm2185_vm3, %v5038_v59  ;;  %v1743_v41 = vpop.f32.mrf.mxu0 }
 0x20a   :  { %v5063_v24 = vpop.f32.mrf.mxu2 }
 0x20c   :  { %v1720_v45 = vpop.f32.mrf.mxu3 }
 0x20d   :  { %v1775_v42 = vpop.f32.mrf.mxu1 }
 0x20e   :  { %v1776_v36 = vadd.f32 %v1775_v42, %v4987_v39  ;;  %v1741_v42 = vadd.f32 %v1740_v2, %v5027_v13  ;;  %v1744_v2 = vadd.f32 %v1743_v41, %v5043_v9 }
 0x20f   :  { %3352 = vmatmul.msk.f32.gmra.mxu2 %vm2185_vm3, %v5050_v38  ;;  %v1746_v47 = vpop.f32.mrf.mxu0 }
 0x212   :  { %v5067_v3 = vpop.f32.mrf.mxu2 }
 0x214   :  { %v1845_v44 = vpop.f32.mrf.mxu3 }
 0x215   :  { %v1778_v6 = vpop.f32.mrf.mxu1  ;;  %v1864_v61 = vadd.f32 %v1845_v44, %v1776_v36 }
 0x216   :  { %v1779_v5 = vadd.f32 %v1778_v6, %v5018_v33 }
 0x217   :  { %v5073_v10 = vpop.f32.mrf.mxu0 }
 0x21a   :  { %v5069_v27 = vpop.f32.mrf.mxu2 }
 0x21b   :  { %5815 = vst [vmem:[#allocation40_spill] sm:$0xff] %v5069_v27 }
 0x21c   :  { %v1848_v23 = vpop.f32.mrf.mxu3 }
 0x21d   :  { %v1781_v30 = vpop.f32.mrf.mxu1 }
 0x21f   :  { %v5077_v14 = vpop.f32.mrf.mxu0 }
 0x222   :  { %v1810_v34 = vpop.f32.mrf.mxu2 }
 0x224   :  { %v1851_v25 = vpop.f32.mrf.mxu3 }
 0x225   :  { %v5071_v37 = vpop.f32.mrf.mxu1 }
 0x227   :  { %v5083_v7 = vpop.f32.mrf.mxu0 }
 0x228   :  { %5816 = vst [vmem:[#allocation6_spill] sm:$0xff] %v5083_v7  ;;  %v5819_v7 = vld [vmem:[#allocation26_spill] sm:$0xff] }
 0x22a   :  { %v1813_v60 = vpop.f32.mrf.mxu2 }
 0x22c   :  { %v5075_v51 = vpop.f32.mrf.mxu3 }
 0x22d   :  { %v1787_v4 = vpop.f32.mrf.mxu1 }
 0x22e   :  { %v1788_v59 = vadd.f32 %v1787_v4, %v1717_v1 }
 0x232   :  { %v1816_v38 = vpop.f32.mrf.mxu2 }
 0x234   :  { %v1857_v11 = vpop.f32.mrf.mxu3 }
 0x235   :  { %v5079_v22 = vadd.f32 %v1857_v11, %v1788_v59  ;;  %v1790_v49 = vpop.f32.mrf.mxu1  ;;  %v1892_v11 = vpop.f32.mrf.mxu0 }
 0x236   :  { %v1791_v62 = vadd.f32 %v1790_v49, %v1720_v45  ;;  %v1866_v49 = vadd.f32 %v1848_v23, %v1779_v5  ;;  %v1404_v5 = vadd.f32 %v4868_v56, %v4845_v48 }
 0x23a   :  { %v5081_v19 = vpop.f32.mrf.mxu2 }
 0x23c   :  { %v1860_v57 = vpop.f32.mrf.mxu3 }
 0x23d   :  { %v5085_v29 = vadd.f32 %v1860_v57, %v1791_v62  ;;  %v1927_v46 = vpop.f32.mrf.mxu1 }
 0x23e   :  { %v1946_v43 = vadd.f32 %v1927_v46, %v1864_v61  ;;  %v1782_v61 = vadd.f32 %v1781_v30, %v5031_v31  ;;  %v1895_v46 = vpop.f32.mrf.mxu0 }
 0x23f   :  { %5817 = vst [vmem:[#allocation15_spill] sm:$0xff] %v5085_v29  ;;  %v5818_v29 = vld [vmem:[#allocation44_spill] sm:$0xff] }
 0x240   :  { %v642_v39 = vadd.f32 %v5819_v7, %v5818_v29  ;;  %v1868_v44 = vadd.f32 %v1851_v25, %v1782_v61  ;;  %v1486_v7 = vadd.f32 %v4964_v35, %v1404_v5 }
 0x242   :  { %v5088_v27 = vpop.f32.mrf.mxu2  ;;  %v5106_v31 = vadd.f32 %v5016_v26, %v1486_v7  ;;  %v1747_v26 = vadd.f32 %v1746_v47, %v5057_v40  ;;  %v2183_v7 = vld [vmem:[#allocation2 + $0x170] sm:$0xff] }
 0x243   :  { %2202 = vmatpush.msra.mxu0 %v2183_v7  ;;  %v2166_v7 = vld [vmem:[#allocation2 + $0xe8] sm:$0xff] }
 0x244   :  { %v2034_v1 = vpop.f32.mrf.mxu3  ;;  %v1867_v41 = vadd.f32 %v1816_v38, %v1747_v26  ;;  %v1750_v38 = vadd.f32 %v5073_v10, %v5063_v24  ;;  %v5827_v26 = vld [vmem:[#allocation37_spill] sm:$0xff] }
 0x245   :  { %v2053_v4 = vadd.f32 %v2034_v1, %v1946_v43  ;;  %v1930_v59 = vpop.f32.mrf.mxu1  ;;  %v1863_v43 = vadd.f32 %v1810_v34, %v1741_v42  ;;  %v1865_v34 = vadd.f32 %v1813_v60, %v1744_v2 }
 0x246   :  { %v1948_v62 = vadd.f32 %v1930_v59, %v1866_v49  ;;  %v1898_v56 = vpop.f32.mrf.mxu0 }
 0x247   :  { %2078 = vrot.lane.b32.xlu1 %v2053_v4, %s3490_s3  ;;  %v1945_v6 = vadd.f32 %v1892_v11, %v1863_v43  ;;  %v1947_v48 = vadd.f32 %v1895_v46, %v1865_v34  ;;  %v5820_v4 = vld [vmem:[#allocation48_spill] sm:$0xff]  ;;  %v1949_v60 = vadd.f32 %v1898_v56, %v1867_v41 }
 0x248   :  { %v5821_v11 = vld [vmem:[#allocation52_spill] sm:$0xff] }
 0x249   :  { %v5119_v9 = vadd.f32 %v5821_v11, %v5820_v4  ;;  %v2180_v34 = vld [vmem:[#allocation2 + $0x158] sm:$0xff]  ;;  %v5829_v4 = vld [vmem:[#allocation6_spill] sm:$0xff] }
 0x24a   :  { %v5092_v45 = vpop.f32.mrf.mxu2 }
 0x24c   :  { %v2037_v57 = vpop.f32.mrf.mxu3 }
 0x24d   :  { %v2055_v36 = vadd.f32 %v2037_v57, %v1948_v62  ;;  %v1933_v33 = vpop.f32.mrf.mxu1  ;;  %v1785_v57 = vadd.f32 %v5071_v37, %v5046_v17  ;;  %v1405_v17 = vadd.f32 %v4907_v63, %v4817_v15  ;;  %v1406_v15 = vadd.f32 %v4888_v0, %v4864_v16  ;;  %v5822_v0 = vld [vmem:[#allocation46_spill] sm:$0xff] }
 0x24e   :  { %v1950_v29 = vadd.f32 %v1933_v33, %v1868_v44  ;;  %v1901_v62 = vpop.f32.mrf.mxu0 }
 0x24f   :  { %673 = vrot.lane.b32.xlu1 %v642_v39, %s3490_s3  ;;  %2082 = vrot.lane.b32.xlu0 %v2055_v36, %s3490_s3  ;;  %v1870_v47 = vadd.f32 %v5075_v51, %v1785_v57  ;;  %v1869_v39 = vadd.f32 %v5081_v19, %v1750_v38  ;;  %v1487_v24 = vadd.f32 %v4925_v28, %v1405_v17 }
 0x250   :  { %v1753_v19 = vadd.f32 %v5077_v14, %v5067_v3  ;;  %v1407_v28 = vadd.f32 %v4927_v20, %v4834_v21  ;;  %v1488_v3 = vadd.f32 %v4982_v18, %v1406_v15  ;;  %v5823_v20 = vld [vmem:[#allocation28_spill] sm:$0xff]  ;;  %v5836_v15 = vld [vmem:[#allocation53_spill] sm:$0xff] }
 0x251   :  { %v1951_v42 = vadd.f32 %v1901_v62, %v1869_v39  ;;  %v1594_v51 = vadd.f32 %v5034_v55, %v1487_v24  ;;  %v644_v18 = vadd.f32 %v5823_v20, %v5822_v0  ;;  %v5832_v62 = vld [vmem:[#allocation9_spill] sm:$0xff]  ;;  %v5835_v24 = vld [vmem:[#allocation20_spill] sm:$0xff]  ;;  %v2170_v20 = vld [vmem:[#allocation2 + $0x108] sm:$0xff] }
 0x252   :  { %v1999_v23 = vpop.f32.mrf.mxu2  ;;  %v1489_v33 = vadd.f32 %v4946_v8, %v1407_v28  ;;  %v2169_v0 = vld [vmem:[#allocation2 + $0x100] sm:$0xff] }
 0x253   :  { %v5103_v1 = vadd.f32 %v1999_v23, %v1945_v6  ;;  %v5825_v6 = vld [vmem:[#allocation54_spill] sm:$0xff] }
 0x254   :  { %v2040_v13 = vpop.f32.mrf.mxu3  ;;  %v1596_v5 = vadd.f32 %v5048_v50, %v1489_v33  ;;  %v1408_v50 = vadd.f32 %v4905_v52, %v4884_v12  ;;  %v2177_v12 = vld [vmem:[#allocation2 + $0x140] sm:$0xff]  ;;  %v2178_v52 = vld [vmem:[#allocation2 + $0x148] sm:$0xff] }
 0x255   :  { %v2057_v30 = vadd.f32 %v2040_v13, %v1950_v29  ;;  %v1936_v40 = vpop.f32.mrf.mxu1  ;;  %v2184_v29 = vld [vmem:[#allocation2 + $0x178] sm:$0xff]  ;;  %v2181_v13 = vld [vmem:[#allocation2 + $0x160] sm:$0xff]  ;;  %v5840_v33 = vld [vmem:[#allocation30_spill] sm:$0xff] }
 0x256   :  { %v1952_v37 = vadd.f32 %v1936_v40, %v1870_v47  ;;  %v1904_v46 = vpop.f32.mrf.mxu0  ;;  %v1490_v2 = vadd.f32 %v5011_v54, %v1408_v50  ;;  %2231 = vmatpush.msra.mxu1 %v2184_v29  ;;  %2203 = vmatpush.msra.mxu0 %v2181_v13  ;;  %v5828_v54 = vld [vmem:[#allocation40_spill] sm:$0xff]  ;;  %v5833_v40 = vld [vmem:[#allocation15_spill] sm:$0xff] }
 0x257   :  { %1623 = vrot.lane.b32.xlu1 %v5106_v31, %s3490_s3  ;;  %2086 = vrot.lane.b32.xlu2 %v2057_v30, %s3490_s3  ;;  %v2179_v30 = vld [vmem:[#allocation2 + $0x150] sm:$0xff]  ;;  %v1756_v11 = vadd.f32 %v5829_v4, %v5828_v54  ;;  %v2164_v13 = vld [vmem:[#allocation2 + $0xd8] sm:$0xff] }
 0x258   :  { %2076 = vrot.lane.b32.xlu0 %v5103_v1, %s3490_s3  ;;  %2204 = vmatpush.msra.mxu0 %v2179_v30  ;;  %v2163_v29 = vld [vmem:[#allocation2 + $0xd0] sm:$0xff]  ;;  %v2162_v30 = vld [vmem:[#allocation2 + $0xc8] sm:$0xff] }
 0x259   :  { %v1873_v39 = vadd.f32 %v5092_v45, %v1756_v11  ;;  %v2174_v45 = vld [vmem:[#allocation2 + $0x128] sm:$0xff]  ;;  %v2349_v54 = vld [vmem:[#allocation2 + $0x230] sm:$0xff]  ;;  %v2350_v11 = vld [vmem:[#allocation2 + $0x238] sm:$0xff] }
 0x25a   :  { %v2002_v35 = vpop.f32.mrf.mxu2  ;;  %2205 = vmatpush.msra.mxu0 %v2177_v12  ;;  %v2444_v12 = vld [vmem:[#allocation2 + $0x2f8] sm:$0xff] }
 0x25b   :  { %v5114_v25 = vadd.f32 %v2002_v35, %v1947_v48  ;;  %v5826_v48 = vld [vmem:[#allocation19_spill] sm:$0xff]  ;;  %2481 = vmatpush.msrb.mxu3 %v2444_v12  ;;  %v2424_v12 = vld [vmem:[#allocation2 + $0x258] sm:$0xff] }
 0x25c   :  { %v2043_v36 = vpop.f32.mrf.mxu3  ;;  %v5184_v56 = vadd.f32 %v5826_v48, %v1490_v2  ;;  %v2161_v2 = vld [vmem:[#allocation2 + $0xc0] sm:$0xff]  ;;  %v5225_v48 = vpop.permute.xlu1 %1617 }
 0x25d   :  { %v2059_v10 = vadd.f32 %v2043_v36, %v1952_v37  ;;  %v1939_v16 = vpop.f32.mrf.mxu1  ;;  %v5834_v36 = vld [vmem:[#allocation35_spill] sm:$0xff] }
 0x25e   :  { %v1954_v8 = vadd.f32 %v1939_v16, %v5079_v22  ;;  %v2182_v22 = vld [vmem:[#allocation2 + $0x168] sm:$0xff]  ;;  %v1907_v38 = vpop.f32.mrf.mxu0  ;;  %v2171_v16 = vld [vmem:[#allocation2 + $0x110] sm:$0xff] }
 0x25f   :  { %2080 = vrot.lane.b32.xlu2 %v5114_v25, %s3490_s3  ;;  %2232 = vmatpush.msra.mxu1 %v2182_v22  ;;  %v5223_v22 = vpop.permute.xlu0 %1615 }
 0x260   :  { %671 = vrot.lane.b32.xlu0 %v5119_v9, %s3490_s3 }
 0x261   :  { %2233 = vmatpush.msra.mxu1 %v2180_v34  ;;  %v2443_v34 = vld [vmem:[#allocation2 + $0x2f0] sm:$0xff] }
 0x262   :  { %v2005_v59 = vpop.f32.mrf.mxu2  ;;  %2452 = vmatpush.msra.mxu2 %v2443_v34  ;;  %v2336_v34 = vld [vmem:[#allocation2 + $0x1c8] sm:$0xff] }
 0x263   :  { %v5125_v49 = vadd.f32 %v2005_v59, %v1949_v60  ;;  %2234 = vmatpush.msra.mxu1 %v2178_v52  ;;  %v5830_v60 = vld [vmem:[#allocation12_spill] sm:$0xff]  ;;  %v5831_v59 = vld [vmem:[#allocation33_spill] sm:$0xff] }
 0x264   :  { %v2046_v21 = vpop.f32.mrf.mxu3  ;;  %v1409_v57 = vadd.f32 %v5832_v62, %v5831_v59  ;;  %v2441_v52 = vld [vmem:[#allocation2 + $0x2e0] sm:$0xff]  ;;  %v2348_v62 = vld [vmem:[#allocation2 + $0x228] sm:$0xff] }
 0x265   :  { %2084 = vrot.lane.b32.xlu1 %v5125_v49, %s3490_s3  ;;  %v2061_v44 = vadd.f32 %v2046_v21, %v1954_v8  ;;  %v1942_v35 = vpop.f32.mrf.mxu1  ;;  %v2172_v21 = vld [vmem:[#allocation2 + $0x118] sm:$0xff]  ;;  %v5219_v8 = vpop.permute.xlu2 %1611  ;;  %2453 = vmatpush.msra.mxu2 %v2441_v52  ;;  %v2347_v59 = vld [vmem:[#allocation2 + $0x220] sm:$0xff] }
 0x266   :  { %v1956_v47 = vadd.f32 %v1942_v35, %v5833_v40  ;;  %v1491_v17 = vadd.f32 %v5834_v36, %v1409_v57  ;;  %v2442_v35 = vld [vmem:[#allocation2 + $0x2e8] sm:$0xff]  ;;  %v2437_v57 = vld [vmem:[#allocation2 + $0x2c0] sm:$0xff]  ;;  %v2345_v40 = vld [vmem:[#allocation2 + $0x210] sm:$0xff] }
 0x267   :  { %1137 = vrot.lane.b32.xlu2 %v4749_v32, %s3490_s3  ;;  %2482 = vmatpush.msrb.mxu3 %v2442_v35 }
 0x268   :  { %1139 = vrot.lane.b32.xlu0 %v4694_v53, %s3490_s3  ;;  %v1871_v53 = vadd.f32 %v5088_v27, %v1753_v19  ;;  %v5161_v27 = vadd.f32 %v5036_v58, %v1488_v3  ;;  %v5824_v58 = vld [vmem:[#allocation51_spill] sm:$0xff]  ;;  %v5839_v3 = vld [vmem:[#allocation49_spill] sm:$0xff] }
 0x269   :  { %v5175_v23 = vadd.f32 %v5825_v6, %v5824_v58  ;;  %v2175_v19 = vld [vmem:[#allocation2 + $0x130] sm:$0xff]  ;;  %v2168_v58 = vld [vmem:[#allocation2 + $0xf8] sm:$0xff]  ;;  %v2165_v6 = vld [vmem:[#allocation2 + $0xe0] sm:$0xff] }
 0x26a   :  { %v2008_v61 = vpop.f32.mrf.mxu2  ;;  %v1953_v63 = vadd.f32 %v1904_v46, %v1871_v53  ;;  %v2176_v46 = vld [vmem:[#allocation2 + $0x138] sm:$0xff]  ;;  %v2173_v53 = vld [vmem:[#allocation2 + $0x120] sm:$0xff]  ;;  %2206 = vmatpush.msra.mxu0 %v2175_v19 }
 0x26b   :  { %v5142_v43 = vadd.f32 %v2008_v61, %v1951_v42  ;;  %v1955_v61 = vadd.f32 %v1907_v38, %v1873_v39  ;;  %2235 = vmatpush.msra.mxu1 %v2176_v46  ;;  %v2438_v38 = vld [vmem:[#allocation2 + $0x2c8] sm:$0xff]  ;;  %v5229_v39 = vpop.permute.xlu0 %1621  ;;  %v2432_v19 = vld [vmem:[#allocation2 + $0x298] sm:$0xff] }
 0x26c   :  { %v2049_v41 = vpop.f32.mrf.mxu3  ;;  %2207 = vmatpush.msra.mxu0 %v2173_v53  ;;  %v2343_v53 = vld [vmem:[#allocation2 + $0x200] sm:$0xff] }
 0x26d   :  { %2090 = vrot.lane.b32.xlu1 %v2059_v10, %s3490_s3  ;;  %v2063_v37 = vadd.f32 %v2049_v41, %v1956_v47  ;;  %v1598_v10 = vadd.f32 %v5835_v24, %v1491_v17  ;;  %2236 = vmatpush.msra.mxu1 %v2174_v45  ;;  %v5221_v50 = vpop.permute.xlu2 %1613  ;;  %v2439_v41 = vld [vmem:[#allocation2 + $0x2d0] sm:$0xff]  ;;  %v2346_v47 = vld [vmem:[#allocation2 + $0x218] sm:$0xff]  ;;  %v2434_v24 = vld [vmem:[#allocation2 + $0x2a8] sm:$0xff] }
 0x26e   :  { %2208 = vmatpush.msra.mxu0 %v2171_v16  ;;  %2454 = vmatpush.msra.mxu2 %v2439_v41  ;;  %v2435_v17 = vld [vmem:[#allocation2 + $0x2b0] sm:$0xff]  ;;  %v2344_v45 = vld [vmem:[#allocation2 + $0x208] sm:$0xff] }
 0x26f   :  { %1625 = vrot.lane.b32.xlu2 %v1594_v51, %s3490_s3  ;;  %2237 = vmatpush.msra.mxu1 %v2172_v21  ;;  %v2430_v16 = vld [vmem:[#allocation2 + $0x288] sm:$0xff]  ;;  %v5842_v41 = vld [vmem:[#allocation7_spill] sm:$0xff] }
 0x270   :  { %2088 = vrot.lane.b32.xlu0 %v5142_v43, %s3490_s3  ;;  %2209 = vmatpush.msra.mxu0 %v2169_v0  ;;  %v2427_v0 = vld [vmem:[#allocation2 + $0x270] sm:$0xff] }
 0x271   :  { %2238 = vmatpush.msra.mxu1 %v2170_v20  ;;  %2455 = vmatpush.msra.mxu2 %v2437_v57  ;;  %v2428_v20 = vld [vmem:[#allocation2 + $0x278] sm:$0xff] }
 0x272   :  { %v2011_v55 = vpop.f32.mrf.mxu2 }
 0x273   :  { %v5157_v14 = vadd.f32 %v2011_v55, %v1953_v63  ;;  %v5837_v63 = vld [vmem:[#allocation27_spill] sm:$0xff]  ;;  %v5838_v55 = vld [vmem:[#allocation5_spill] sm:$0xff]  ;;  %2239 = vmatpush.msra.mxu1 %v2168_v58  ;;  %2456 = vmatpush.msra.mxu2 %v2435_v17  ;;  %v2426_v58 = vld [vmem:[#allocation2 + $0x268] sm:$0xff] }
 0x274   :  { %v5208_v28 = vadd.f32 %v5837_v63, %v5836_v15  ;;  %v2341_v15 = vld [vmem:[#allocation2 + $0x1f0] sm:$0xff]  ;;  %v2342_v63 = vld [vmem:[#allocation2 + $0x1f8] sm:$0xff] }
 0x275   :  { %2092 = vrot.lane.b32.xlu1 %v5157_v14, %s3490_s3  ;;  %2240 = vmatpush.msra.mxu1 %v2166_v7  ;;  %v5227_v4 = vpop.permute.xlu2 %1619  ;;  %v2337_v7 = vld [vmem:[#allocation2 + $0x1d0] sm:$0xff] }
 0x277   :  { %1627 = vrot.lane.b32.xlu2 %v5161_v27, %s3490_s3  ;;  %2241 = vmatpush.msra.mxu1 %v2164_v13  ;;  %v2423_v13 = vld [vmem:[#allocation2 + $0x250] sm:$0xff] }
 0x278   :  { %1629 = vrot.lane.b32.xlu0 %v1596_v5, %s3490_s3  ;;  %v646_v5 = vadd.f32 %v5840_v33, %v5839_v3  ;;  %v2339_v3 = vld [vmem:[#allocation2 + $0x1e0] sm:$0xff]  ;;  %v2340_v33 = vld [vmem:[#allocation2 + $0x1e8] sm:$0xff] }
 0x279   :  { %2242 = vmatpush.msra.mxu1 %v2162_v30  ;;  %v2335_v30 = vld [vmem:[#allocation2 + $0x1c0] sm:$0xff] }
 0x27a   :  { %v2014_v42 = vpop.f32.mrf.mxu2 }
 0x27b   :  { %v5201_v51 = vadd.f32 %v2014_v42, %v1955_v61  ;;  %2387 = vmatpush.msrb.mxu1 %v2350_v11  ;;  %v2433_v61 = vld [vmem:[#allocation2 + $0x2a0] sm:$0xff]  ;;  %v2334_v11 = vld [vmem:[#allocation2 + $0x1b8] sm:$0xff] }
 0x27c   :  { %2457 = vmatpush.msra.mxu2 %v2433_v61 }
 0x27d   :  { %677 = vrot.lane.b32.xlu1 %v644_v18, %s3490_s3  ;;  %v5841_v18 = vld [vmem:[#allocation29_spill] sm:$0xff]  ;;  %2388 = vmatpush.msrb.mxu1 %v2348_v62  ;;  %v1636_v62 = vsel %vm683_vm2, %v5223_v22, %v5225_v48  ;;  %v2329_v48 = vld [vmem:[#allocation2 + $0x190] sm:$0xff] }
 0x27f   :  { %2094 = vrot.lane.b32.xlu2 %v2061_v44, %s3490_s3  ;;  %v2167_v44 = vld [vmem:[#allocation2 + $0xf0] sm:$0xff]  ;;  %2389 = vmatpush.msrb.mxu1 %v2346_v47  ;;  %v2332_v47 = vld [vmem:[#allocation2 + $0x1a8] sm:$0xff] }
 0x280   :  { %675 = vrot.lane.b32.xlu0 %v5175_v23, %s3490_s3  ;;  %2210 = vmatpush.msra.mxu0 %v2167_v44  ;;  %v2425_v44 = vld [vmem:[#allocation2 + $0x260] sm:$0xff] }
 0x281   :  { %2390 = vmatpush.msrb.mxu1 %v2344_v45  ;;  %v2327_v45 = vld [vmem:[#allocation2 + $0x180] sm:$0xff] }
 0x282   :  { %2211 = vmatpush.msra.mxu0 %v2165_v6  ;;  %v1635_v6 = vsel %vm683_vm2, %v5219_v8, %v5221_v50  ;;  %v2421_v50 = vld [vmem:[#allocation2 + $0x240] sm:$0xff] }
 0x283   :  { %2391 = vmatpush.msrb.mxu1 %v2342_v63  ;;  %v2629_v63 = vld [vmem:[#allocation2 + $0x460] sm:$0xff] }
 0x284   :  { %2212 = vmatpush.msra.mxu0 %v2163_v29  ;;  %v2338_v29 = vld [vmem:[#allocation2 + $0x1d8] sm:$0xff] }
 0x285   :  { %1631 = vrot.lane.b32.xlu1 %v5184_v56, %s3490_s3  ;;  %2392 = vmatpush.msrb.mxu1 %v2340_v33  ;;  %v2537_v33 = vld [vmem:[#allocation2 + $0x3b0] sm:$0xff] }
 0x286   :  { %2213 = vmatpush.msra.mxu0 %v2161_v2 }
 0x287   :  { %1141 = vrot.lane.b32.xlu2 %v5827_v26, %s3490_s3  ;;  %2393 = vmatpush.msrb.mxu1 %v2338_v29  ;;  %v2626_v29 = vld [vmem:[#allocation2 + $0x448] sm:$0xff] }
 0x288   :  { %1143 = vrot.lane.b32.xlu0 %v5830_v60, %s3490_s3  ;;  %2358 = vmatpush.msrb.mxu0 %v2349_v54  ;;  %v2440_v60 = vld [vmem:[#allocation2 + $0x2d8] sm:$0xff]  ;;  %v2333_v54 = vld [vmem:[#allocation2 + $0x1b0] sm:$0xff] }
 0x289   :  { %2483 = vmatpush.msrb.mxu3 %v2440_v60  ;;  %v1647_v60 = vmax.f32 %v5842_v41, %v1635_v6  ;;  %2394 = vmatpush.msrb.mxu1 %v2336_v34  ;;  %v2624_v41 = vld [vmem:[#allocation2 + $0x438] sm:$0xff] }
 0x28a   :  { %2359 = vmatpush.msrb.mxu0 %v2347_v59  ;;  %v2422_v59 = vld [vmem:[#allocation2 + $0x248] sm:$0xff] }
 0x28b   :  { %2484 = vmatpush.msrb.mxu3 %v2438_v38  ;;  %2395 = vmatpush.msrb.mxu1 %v2334_v11 }
 0x28c   :  { %2360 = vmatpush.msrb.mxu0 %v2345_v40 }
 0x28d   :  { %2098 = vrot.lane.b32.xlu1 %v2063_v37, %s3490_s3  ;;  %v2436_v37 = vld [vmem:[#allocation2 + $0x2b8] sm:$0xff]  ;;  %2396 = vmatpush.msrb.mxu1 %v2332_v47 }
 0x28e   :  { %2485 = vmatpush.msrb.mxu3 %v2436_v37  ;;  %2361 = vmatpush.msrb.mxu0 %v2343_v53  ;;  %v5844_v37 = vld [vmem:[#allocation23_spill] sm:$0xff]  ;;  %v2632_v53 = vld [vmem:[#allocation2 + $0x478] sm:$0xff] }
 0x28f   :  { %1633 = vrot.lane.b32.xlu2 %v1598_v10, %s3490_s3  ;;  %v2431_v10 = vld [vmem:[#allocation2 + $0x290] sm:$0xff] }
 0x290   :  { %2096 = vrot.lane.b32.xlu0 %v5201_v51, %s3490_s3  ;;  %2486 = vmatpush.msrb.mxu3 %v2434_v24  ;;  %v2330_v24 = vld [vmem:[#allocation2 + $0x198] sm:$0xff] }
 0x291   :  { %2458 = vmatpush.msra.mxu2 %v2431_v10  ;;  %2362 = vmatpush.msrb.mxu0 %v2341_v15  ;;  %v2328_v15 = vld [vmem:[#allocation2 + $0x188] sm:$0xff] }
 0x292   :  { %2487 = vmatpush.msrb.mxu3 %v2432_v19  ;;  %2397 = vmatpush.msrb.mxu1 %v2330_v24 }
 0x293   :  { %2363 = vmatpush.msrb.mxu0 %v2339_v3  ;;  %v2630_v3 = vld [vmem:[#allocation2 + $0x468] sm:$0xff] }
 0x294   :  { %2488 = vmatpush.msrb.mxu3 %v2430_v16  ;;  %2398 = vmatpush.msrb.mxu1 %v2328_v15  ;;  %v2627_v16 = vld [vmem:[#allocation2 + $0x450] sm:$0xff]  ;;  %v2528_v15 = vld [vmem:[#allocation2 + $0x368] sm:$0xff] }
 0x295   :  { %1145 = vrot.lane.b32.xlu1 %v5838_v55, %s3490_s3  ;;  %2364 = vmatpush.msrb.mxu0 %v2337_v7  ;;  %v2625_v7 = vld [vmem:[#allocation2 + $0x440] sm:$0xff] }
 0x296   :  { %2489 = vmatpush.msrb.mxu3 %v2428_v20 }
 0x297   :  { %679 = vrot.lane.b32.xlu2 %v5208_v28, %s3490_s3  ;;  %2365 = vmatpush.msrb.mxu0 %v2335_v30 }
 0x298   :  { %681 = vrot.lane.b32.xlu0 %v646_v5, %s3490_s3  ;;  %v2429_v5 = vld [vmem:[#allocation2 + $0x280] sm:$0xff]  ;;  %2490 = vmatpush.msrb.mxu3 %v2426_v58  ;;  %v2536_v58 = vld [vmem:[#allocation2 + $0x3a8] sm:$0xff] }
 0x299   :  { %2459 = vmatpush.msra.mxu2 %v2429_v5  ;;  %2366 = vmatpush.msrb.mxu0 %v2333_v54  ;;  %v2538_v5 = vld [vmem:[#allocation2 + $0x3b8] sm:$0xff] }
 0x29a   :  { %2491 = vmatpush.msrb.mxu3 %v2424_v12 }
 0x29b   :  { %2460 = vmatpush.msra.mxu2 %v2427_v0  ;;  %v1637_v0 = vsel %vm683_vm2, %v5227_v4, %v5229_v39 }
 0x29c   :  { %2492 = vmatpush.msrb.mxu3 %v2422_v59 }
 0x29d   :  { %2461 = vmatpush.msra.mxu2 %v2425_v44  ;;  %v2535_v44 = vld [vmem:[#allocation2 + $0x3a0] sm:$0xff] }
 0x29e   :  { %2669 = vmatpush.msra.mxu3 %v2632_v53  ;;  %v2615_v53 = vld [vmem:[#allocation2 + $0x3f0] sm:$0xff] }
 0x29f   :  { %1147 = vrot.lane.b32.xlu2 %v5841_v18, %s3490_s3  ;;  %2462 = vmatpush.msra.mxu2 %v2423_v13 }
 0x2a0   :  { %2670 = vmatpush.msra.mxu3 %v2630_v3  ;;  %v2616_v3 = vld [vmem:[#allocation2 + $0x3f8] sm:$0xff] }
 0x2a1   :  { %2463 = vmatpush.msra.mxu2 %v2421_v50  ;;  %v2622_v50 = vld [vmem:[#allocation2 + $0x428] sm:$0xff] }
 0x2b1   :  { %v5231_v42 = vpop.permute.xlu2 %2086 }
 0x2b9   :  { %v2079_v36 = vpop.permute.xlu1 %2078  ;;  %v2081_v18 = vpop.permute.xlu2 %2080 }
 0x2c1   :  { %v2083_v46 = vpop.permute.xlu0 %2082  ;;  %v5233_v21 = vpop.permute.xlu1 %673 }
 0x2c2   :  { %v2101_v52 = vsel %vm683_vm2, %v2081_v18, %v2083_v46  ;;  %v1138_v22 = vpop.permute.xlu2 %1137  ;;  %v2631_v46 = vld [vmem:[#allocation2 + $0x470] sm:$0xff]  ;;  %v2628_v18 = vld [vmem:[#allocation2 + $0x458] sm:$0xff] }
 0x2c3   :  { %v2113_v57 = vmax.f32 %v5114_v25, %v2101_v52  ;;  %2640 = vmatpush.msrb.mxu2 %v2631_v46  ;;  %2671 = vmatpush.msra.mxu3 %v2628_v18  ;;  %v2530_v46 = vld [vmem:[#allocation2 + $0x378] sm:$0xff]  ;;  %v2611_v18 = vld [vmem:[#allocation2 + $0x3d0] sm:$0xff] }
 0x2c5   :  { %2641 = vmatpush.msrb.mxu2 %v2629_v63  ;;  %2672 = vmatpush.msra.mxu3 %v2626_v29 }
 0x2c7   :  { %2642 = vmatpush.msrb.mxu2 %v2627_v16  ;;  %2673 = vmatpush.msra.mxu3 %v2624_v41  ;;  %v2515_v41 = vld [vmem:[#allocation2 + $0x300] sm:$0xff] }
 0x2c9   :  { %v5246_v40 = vpop.permute.xlu1 %1623  ;;  %2643 = vmatpush.msrb.mxu2 %v2625_v7  ;;  %2674 = vmatpush.msra.mxu3 %v2622_v50  ;;  %v2609_v7 = vld [vmem:[#allocation2 + $0x3c0] sm:$0xff] }
 0x2ca   :  { %v2077_v2 = vpop.permute.xlu0 %2076  ;;  %v1626_v52 = vpop.permute.xlu2 %1625 }
 0x2cb   :  { %v2100_v35 = vsel %vm683_vm2, %v2077_v2, %v2079_v36  ;;  %v5843_v36 = vld [vmem:[#allocation11_spill] sm:$0xff]  ;;  %v5845_v2 = vld [vmem:[#allocation14_spill] sm:$0xff] }
 0x2cc   :  { %v2112_v8 = vmax.f32 %v5103_v1, %v2100_v35  ;;  %v2331_v1 = vld [vmem:[#allocation2 + $0x1a0] sm:$0xff]  ;;  %v1648_v17 = vmax.f32 %v5843_v36, %v1636_v62  ;;  %v1649_v30 = vmax.f32 %v5845_v2, %v1637_v0  ;;  %v1638_v62 = vsel %vm683_vm2, %v5246_v40, %v1626_v52  ;;  %v2620_v40 = vld [vmem:[#allocation2 + $0x418] sm:$0xff]  ;;  %v2525_v0 = vld [vmem:[#allocation2 + $0x350] sm:$0xff] }
 0x2cd   :  { %2367 = vmatpush.msrb.mxu0 %v2331_v1  ;;  %v2619_v1 = vld [vmem:[#allocation2 + $0x410] sm:$0xff]  ;;  %2675 = vmatpush.msra.mxu3 %v2620_v40  ;;  %v2522_v2 = vld [vmem:[#allocation2 + $0x338] sm:$0xff] }
 0x2ce   :  { %v2118_v38 = vmax.f32 %v1647_v60, %v2112_v8  ;;  %v2119_v10 = vmax.f32 %v1648_v17, %v2113_v57  ;;  %v2621_v8 = vld [vmem:[#allocation2 + $0x420] sm:$0xff]  ;;  %v2533_v57 = vld [vmem:[#allocation2 + $0x390] sm:$0xff] }
 0x2cf   :  { %2368 = vmatpush.msrb.mxu0 %v2329_v48  ;;  %v1650_v48 = vmax.f32 %v5106_v31, %v1638_v62 }
 0x2d0   :  { %v2124_v61 = vadd.f32 %v5844_v37, %v2118_v38  ;;  %v2125_v20 = vadd.f32 %v5844_v37, %v2119_v10  ;;  %v2534_v38 = vld [vmem:[#allocation2 + $0x398] sm:$0xff]  ;;  %v2617_v10 = vld [vmem:[#allocation2 + $0x400] sm:$0xff] }
 0x2d1   :  { %2369 = vmatpush.msrb.mxu0 %v2327_v45  ;;  %v2527_v45 = vld [vmem:[#allocation2 + $0x360] sm:$0xff] }
 0x2d2   :  { %v2130_v25 = vmax.f32 %v2124_v61, 0.0  ;;  %v672_v19 = vpop.permute.xlu0 %671  ;;  %v5262_v34 = vmax.f32 %v2125_v20, 0.0  ;;  %v2531_v61 = vld [vmem:[#allocation2 + $0x380] sm:$0xff]  ;;  %v2526_v20 = vld [vmem:[#allocation2 + $0x358] sm:$0xff] }
 0x2d3   :  { %v687_v4 = vsel %vm683_vm2, %v672_v19, %v5233_v21  ;;  %v2623_v21 = vld [vmem:[#allocation2 + $0x430] sm:$0xff] }
 0x2d4   :  { %3342 = vmatmul.msk.f32.vlgmr.msra.gmra.mxu0 %vm2185_vm3, %v2130_v25  ;;  %3346 = vmatmul.msk.f32.vlgmr.msra.gmra.mxu1 %vm2185_vm3, %v2130_v25  ;;  %v699_v54 = vmax.f32 %v5119_v9, %v687_v4  ;;  %v1628_v25 = vpop.permute.xlu2 %1627  ;;  %v2529_v19 = vld [vmem:[#allocation2 + $0x370] sm:$0xff]  ;;  %v2610_v4 = vld [vmem:[#allocation2 + $0x3c8] sm:$0xff] }
 0x2d5   :  { %2546 = vmatpush.msra.mxu0 %v2537_v33  ;;  %2575 = vmatpush.msra.mxu1 %v2538_v5  ;;  %v2613_v33 = vld [vmem:[#allocation2 + $0x3e0] sm:$0xff] }
 0x2d6   :  { %2644 = vmatpush.msrb.mxu2 %v2623_v21 }
 0x2d7   :  { %v2085_v6 = vpop.permute.xlu1 %2084  ;;  %2547 = vmatpush.msra.mxu0 %v2535_v44  ;;  %2576 = vmatpush.msra.mxu1 %v2536_v58  ;;  %v2523_v44 = vld [vmem:[#allocation2 + $0x340] sm:$0xff]  ;;  %v2524_v58 = vld [vmem:[#allocation2 + $0x348] sm:$0xff] }
 0x2d8   :  { %v2102_v13 = vsel %vm683_vm2, %v2085_v6, %v5231_v42  ;;  %2645 = vmatpush.msrb.mxu2 %v2621_v8  ;;  %v2612_v6 = vld [vmem:[#allocation2 + $0x3d8] sm:$0xff] }
 0x2d9   :  { %v2114_v39 = vmax.f32 %v5125_v49, %v2102_v13  ;;  %2548 = vmatpush.msra.mxu0 %v2533_v57  ;;  %2577 = vmatpush.msra.mxu1 %v2534_v38  ;;  %v2521_v13 = vld [vmem:[#allocation2 + $0x330] sm:$0xff]  ;;  %v5847_v57 = vld [vmem:[#allocation16_spill] sm:$0xff]  ;;  %v3460_v38 = vld [vmem:[%s5622_s2] ss:$0 sm:$0xff]  ;;  %s3491_s2 = smov 64  }
 0x2da   :  { %v1140_v12 = vpop.permute.xlu0 %1139  ;;  %2646 = vmatpush.msrb.mxu2 %v2619_v1 }
 0x2db   :  { %v2120_v35 = vmax.f32 %v1649_v30, %v2114_v39  ;;  %v1152_v42 = vsel %vm683_vm2, %v1138_v22, %v1140_v12  ;;  %v2532_v22 = vld [vmem:[#allocation2 + $0x388] sm:$0xff]  ;;  %2549 = vmatpush.msra.mxu0 %v2531_v61 }
 0x2dc   :  { %v1164_v11 = vmax.f32 %v4749_v32, %v1152_v42  ;;  %3343 = vmatmul.msk.f32.gmra.mxu0 %vm2185_vm3, %v5262_v34  ;;  %3347 = vmatmul.msk.f32.gmra.mxu1 %vm2185_vm3, %v5262_v34  ;;  %v2095_v29 = vpop.permute.xlu2 %2094  ;;  %v2520_v12 = vld [vmem:[#allocation2 + $0x328] sm:$0xff] }
 0x2dd   :  { %v2126_v49 = vadd.f32 %v5844_v37, %v2120_v35  ;;  %2578 = vmatpush.msra.mxu1 %v2532_v22  ;;  %2647 = vmatpush.msrb.mxu2 %v2617_v10  ;;  %v5846_v42 = vld [vmem:[#allocation38_spill] sm:$0xff] }
 0x2de   :  { %v1170_v60 = vmax.f32 %v699_v54, %v1164_v11  ;;  %2550 = vmatpush.msra.mxu0 %v2529_v19  ;;  %v2517_v54 = vld [vmem:[#allocation2 + $0x310] sm:$0xff]  ;;  %v2518_v11 = vld [vmem:[#allocation2 + $0x318] sm:$0xff] }
 0x2df   :  { %v5272_v59 = vmax.f32 %v2126_v49, 0.0  ;;  %v2091_v32 = vpop.permute.xlu1 %2090  ;;  %2579 = vmatpush.msra.mxu1 %v2530_v46  ;;  %2648 = vmatpush.msrb.mxu2 %v2615_v53 }
 0x2e0   :  { %v1179_v9 = vadd.f32 %v5844_v37, %v1170_v60  ;;  %2551 = vmatpush.msra.mxu0 %v2527_v45  ;;  %v2516_v60 = vld [vmem:[#allocation2 + $0x308] sm:$0xff] }
 0x2e1   :  { %2580 = vmatpush.msra.mxu1 %v2528_v15  ;;  %2649 = vmatpush.msrb.mxu2 %v2613_v33 }
 0x2e2   :  { %v5277_v47 = vmax.f32 %v1179_v9, 0.0  ;;  %v2089_v36 = vpop.permute.xlu0 %2088  ;;  %2552 = vmatpush.msra.mxu0 %v2525_v0 }
 0x2e3   :  { %v2103_v17 = vsel %vm683_vm2, %v2089_v36, %v2091_v32  ;;  %2581 = vmatpush.msra.mxu1 %v2526_v20  ;;  %2650 = vmatpush.msrb.mxu2 %v2611_v18 }
 0x2e4   :  { %v2115_v24 = vmax.f32 %v5142_v43, %v2103_v17  ;;  %3344 = vmatmul.msk.f32.gmra.mxu0 %vm2185_vm3, %v5272_v59  ;;  %3348 = vmatmul.msk.f32.gmra.mxu1 %vm2185_vm3, %v5272_v59  ;;  %v2618_v43 = vld [vmem:[#allocation2 + $0x408] sm:$0xff]  ;;  %v1142_v8 = vpop.permute.xlu2 %1141 }
 0x2e5   :  { %3353 = vmatmul.msk.f32.gmra.mxu2 %vm2185_vm3, %v5277_v47  ;;  %3357 = vmatmul.msk.f32.gmra.mxu3 %vm2185_vm3, %v5277_v47 }
 0x2e6   :  { %v2121_v31 = vmax.f32 %v1650_v48, %v2115_v24  ;;  %2676 = vmatpush.msra.mxu3 %v2618_v43  ;;  %2553 = vmatpush.msra.mxu0 %v2523_v44 }
 0x2e7   :  { %v2093_v30 = vpop.permute.xlu1 %2092  ;;  %2582 = vmatpush.msra.mxu1 %v2524_v58  ;;  %2651 = vmatpush.msrb.mxu2 %v2609_v7 }
 0x2e8   :  { %v2127_v63 = vadd.f32 %v5844_v37, %v2121_v31  ;;  %2677 = vmatpush.msra.mxu3 %v2616_v3  ;;  %v2614_v37 = vld [vmem:[#allocation2 + $0x3e8] sm:$0xff]  ;;  %2554 = vmatpush.msra.mxu0 %v2521_v13  ;;  %v2104_v52 = vsel %vm683_vm2, %v2093_v30, %v2095_v29 }
 0x2e9   :  { %2583 = vmatpush.msra.mxu1 %v2522_v2  ;;  %v2116_v49 = vmax.f32 %v5157_v14, %v2104_v52 }
 0x2ea   :  { %v5291_v5 = vmax.f32 %v2127_v63, 0.0  ;;  %v1630_v16 = vpop.permute.xlu0 %1629  ;;  %2678 = vmatpush.msra.mxu3 %v2614_v37 }
 0x2eb   :  { %v1639_v35 = vsel %vm683_vm2, %v1628_v25, %v1630_v16  ;;  %2584 = vmatpush.msra.mxu1 %v2520_v12 }
 0x2ec   :  { %3345 = vmatmul.msk.f32.gmra.mxu0 %vm2185_vm3, %v5291_v5  ;;  %3349 = vmatmul.msk.f32.gmra.mxu1 %vm2185_vm3, %v5291_v5  ;;  %v1651_v21 = vmax.f32 %v5161_v27, %v1639_v35 }
 0x2ed   :  { %3366 = vmatmul.msk.f32.vlgmr.msra.gmra.mxu2 %vm2185_vm3, %v5262_v34  ;;  %3370 = vmatmul.msk.f32.vlgmr.msrb.gmra.mxu3 %vm2185_vm3, %v5262_v34  ;;  %v2519_v34 = vld [vmem:[#allocation2 + $0x320] sm:$0xff] }
 0x2ee   :  { %2679 = vmatpush.msra.mxu3 %v2612_v6  ;;  %2555 = vmatpush.msra.mxu0 %v2519_v34  ;;  %v2122_v32 = vmax.f32 %v1651_v21, %v2116_v49 }
 0x2ef   :  { %2585 = vmatpush.msra.mxu1 %v2518_v11  ;;  %v678_v50 = vpop.permute.xlu1 %677 }
 0x2f0   :  { %2680 = vmatpush.msra.mxu3 %v2610_v4  ;;  %2556 = vmatpush.msra.mxu0 %v2517_v54  ;;  %v2128_v1 = vadd.f32 %v3460_v38, %v2122_v32 }
 0x2f1   :  { %2586 = vmatpush.msra.mxu1 %v2516_v60 }
 0x2f2   :  { %v676_v39 = vpop.permute.xlu0 %675  ;;  %2557 = vmatpush.msra.mxu0 %v2515_v41  ;;  %v2134_v61 = vmax.f32 %v2128_v1, 0.0 }
 0x2f3   :  { %v688_v14 = vsel %vm683_vm2, %v676_v39, %v678_v50 }
 0x2f4   :  { %3358 = vmatmul.msk.f32.vlgmr.msrb.gmra.mxu0 %vm2185_vm3, %v5846_v42  ;;  %3362 = vmatmul.msk.f32.vlgmr.msrb.gmra.mxu1 %vm2185_vm3, %v5846_v42  ;;  %v700_v36 = vmax.f32 %v5175_v23, %v688_v14 }
 0x2f5   :  { %3367 = vmatmul.msk.f32.gmra.mxu2 %vm2185_vm3, %v5272_v59  ;;  %3371 = vmatmul.msk.f32.gmra.mxu3 %vm2185_vm3, %v5272_v59 }
 0x2f7   :  { %v1632_v22 = vpop.permute.xlu1 %1631 }
 0x2fa   :  { %v1144_v9 = vpop.permute.xlu0 %1143 }
 0x2fb   :  { %v1153_v62 = vsel %vm683_vm2, %v1142_v8, %v1144_v9 }
 0x2fc   :  { %3359 = vmatmul.msk.f32.gmra.mxu0 %vm2185_vm3, %v5847_v57  ;;  %3363 = vmatmul.msk.f32.gmra.mxu1 %vm2185_vm3, %v5847_v57  ;;  %v1165_v27 = vmax.f32 %v5827_v26, %v1153_v62  ;;  %v1634_v26 = vpop.permute.xlu2 %1633 }
 0x2fd   :  { %3368 = vmatmul.msk.f32.gmra.mxu2 %vm2185_vm3, %v5291_v5  ;;  %3372 = vmatmul.msk.f32.gmra.mxu3 %vm2185_vm3, %v5291_v5  ;;  %v1640_v19 = vsel %vm683_vm2, %v1632_v22, %v1634_v26 }
 0x2fe   :  { %v1171_v17 = vmax.f32 %v700_v36, %v1165_v27  ;;  %v1652_v43 = vmax.f32 %v5184_v56, %v1640_v19 }
 0x2ff   :  { %v2099_v23 = vpop.permute.xlu1 %2098 }
 0x300   :  { %v1180_v48 = vadd.f32 %v3460_v38, %v1171_v17 }
 0x302   :  { %v1186_v24 = vmax.f32 %v1180_v48, 0.0  ;;  %v2097_v40 = vpop.permute.xlu0 %2096 }
 0x303   :  { %v2105_v25 = vsel %vm683_vm2, %v2097_v40, %v2099_v23 }
 0x304   :  { %3360 = vmatmul.msk.f32.gmra.mxu0 %vm2185_vm3, %v5277_v47  ;;  %3364 = vmatmul.msk.f32.gmra.mxu1 %vm2185_vm3, %v5277_v47  ;;  %v680_v10 = vpop.permute.xlu2 %679 }
 0x305   :  { %3369 = vmatmul.msk.f32.gmra.mxu2 %vm2185_vm3, %v2134_v61  ;;  %3373 = vmatmul.msk.f32.gmra.mxu3 %vm2185_vm3, %v2134_v61 }
 0x307   :  { %v1146_v46 = vpop.permute.xlu1 %1145 }
 0x30a   :  { %v682_v31 = vpop.permute.xlu0 %681 }
 0x30b   :  { %v689_v63 = vsel %vm683_vm2, %v680_v10, %v682_v31 }
 0x30c   :  { %3361 = vmatmul.msk.f32.gmra.mxu0 %vm2185_vm3, %v1186_v24  ;;  %3365 = vmatmul.msk.f32.gmra.mxu1 %vm2185_vm3, %v1186_v24  ;;  %v1148_v53 = vpop.permute.xlu2 %1147  ;;  %v701_v56 = vmax.f32 %v5208_v28, %v689_v63  ;;  %v2285_v28 = vpop.f32.mrf.mxu2 }
 0x30d   :  { %3382 = vmatmul.msk.f32.vlgmr.msrb.gmra.mxu2 %vm2185_vm3, %v5272_v59  ;;  %3386 = vmatmul.msk.f32.vlgmr.msra.gmra.mxu3 %vm2185_vm3, %v5272_v59  ;;  %v2117_v59 = vmax.f32 %v5201_v51, %v2105_v25  ;;  %v1154_v15 = vsel %vm683_vm2, %v1146_v46, %v1148_v53 }
 0x30e   :  { %v1166_v51 = vmax.f32 %v5838_v55, %v1154_v15  ;;  %v5368_v55 = vpop.f32.mrf.mxu3 }
 0x30f   :  { %v2123_v45 = vmax.f32 %v1652_v43, %v2117_v59 }
 0x310   :  { %v1172_v33 = vmax.f32 %v701_v56, %v1166_v51 }
 0x311   :  { %v2129_v3 = vadd.f32 %v3460_v38, %v2123_v45 }
 0x314   :  { %3374 = vmatmul.msk.f32.vlgmr.msra.gmra.mxu0 %vm2185_vm3, %v5847_v57  ;;  %3378 = vmatmul.msk.f32.vlgmr.msra.gmra.mxu1 %vm2185_vm3, %v5847_v57  ;;  %v5372_v18 = vpop.f32.mrf.mxu2 }
 0x315   :  { %3383 = vmatmul.msk.f32.gmra.mxu2 %vm2185_vm3, %v5291_v5  ;;  %3387 = vmatmul.msk.f32.gmra.mxu3 %vm2185_vm3, %v5291_v5  ;;  %v2135_v5 = vmax.f32 %v2129_v3, 0.0 }
 0x316   :  { %v2317_v37 = vpop.f32.mrf.mxu3 }
 0x31c   :  { %3375 = vmatmul.msk.f32.gmra.mxu0 %vm2185_vm3, %v5277_v47  ;;  %3379 = vmatmul.msk.f32.gmra.mxu1 %vm2185_vm3, %v5277_v47  ;;  %v1181_v47 = vadd.f32 %v3460_v38, %v1172_v33  ;;  %v2291_v7 = vpop.f32.mrf.mxu2 }
 0x31d   :  { %3384 = vmatmul.msk.f32.gmra.mxu2 %vm2185_vm3, %v2134_v61  ;;  %3388 = vmatmul.msk.f32.gmra.mxu3 %vm2185_vm3, %v2134_v61 }
 0x31e   :  { %v1187_v16 = vmax.f32 %v1181_v47, 0.0  ;;  %v2320_v6 = vpop.f32.mrf.mxu3 }
 0x324   :  { %3376 = vmatmul.msk.f32.gmra.mxu0 %vm2185_vm3, %v1186_v24  ;;  %3380 = vmatmul.msk.f32.gmra.mxu1 %vm2185_vm3, %v1186_v24 }
 0x325   :  { %3385 = vmatmul.msk.f32.gmra.mxu2 %vm2185_vm3, %v2135_v5  ;;  %3389 = vmatmul.msk.f32.gmra.mxu3 %vm2185_vm3, %v2135_v5 }
 0x32c   :  { %3377 = vmatmul.msk.f32.gmra.mxu0 %vm2185_vm3, %v1187_v16  ;;  %3381 = vmatmul.msk.f32.gmra.mxu1 %vm2185_vm3, %v1187_v16 }
 0x351   :  { %v2215_v0 = vpop.f32.mrf.mxu0  ;;  %v5370_v20 = vpop.f32.mrf.mxu1 }
 0x352   :  { %v2286_v57 = vadd.f32 %v2285_v28, %v2215_v0 }
 0x359   :  { %v5374_v44 = vpop.f32.mrf.mxu0  ;;  %v2247_v58 = vpop.f32.mrf.mxu1 }
 0x35a   :  { %v2318_v53 = vadd.f32 %v2317_v37, %v2247_v58  ;;  %v2315_v37 = vadd.f32 %v5368_v55, %v5370_v20  ;;  %v2289_v58 = vadd.f32 %v5372_v18, %v5374_v44 }
 0x361   :  { %v2221_v29 = vpop.f32.mrf.mxu0  ;;  %v2250_v13 = vpop.f32.mrf.mxu1 }
 0x362   :  { %v2292_v40 = vadd.f32 %v2291_v7, %v2221_v29  ;;  %v2321_v10 = vadd.f32 %v2320_v6, %v2250_v13 }
 0x368   :  { %v2294_v2 = vpop.f32.mrf.mxu2  ;;  %v2323_v30 = vpop.f32.mrf.mxu3 }
 0x369   :  { %v2224_v4 = vpop.f32.mrf.mxu0  ;;  %v2253_v39 = vpop.f32.mrf.mxu1 }
 0x36a   :  { %v2295_v63 = vadd.f32 %v2294_v2, %v2224_v4  ;;  %v2324_v51 = vadd.f32 %v2323_v30, %v2253_v39 }
 0x370   :  { %v2465_v34 = vpop.f32.mrf.mxu2  ;;  %v5376_v12 = vpop.f32.mrf.mxu3 }
 0x371   :  { %v2371_v52 = vpop.f32.mrf.mxu0  ;;  %v2400_v35 = vpop.f32.mrf.mxu1 }
 0x372   :  { %v2412_v14 = vadd.f32 %v2371_v52, %v2286_v57  ;;  %v2413_v30 = vadd.f32 %v2400_v35, %v2315_v37  ;;  %v3405_v57 = vld [vmem:[%s5625_s5 + $0xa8] sm:$0xff] }
 0x374   :  { %v2506_v1 = vadd.f32 %v2465_v34, %v2412_v14  ;;  %v2507_v55 = vadd.f32 %v5376_v12, %v2413_v30  ;;  %v3407_v12 = vld [vmem:[%s5625_s5 + $0xb8] sm:$0xff]  ;;  %v3414_v14 = vld [vmem:[%s5625_s5 + $0xe8] sm:$0xff] }
 0x375   :  { %2842 = vmatpush.msra.mxu2 %v3407_v12 }
 0x378   :  { %v5378_v42 = vpop.f32.mrf.mxu2  ;;  %v2497_v54 = vpop.f32.mrf.mxu3 }
 0x379   :  { %v2374_v11 = vpop.f32.mrf.mxu0  ;;  %v2403_v49 = vpop.f32.mrf.mxu1 }
 0x37a   :  { %v2415_v33 = vadd.f32 %v2403_v49, %v2318_v53  ;;  %v2414_v4 = vadd.f32 %v2374_v11, %v2289_v58  ;;  %v3390_v53 = vld [vmem:[%s5625_s5 + $0x40] sm:$0xff] }
 0x37c   :  { %v2509_v0 = vadd.f32 %v2497_v54, %v2415_v33  ;;  %v2508_v20 = vadd.f32 %v5378_v42, %v2414_v4  ;;  %v3416_v42 = vld [vmem:[%s5625_s5 + $0xf8] sm:$0xff]  ;;  %v2912_v33 = vld [vmem:[%s5628_s8 + $0x68] sm:$0xff] }
 0x37d   :  { %2875 = vmatpush.msrb.mxu3 %v3416_v42 }
 0x380   :  { %v2471_v21 = vpop.f32.mrf.mxu2  ;;  %v2500_v41 = vpop.f32.mrf.mxu3 }
 0x381   :  { %v2377_v60 = vpop.f32.mrf.mxu0  ;;  %v2406_v8 = vpop.f32.mrf.mxu1 }
 0x382   :  { %v2416_v25 = vadd.f32 %v2377_v60, %v2292_v40  ;;  %v2417_v19 = vadd.f32 %v2406_v8, %v2321_v10  ;;  %v3397_v60 = vld [vmem:[%s5625_s5 + $0x78] sm:$0xff]  ;;  %v3400_v40 = vld [vmem:[%s5625_s5 + $0x80] sm:$0xff] }
 0x383   :  { %v2765_v8 = vld [vmem:[%s5625_s5 + $0x38] sm:$0xff]  ;;  %2787 = vmatpush.msrb.mxu0 %v3397_v60 }
 0x384   :  { %v2510_v31 = vadd.f32 %v2471_v21, %v2416_v25  ;;  %v2511_v43 = vadd.f32 %v2500_v41, %v2417_v19  ;;  %2810 = vmatpush.msrb.mxu1 %v2765_v8  ;;  %v3393_v10 = vld [vmem:[%s5625_s5 + $0x58] sm:$0xff]  ;;  %v3411_v25 = vld [vmem:[%s5625_s5 + $0xd0] sm:$0xff] }
 0x385   :  { %v3392_v19 = vld [vmem:[%s5625_s5 + $0x50] sm:$0xff] }
 0x388   :  { %v2474_v50 = vpop.f32.mrf.mxu2  ;;  %v2503_v9 = vpop.f32.mrf.mxu3 }
 0x389   :  { %v2380_v32 = vpop.f32.mrf.mxu0  ;;  %v2409_v62 = vpop.f32.mrf.mxu1 }
 0x38a   :  { %v2418_v5 = vadd.f32 %v2380_v32, %v2295_v63  ;;  %v2419_v47 = vadd.f32 %v2409_v62, %v2324_v51  ;;  %v3396_v32 = vld [vmem:[%s5625_s5 + $0x70] sm:$0xff]  ;;  %v2758_v63 = vld [vmem:[%s5625_s5] sm:$0xff] }
 0x38b   :  { %v2764_v62 = vld [vmem:[%s5625_s5 + $0x30] sm:$0xff]  ;;  %2788 = vmatpush.msrb.mxu0 %v3396_v32 }
 0x38c   :  { %v2512_v6 = vadd.f32 %v2474_v50, %v2418_v5  ;;  %v2513_v7 = vadd.f32 %v2503_v9, %v2419_v47  ;;  %v3406_v50 = vld [vmem:[%s5625_s5 + $0xb0] sm:$0xff]  ;;  %2811 = vmatpush.msrb.mxu1 %v2764_v62  ;;  %v2911_v47 = vld [vmem:[%s5628_s8 + $0x60] sm:$0xff]  ;;  %v2904_v62 = vld [vmem:[%s5628_s8 + $0x28] sm:$0xff] }
 0x38d   :  { %v3415_v9 = vld [vmem:[%s5625_s5 + $0xf0] sm:$0xff]  ;;  %2843 = vmatpush.msra.mxu2 %v3406_v50  ;;  %v2907_v50 = vld [vmem:[%s5628_s8 + $0x40] sm:$0xff] }
 0x38e   :  { %2876 = vmatpush.msrb.mxu3 %v3415_v9  ;;  %v2906_v9 = vld [vmem:[%s5628_s8 + $0x38] sm:$0xff]  ;;  %v2905_v32 = vld [vmem:[%s5628_s8 + $0x30] sm:$0xff] }
 0x38f   :  { %2844 = vmatpush.msra.mxu2 %v3405_v57  ;;  %v2903_v57 = vld [vmem:[%s5628_s8 + $0x20] sm:$0xff] }
 0x390   :  { %v2653_v27 = vpop.f32.mrf.mxu2  ;;  %v2682_v38 = vpop.f32.mrf.mxu3  ;;  %2877 = vmatpush.msrb.mxu3 %v3414_v14  ;;  %v2902_v14 = vld [vmem:[%s5628_s8 + $0x18] sm:$0xff] }
 0x391   :  { %v2559_v36 = vpop.f32.mrf.mxu0  ;;  %v2588_v17 = vpop.f32.mrf.mxu1 }
 0x392   :  { %v2600_v61 = vadd.f32 %v2559_v36, %v2506_v1  ;;  %v2601_v18 = vadd.f32 %v2588_v17, %v2507_v55  ;;  %v3402_v1 = vld [vmem:[%s5625_s5 + $0x90] sm:$0xff]  ;;  %v3395_v36 = vld [vmem:[%s5625_s5 + $0x68] sm:$0xff] }
 0x393   :  { %v3401_v17 = vld [vmem:[%s5625_s5 + $0x88] sm:$0xff]  ;;  %2789 = vmatpush.msrb.mxu0 %v3395_v36  ;;  %v2953_v36 = vld [vmem:[%s5631_s11 + $0x38] sm:$0xff] }
 0x394   :  { %v5380_v22 = vadd.f32 %v2653_v27, %v2600_v61  ;;  %v5410_v35 = vadd.f32 %v2682_v38, %v2601_v18  ;;  %v3404_v27 = vld [vmem:[%s5625_s5 + $0xa0] sm:$0xff]  ;;  %v3403_v38 = vld [vmem:[%s5625_s5 + $0x98] sm:$0xff]  ;;  %v2763_v61 = vld [vmem:[%s5625_s5 + $0x28] sm:$0xff] }
 0x395   :  { %2845 = vmatpush.msra.mxu2 %v3404_v27  ;;  %2812 = vmatpush.msrb.mxu1 %v2763_v61  ;;  %v2901_v27 = vld [vmem:[%s5628_s8 + $0x10] sm:$0xff]  ;;  %v2951_v61 = vld [vmem:[%s5631_s11 + $0x28] sm:$0xff] }
 0x396   :  { %2706 = vrot.lane.b32.xlu1 %v5380_v22, %s3491_s2 }
 0x397   :  { %2846 = vmatpush.msra.mxu2 %v3403_v38  ;;  %v2900_v38 = vld [vmem:[%s5628_s8 + $0x8] sm:$0xff] }
 0x398   :  { %v2656_v26 = vpop.f32.mrf.mxu2  ;;  %v2685_v48 = vpop.f32.mrf.mxu3 }
 0x399   :  { %v2562_v24 = vpop.f32.mrf.mxu0  ;;  %v2591_v23 = vpop.f32.mrf.mxu1  ;;  %2847 = vmatpush.msra.mxu2 %v3402_v1  ;;  %v2899_v1 = vld [vmem:[%s5628_s8] sm:$0xff] }
 0x39a   :  { %v2603_v29 = vadd.f32 %v2591_v23, %v2509_v0  ;;  %v2602_v44 = vadd.f32 %v2562_v24, %v2508_v20  ;;  %v2762_v24 = vld [vmem:[%s5625_s5 + $0x20] sm:$0xff]  ;;  %v3412_v23 = vld [vmem:[%s5625_s5 + $0xd8] sm:$0xff] }
 0x39b   :  { %2848 = vmatpush.msra.mxu2 %v3401_v17  ;;  %2813 = vmatpush.msrb.mxu1 %v2762_v24  ;;  %v2952_v17 = vld [vmem:[%s5631_s11 + $0x30] sm:$0xff] }
 0x39c   :  { %v5400_v41 = vadd.f32 %v2685_v48, %v2603_v29  ;;  %v5412_v11 = vadd.f32 %v2656_v26, %v2602_v44  ;;  %v3413_v26 = vld [vmem:[%s5625_s5 + $0xe0] sm:$0xff] }
 0x39d   :  { %v3394_v48 = vld [vmem:[%s5625_s5 + $0x60] sm:$0xff]  ;;  %2878 = vmatpush.msrb.mxu3 %v3413_v26  ;;  %2849 = vmatpush.msra.mxu2 %v3400_v40 }
 0x39e   :  { %2790 = vmatpush.msrb.mxu0 %v3394_v48  ;;  %v2950_v26 = vld [vmem:[%s5631_s11 + $0x20] sm:$0xff] }
 0x39f   :  { %2879 = vmatpush.msrb.mxu3 %v3412_v23 }
 0x3a0   :  { %v2659_v59 = vpop.f32.mrf.mxu2  ;;  %v2688_v46 = vpop.f32.mrf.mxu3  ;;  %2791 = vmatpush.msrb.mxu0 %v3393_v10 }
 0x3a1   :  { %v2565_v45 = vpop.f32.mrf.mxu0  ;;  %v2594_v15 = vpop.f32.mrf.mxu1  ;;  %2880 = vmatpush.msrb.mxu3 %v3411_v25  ;;  %v3430_v25 = vld [vmem:[%s5626_s6] ss:$0 sm:$0xff] }
 0x3a2   :  { %v2604_v56 = vadd.f32 %v2565_v45, %v2510_v31  ;;  %v2605_v3 = vadd.f32 %v2594_v15, %v2511_v43  ;;  %2792 = vmatpush.msrb.mxu0 %v3392_v19  ;;  %v2761_v31 = vld [vmem:[%s5625_s5 + $0x18] sm:$0xff]  ;;  %v2760_v43 = vld [vmem:[%s5625_s5 + $0x10] sm:$0xff]  ;;  %v3409_v45 = vld [vmem:[%s5625_s5 + $0xc0] sm:$0xff] }
 0x3a3   :  { %2814 = vmatpush.msrb.mxu1 %v2761_v31  ;;  %v2759_v15 = vld [vmem:[%s5625_s5 + $0x8] sm:$0xff] }
 0x3a4   :  { %v5384_v16 = vadd.f32 %v2659_v59, %v2604_v56  ;;  %v5386_v28 = vadd.f32 %v2688_v46, %v2605_v3  ;;  %v3391_v59 = vld [vmem:[%s5625_s5 + $0x48] sm:$0xff]  ;;  %v2914_v56 = vld [vmem:[%s5628_s8 + $0x78] sm:$0xff]  ;;  %v2913_v3 = vld [vmem:[%s5628_s8 + $0x70] sm:$0xff] }
 0x3a5   :  { %v3410_v46 = vld [vmem:[%s5625_s5 + $0xc8] sm:$0xff]  ;;  %2793 = vmatpush.msrb.mxu0 %v3391_v59  ;;  %2815 = vmatpush.msrb.mxu1 %v2760_v43 }
 0x3a6   :  { %2710 = vrot.lane.b32.xlu0 %v5384_v16, %s3491_s2  ;;  %2730 = vrot.lane.b32.xlu1 %v5386_v28, %s3491_s2 }
 0x3a7   :  { %2881 = vmatpush.msrb.mxu3 %v3410_v46  ;;  %2794 = vmatpush.msrb.mxu0 %v3390_v53  ;;  %v3431_v46 = vld [vmem:[%s5627_s7] ss:$0 sm:$0xff] }
 0x3a8   :  { %v2662_v52 = vpop.f32.mrf.mxu2  ;;  %v2691_v49 = vpop.f32.mrf.mxu3  ;;  %2816 = vmatpush.msrb.mxu1 %v2759_v15  ;;  %v2948_v15 = vld [vmem:[%s5631_s11 + $0x10] sm:$0xff] }
 0x3a9   :  { %v2568_v13 = vpop.f32.mrf.mxu0  ;;  %v2597_v2 = vpop.f32.mrf.mxu1  ;;  %2882 = vmatpush.msrb.mxu3 %v3409_v45  ;;  %2915 = vmatpush.msra.mxu0 %v2914_v56  ;;  %v2949_v45 = vld [vmem:[%s5631_s11 + $0x18] sm:$0xff]  ;;  %v3432_v56 = vld [vmem:[%s5629_s9] ss:$0 sm:$0xff] }
 0x3aa   :  { %v2606_v39 = vadd.f32 %v2568_v13, %v2512_v6  ;;  %v2607_v34 = vadd.f32 %v2597_v2, %v2513_v7  ;;  %2817 = vmatpush.msrb.mxu1 %v2758_v63  ;;  %v3429_v6 = vld [vmem:[%s5624_s4] ss:$0 sm:$0xff]  ;;  %v2947_v63 = vld [vmem:[%s5631_s11 + $0x8] sm:$0xff] }
 0x3ab   :  { %2916 = vmatpush.msra.mxu0 %v2913_v3  ;;  %v3433_v3 = vld [vmem:[%s5630_s10] ss:$0 sm:$0xff] }
 0x3ac   :  { %v5396_v21 = vadd.f32 %v2662_v52, %v2606_v39  ;;  %v5398_v54 = vadd.f32 %v2691_v49, %v2607_v34  ;;  %2969 = vmatpush.msra.mxu1 %v2953_v36 }
 0x3ad   :  { %2917 = vmatpush.msra.mxu0 %v2912_v33 }
 0x3ae   :  { %2712 = vrot.lane.b32.xlu2 %v5396_v21, %s3491_s2  ;;  %2732 = vrot.lane.b32.xlu0 %v5398_v54, %s3491_s2 }
 0x3af   :  { %2728 = vrot.lane.b32.xlu1 %v5400_v41, %s3491_s2  ;;  %2918 = vmatpush.msra.mxu0 %v2911_v47 }
 0x3b0   :  { %2970 = vmatpush.msra.mxu1 %v2952_v17 }
 0x3b2   :  { %2971 = vmatpush.msra.mxu1 %v2951_v61 }
 0x3b4   :  { %2972 = vmatpush.msra.mxu1 %v2950_v26 }
 0x3b6   :  { %2726 = vrot.lane.b32.xlu0 %v5410_v35, %s3491_s2  ;;  %2708 = vrot.lane.b32.xlu2 %v5412_v11, %s3491_s2 }
 0x3b7   :  { %2973 = vmatpush.msra.mxu1 %v2949_v45 }
 0x3b9   :  { %2974 = vmatpush.msra.mxu1 %v2948_v15 }
 0x3bb   :  { %2975 = vmatpush.msra.mxu1 %v2947_v63 }
 0x408   :  { %v2707_v51 = vpop.permute.xlu1 %2706  ;;  %v2713_v5 = vpop.permute.xlu2 %2712 }
 0x409   :  { %v2721_v39 = vmax.f32 %v5396_v21, %v2713_v5  ;;  %v2718_v60 = vmax.f32 %v5380_v22, %v2707_v51  ;;  %v2909_v22 = vld [vmem:[%s5628_s8 + $0x50] sm:$0xff]  ;;  %v2946_v51 = vld [vmem:[%s5631_s11] sm:$0xff] }
 0x40a   :  { %2976 = vmatpush.msra.mxu1 %v2946_v51 }
 0x410   :  { %v2709_v2 = vpop.permute.xlu2 %2708 }
 0x418   :  { %v2711_v0 = vpop.permute.xlu0 %2710  ;;  %v2731_v37 = vpop.permute.xlu1 %2730 }
 0x419   :  { %v2720_v58 = vmax.f32 %v5384_v16, %v2711_v0  ;;  %v2740_v7 = vmax.f32 %v5386_v28, %v2731_v37  ;;  %v2719_v16 = vmax.f32 %v5412_v11, %v2709_v2  ;;  %v3434_v37 = vld [vmem:[%s5632_s12] ss:$0 sm:$0xff] }
 0x41b   :  { %v2744_v29 = vmax.f32 %v2720_v58, %v2740_v7 }
 0x41d   :  { %v2752_v13 = vadd.f32 %v3429_v6, %v2744_v29 }
 0x41f   :  { %v2756_v30 = vmax.f32 %v2752_v13, 0.0 }
 0x420   :  { %v2733_v4 = vpop.permute.xlu0 %2732 }
 0x421   :  { %v2741_v34 = vmax.f32 %v5398_v54, %v2733_v4  ;;  %v2729_v52 = vpop.permute.xlu1 %2728  ;;  %3408 = vmatmul.msk.f32.vlgmr.msra.gmra.mxu2 %vm2775_vm4, %v2756_v30 }
 0x422   :  { %v2739_v49 = vmax.f32 %v5400_v41, %v2729_v52  ;;  %v2910_v41 = vld [vmem:[%s5628_s8 + $0x58] sm:$0xff] }
 0x423   :  { %v2745_v55 = vmax.f32 %v2721_v39, %v2741_v34  ;;  %2919 = vmatpush.msra.mxu0 %v2910_v41 }
 0x424   :  { %v2743_v20 = vmax.f32 %v2719_v16, %v2739_v49 }
 0x425   :  { %v2753_v28 = vadd.f32 %v3429_v6, %v2745_v55  ;;  %2920 = vmatpush.msra.mxu0 %v2909_v22 }
 0x426   :  { %v2751_v18 = vadd.f32 %v3429_v6, %v2743_v20 }
 0x427   :  { %v2757_v44 = vmax.f32 %v2753_v28, 0.0 }
 0x428   :  { %v2755_v12 = vmax.f32 %v2751_v18, 0.0  ;;  %v2727_v42 = vpop.permute.xlu0 %2726 }
 0x429   :  { %v2738_v21 = vmax.f32 %v5410_v35, %v2727_v42  ;;  %3417 = vmatmul.msk.f32.vlgmr.msrb.gmra.mxu3 %vm2775_vm4, %v2757_v44  ;;  %v2908_v35 = vld [vmem:[%s5628_s8 + $0x48] sm:$0xff] }
 0x42a   :  { %3398 = vmatmul.msk.f32.vlgmr.msrb.gmra.mxu0 %vm2775_vm4, %v2755_v12 }
 0x42b   :  { %v2742_v54 = vmax.f32 %v2718_v60, %v2738_v21  ;;  %2921 = vmatpush.msra.mxu0 %v2908_v35 }
 0x42d   :  { %v2750_v8 = vadd.f32 %v3429_v6, %v2742_v54  ;;  %2922 = vmatpush.msra.mxu0 %v2907_v50 }
 0x42f   :  { %v2754_v11 = vmax.f32 %v2750_v8, 0.0  ;;  %2923 = vmatpush.msra.mxu0 %v2906_v9 }
 0x431   :  { %3399 = vmatmul.msk.f32.vlgmr.msrb.gmra.mxu1 %vm2775_vm4, %v2754_v11  ;;  %2924 = vmatpush.msra.mxu0 %v2905_v32 }
 0x433   :  { %2925 = vmatpush.msra.mxu0 %v2904_v62 }
 0x435   :  { %2926 = vmatpush.msra.mxu0 %v2903_v57 }
 0x437   :  { %2927 = vmatpush.msra.mxu0 %v2902_v14 }
 0x439   :  { %2928 = vmatpush.msra.mxu0 %v2901_v27 }
 0x43b   :  { %2929 = vmatpush.msra.mxu0 %v2900_v38 }
 0x43d   :  { %2930 = vmatpush.msra.mxu0 %v2899_v1 }
 0x4a4   :  { %v2851_v40 = vpop.f32.mrf.mxu2 }
 0x4a7   :  { %v2796_v48 = vpop.f32.mrf.mxu0 }
 0x4ac   :  { %v2884_v19 = vpop.f32.mrf.mxu3 }
 0x4ae   :  { %v2819_v24 = vpop.f32.mrf.mxu1 }
 0x4af   :  { %v2820_v23 = vadd.f32 %v2819_v24, %v2796_v48 }
 0x4b1   :  { %v2854_v10 = vadd.f32 %v2851_v40, %v2820_v23 }
 0x4b3   :  { %v2887_v59 = vadd.f32 %v2884_v19, %v2854_v10 }
 0x4b5   :  { %v2892_v31 = vmul.f32 %v3430_v25, %v2887_v59 }
 0x4b7   :  { %v2897_v43 = vadd.f32 %v3431_v46, %v2892_v31 }
 0x4b9   :  { %v2898_v53 = vmax.f32 %v2897_v43, 0.0 }
 0x4bb   :  { %2931 = vmatmul.f32.vlgmr.msra.gmra.mxu0 %v2898_v53 }
 0x538   :  { %v2932_v33 = vpop.f32.mrf.mxu0 }
 0x539   :  { %v2939_v5 = vmul.f32 %v3432_v56, %v2932_v33 }
 0x53b   :  { %v2944_v47 = vadd.f32 %v3433_v3, %v2939_v5 }
 0x53d   :  { %v2945_v0 = vmax.f32 %v2944_v47, 0.0 }
 0x53f   :  { %3418 = vmatmul.msk.f32.vlgmr.msra.gmra.mxu1 %vm2775_vm4, %v2945_v0 }
 0x5bc   :  { %v2978_v58 = vpop.f32.mrf.mxu1 }
 0x5bd   :  { %v2979_v6 = vadd.f32 %v3434_v37, %v2978_v58 }
 0x5bf   :  { %2982 = vst.msk [vmem:[%s5633_s13] sm:$0xff] %vm2981_vm5, %v2979_v6 }
 0x5c0   :  { %2987 = vsyncpa [#allocation3], 1 }

</bundles_post_ra>
